<compile_context>
chip_gen: v7x
topology: tpu7x:2x2x1
jax: 0.10.0
libtpu: 0.0.40
codegen_flags: <defaults>
</compile_context>

<pallas_src>
import functools

import jax
import jax.numpy as jnp
from jax.experimental import pallas as pl
from jax.experimental.pallas import tpu as pltpu


# ----------------------------------------------------------------------------
# Fused ConvBlock kernel.
#
#   x_ref : (1, CMAX, NpPad)     f32  activation of one batch element in
#                                     zero-padded flattened-spatial layout
#                                     p = (y+1)*Wp + (x+1); halo / pad-tail
#                                     positions and channels >= real Cin are 0.
#   w_ref : (L*9, CMAX, CMAX)    bf16 per-layer, per-tap weights;
#                                     index = layer*9 + (ky*3 + kx).
#   b_ref : (L, CMAX, 1)         f32  per-layer biases (zero-padded).
#   m_ref : (1, NpPad)           f32  interior mask (1 inside, 0 on halo/pad).
#   o_ref : (1, C_OUT, NpPad)    f32  last-layer output (padded layout).
# ----------------------------------------------------------------------------
def _conv_block_kernel(x_ref, w_ref, b_ref, m_ref, o_ref, *, wp, n_layers,
                       neg_slope):
    cmax = x_ref.shape[1]
    np_flat = x_ref.shape[2]
    c_out = o_ref.shape[1]

    interior = m_ref[...]                 # (1, NpPad)  f32, hoisted
    a = x_ref[0]                          # (CMAX, NpPad) f32

    # tap offsets in the padded-flat index space: off = (ky-1)*Wp + (kx-1)
    offsets = [(ky - 1) * wp + (kx - 1) for ky in range(3) for kx in range(3)]

    for l in range(n_layers):             # statically unrolled: 5 layers
        acc = None
        for t, off in enumerate(offsets):
            s = off % np_flat
            if s == 0:
                a_sh = a
            else:
                # a_sh[c, p] = a[c, (p + off) mod NpPad]; for every interior p
                # the read lands in-range within the same image, so the cyclic
                # wrap only pollutes halo/pad positions which are re-zeroed.
                a_sh = jnp.concatenate([a[:, s:], a[:, :s]], axis=1)
            w_tap = w_ref[l * 9 + t]                         # (CMAX, CMAX) bf16
            d = jnp.dot(w_tap, a_sh.astype(jnp.bfloat16),    # MXU, f32 accum
                        preferred_element_type=jnp.float32)
            acc = d if acc is None else acc + d
        acc = acc + b_ref[l]                                 # (CMAX,1) f32
        if l < n_layers - 1:                                 # LeakyReLU(0.01)
            acc = jnp.where(acc >= 0, acc, neg_slope * acc)
            a = acc * interior                               # re-zero halo/pad
        else:
            o_ref[0] = acc[:c_out, :]


def conv_block_apply(x, w_stack, b_stack, neg_slope=0.01):
    """Apply a fused ConvBlock.  x: (B, H, W, Cin) f32 -> (B, H, W, 2) f32."""
    B, H, W, cin = x.shape
    _, cmax, _ = w_stack.shape
    n_layers = b_stack.shape[0]
    c_out = 2
    Hp, Wp = H + 2, W + 2
    Np = Hp * Wp
    NpPad = ((Np + 127) // 128) * 128       # lane-dense spatial axis

    # Layout plumbing (XLA glue): zero-pad halo + channels, channel-major flat,
    # then pad the flat spatial axis up to a multiple of 128.
    xp = jnp.pad(x, ((0, 0), (1, 1), (1, 1), (0, cmax - cin)))
    xk = jnp.transpose(xp, (0, 3, 1, 2)).reshape(B, cmax, Np)
    xk = jnp.pad(xk, ((0, 0), (0, 0), (0, NpPad - Np)))

    # Interior (non-halo, non-pad) mask -- data independent, constant folded.
    pid = jnp.arange(NpPad, dtype=jnp.int32)
    yy, xx = pid // Wp, pid % Wp
    interior = (((yy >= 1) & (yy <= H)) & ((xx >= 1) & (xx <= W)))
    interior = interior.astype(jnp.float32).reshape(1, NpPad)

    flops = 2 * B * n_layers * 9 * cmax * cmax * NpPad
    bytes_accessed = (xk.size * 4 + w_stack.size * 2 + b_stack.size * 4
                      + interior.size * 4 + B * c_out * NpPad * 4)

    kernel = functools.partial(_conv_block_kernel, wp=Wp, n_layers=n_layers,
                               neg_slope=neg_slope)
    out = pl.pallas_call(
        kernel,
        out_shape=jax.ShapeDtypeStruct((B, c_out, NpPad), jnp.float32),
        grid=(B,),
        in_specs=[
            pl.BlockSpec((1, cmax, NpPad), lambda b: (b, 0, 0)),
            pl.BlockSpec((n_layers * 9, cmax, cmax), lambda b: (0, 0, 0)),
            pl.BlockSpec((n_layers, cmax, 1), lambda b: (0, 0, 0)),
            pl.BlockSpec((1, NpPad), lambda b: (0, 0)),
        ],
        out_specs=pl.BlockSpec((1, c_out, NpPad), lambda b: (b, 0, 0)),
        compiler_params=pltpu.CompilerParams(
            dimension_semantics=("parallel",)),
        cost_estimate=pl.CostEstimate(flops=flops, transcendentals=0,
                                      bytes_accessed=bytes_accessed),
    )(xk, w_stack, b_stack, interior)

    out = out[:, :, :Np].reshape(B, c_out, Hp, Wp)[:, :, 1:1 + H, 1:1 + W]
    return jnp.transpose(out, (0, 2, 3, 1))                 # (B, H, W, 2)


# ----------------------------------------------------------------------------
# Parameter construction / packing.
#   Raw layer weights use layout (Cout, ky, kx, Cin); to load real PyTorch
#   Conv2d weights (Cout, Cin, kh, kw), transpose with (0, 2, 3, 1) first.
# ----------------------------------------------------------------------------
def init_conv_block_raw(key, n_convs=5, n_filters=16, in_chans=2, out_chans=2):
    chans = [in_chans] + [n_filters] * (n_convs - 1) + [out_chans]
    layers = []
    for l in range(n_convs):
        cin, cout = chans[l], chans[l + 1]
        key, kw, kb = jax.random.split(key, 3)
        w = (jax.random.normal(kw, (cout, 3, 3, cin), jnp.float32)
             / jnp.sqrt(9.0 * cin))
        b = 0.01 * jax.random.normal(kb, (cout,), jnp.float32)
        layers.append((w, b))
    return layers


def pack_conv_block(layers, cmax):
    n_layers = len(layers)
    w_stack = jnp.zeros((n_layers * 9, cmax, cmax), jnp.float32)
    b_stack = jnp.zeros((n_layers, cmax, 1), jnp.float32)
    for l, (w, b) in enumerate(layers):
        cout, _, _, cin = w.shape
        wl = jnp.zeros((cmax, 3, 3, cmax), jnp.float32)
        wl = wl.at[:cout, :, :, :cin].set(w)
        wl = jnp.transpose(wl, (1, 2, 0, 3)).reshape(9, cmax, cmax)  # tap-major
        w_stack = w_stack.at[l * 9:(l + 1) * 9].set(wl)
        b_stack = b_stack.at[l, :cout, 0].set(b)
    return w_stack.astype(jnp.bfloat16), b_stack


def init_kikinet(key, n_cascade=5, n_convs=5, n_filters=16):
    cmax = max(n_filters, 2)
    params = []
    for _ in range(n_cascade):
        key, ki, kk = jax.random.split(key, 3)
        iw, ib = pack_conv_block(init_conv_block_raw(ki, n_convs, n_filters), cmax)
        kw_, kb_ = pack_conv_block(init_conv_block_raw(kk, n_convs, n_filters), cmax)
        params.append({"i_w": iw, "i_b": ib, "k_w": kw_, "k_b": kb_})
    return params


# ----------------------------------------------------------------------------
# FFT helpers mimicking old torch .fft(2, True) / .ifft(2, True)
# (complex tensor stored as trailing dim of size 2, ortho normalization)
# ----------------------------------------------------------------------------
def _to_complex(x):       # (B,H,W,2) -> (B,H,W) complex64
    return jax.lax.complex(x[..., 0], x[..., 1])


def _to_real2(xc):        # (B,H,W) complex -> (B,H,W,2)
    return jnp.stack([jnp.real(xc), jnp.imag(xc)], axis=-1)


def fft2c(x):
    return _to_real2(jnp.fft.fft2(_to_complex(x), axes=(1, 2), norm="ortho"))


def ifft2c(x):
    return _to_real2(jnp.fft.ifft2(_to_complex(x), axes=(1, 2), norm="ortho"))


# ----------------------------------------------------------------------------
# KikiNet forward
#   x:    (B, H, W, 2)  complex image (real, imag)
#   k0:   (B, H, W, 2)  measured k-space
#   mask: (B, H, W, 1)  sampling mask (broadcast over real/imag)
# ----------------------------------------------------------------------------
def kikinet_forward(params, x, k0, mask):
    k_i = fft2c(x)
    x_i = x                                         # NHWC kept end-to-end
    for casc in params:
        k_i = conv_block_apply(k_i, casc["k_w"], casc["k_b"])   # k-space block
        im = ifft2c(k_i)
        x_i = conv_block_apply(x_i + im, casc["i_w"], casc["i_b"])  # image block
        x_ik = fft2c(x_i)
        x_ik = (1.0 - mask) * x_ik + k0             # data consistency (as spec)
        k_i = x_ik
        x_i = ifft2c(k_i)
    return x_i                                      # (B, H, W, 2)


# ----------------------------------------------------------------------------
# Pure-JAX reference ConvBlock (for a sanity check of the fused kernel).
# ----------------------------------------------------------------------------
def conv_block_reference(x, layers, neg_slope=0.01):
    n = len(layers)
    for i, (w, b) in enumerate(layers):
        wk = jnp.transpose(w, (1, 2, 3, 0))         # (kh, kw, cin, cout)
        x = jax.lax.conv_general_dilated(
            x, wk, window_strides=(1, 1), padding="SAME",
            dimension_numbers=("NHWC", "HWIO", "NHWC")) + b
        if i < n - 1:
            x = jnp.where(x >= 0, x, neg_slope * x)
    return x


if __name__ == "__main__":
    key = jax.random.PRNGKey(0)
    kx, kk0, km, kp, kc, kt = jax.random.split(key, 6)

    B, H, W = 2, 16, 16
    x = jax.random.normal(kx, (B, H, W, 2), jnp.float32)
    k0 = jax.random.normal(kk0, (B, H, W, 2), jnp.float32)
    mask = (jax.random.uniform(km, (B, H, W, 1)) > 0.5).astype(jnp.float32)

    # --- sanity check: fused Pallas ConvBlock vs lax.conv reference ---------
    layers = init_conv_block_raw(kc, n_convs=5, n_filters=16)
    wpk, bpk = pack_conv_block(layers, cmax=16)
    xt = jax.random.normal(kt, (B, H, W, 2), jnp.float32)
    got = conv_block_apply(xt, wpk, bpk)
    ref = conv_block_reference(xt, layers)
    rel_err = float(jnp.linalg.norm(got - ref) / (jnp.linalg.norm(ref) + 1e-8))
    assert rel_err < 5e-2, f"fused ConvBlock mismatch: rel L2 err {rel_err}"

    # --- full forward -------------------------------------------------------
    params = init_kikinet(kp, n_cascade=5, n_convs=5, n_filters=16)
    fwd = jax.jit(kikinet_forward)
    out = jax.block_until_ready(fwd(params, x, k0, mask))

    assert out.shape == (B, H, W, 2), out.shape
    assert bool(jnp.all(jnp.isfinite(out)))
    print("KERNEL_OK")
</pallas_src>

<mosaic_0001>
module attributes {stable_mosaic.version = 11 : i64} {
  func.func @_conv_block_kernel(%arg0: i32, %arg1: memref<1x16x384xf32, #tpu.memory_space<vmem>>, %arg2: memref<45x16x16xbf16, #tpu.memory_space<vmem>>, %arg3: memref<5x16x1xf32, #tpu.memory_space<vmem>>, %arg4: memref<1x384xf32, #tpu.memory_space<vmem>>, %arg5: memref<1x2x384xf32, #tpu.memory_space<vmem>>) attributes {dimension_semantics = [#tpu.dimension_semantics<parallel>], iteration_bounds = array<i64: 2>, scalar_prefetch = 0 : i64, scratch_operands = 0 : i64, tpu.core_type = #tpu.core_type<tc>, window_params = [{transform_indices = @transform_0, window_bounds = array<i64: 1, 16, 384>}, {pipeline_mode = #tpu.pipeline_mode<synchronous>, transform_indices = @transform_1, window_bounds = array<i64: 45, 16, 16>}, {pipeline_mode = #tpu.pipeline_mode<synchronous>, transform_indices = @transform_2, window_bounds = array<i64: 5, 16, 1>}, {pipeline_mode = #tpu.pipeline_mode<synchronous>, transform_indices = @transform_3, window_bounds = array<i64: 1, 384>}, {transform_indices = @transform_4, window_bounds = array<i64: 1, 2, 384>}]} {
    %c0 = arith.constant 0 : index
    %c0_0 = arith.constant 0 : index
    %0 = vector.load %arg4[%c0, %c0_0] : memref<1x384xf32, #tpu.memory_space<vmem>>, vector<1x384xf32>
    %c0_1 = arith.constant 0 : index
    %c0_2 = arith.constant 0 : index
    %c0_3 = arith.constant 0 : index
    %1 = vector.load %arg1[%c0_1, %c0_2, %c0_3] : memref<1x16x384xf32, #tpu.memory_space<vmem>>, vector<1x16x384xf32>
    %2 = vector.shape_cast %1 : vector<1x16x384xf32> to vector<16x384xf32>
    %3 = vector.extract_strided_slice %2 {offsets = [0, 365], sizes = [16, 19], strides = [1, 1]} : vector<16x384xf32> to vector<16x19xf32>
    %4 = vector.extract_strided_slice %2 {offsets = [0, 0], sizes = [16, 365], strides = [1, 1]} : vector<16x384xf32> to vector<16x365xf32>
    %5 = tpu.concatenate %3, %4 in 1 : vector<16x19xf32>, vector<16x365xf32> -> vector<16x384xf32>
    %c0_4 = arith.constant 0 : index
    %c0_5 = arith.constant 0 : index
    %c0_6 = arith.constant 0 : index
    %6 = vector.load %arg2[%c0_4, %c0_5, %c0_6] : memref<45x16x16xbf16, #tpu.memory_space<vmem>>, vector<1x16x16xbf16>
    %7 = vector.shape_cast %6 : vector<1x16x16xbf16> to vector<16x16xbf16>
    %8 = arith.truncf %5 : vector<16x384xf32> to vector<16x384xbf16>
    %cst = arith.constant dense<0.000000e+00> : vector<16x384xf32>
    %9 = tpu.matmul %7, %8, %cst {dimension_numbers = #tpu.dot_dimension_numbers<[1], [0], [0], [1], [0, 0, 1, 1], [], []>} : vector<16x16xbf16>, vector<16x384xbf16>, vector<16x384xf32> -> vector<16x384xf32>
    %10 = vector.extract_strided_slice %2 {offsets = [0, 366], sizes = [16, 18], strides = [1, 1]} : vector<16x384xf32> to vector<16x18xf32>
    %11 = vector.extract_strided_slice %2 {offsets = [0, 0], sizes = [16, 366], strides = [1, 1]} : vector<16x384xf32> to vector<16x366xf32>
    %12 = tpu.concatenate %10, %11 in 1 : vector<16x18xf32>, vector<16x366xf32> -> vector<16x384xf32>
    %c1 = arith.constant 1 : index
    %c0_7 = arith.constant 0 : index
    %c0_8 = arith.constant 0 : index
    %13 = vector.load %arg2[%c1, %c0_7, %c0_8] : memref<45x16x16xbf16, #tpu.memory_space<vmem>>, vector<1x16x16xbf16>
    %14 = vector.shape_cast %13 : vector<1x16x16xbf16> to vector<16x16xbf16>
    %15 = arith.truncf %12 : vector<16x384xf32> to vector<16x384xbf16>
    %cst_9 = arith.constant dense<0.000000e+00> : vector<16x384xf32>
    %16 = tpu.matmul %14, %15, %cst_9 {dimension_numbers = #tpu.dot_dimension_numbers<[1], [0], [0], [1], [0, 0, 1, 1], [], []>} : vector<16x16xbf16>, vector<16x384xbf16>, vector<16x384xf32> -> vector<16x384xf32>
    %17 = arith.addf %9, %16 : vector<16x384xf32>
    %18 = vector.extract_strided_slice %2 {offsets = [0, 367], sizes = [16, 17], strides = [1, 1]} : vector<16x384xf32> to vector<16x17xf32>
    %19 = vector.extract_strided_slice %2 {offsets = [0, 0], sizes = [16, 367], strides = [1, 1]} : vector<16x384xf32> to vector<16x367xf32>
    %20 = tpu.concatenate %18, %19 in 1 : vector<16x17xf32>, vector<16x367xf32> -> vector<16x384xf32>
    %c2 = arith.constant 2 : index
    %c0_10 = arith.constant 0 : index
    %c0_11 = arith.constant 0 : index
    %21 = vector.load %arg2[%c2, %c0_10, %c0_11] : memref<45x16x16xbf16, #tpu.memory_space<vmem>>, vector<1x16x16xbf16>
    %22 = vector.shape_cast %21 : vector<1x16x16xbf16> to vector<16x16xbf16>
    %23 = arith.truncf %20 : vector<16x384xf32> to vector<16x384xbf16>
    %cst_12 = arith.constant dense<0.000000e+00> : vector<16x384xf32>
    %24 = tpu.matmul %22, %23, %cst_12 {dimension_numbers = #tpu.dot_dimension_numbers<[1], [0], [0], [1], [0, 0, 1, 1], [], []>} : vector<16x16xbf16>, vector<16x384xbf16>, vector<16x384xf32> -> vector<16x384xf32>
    %25 = arith.addf %17, %24 : vector<16x384xf32>
    %26 = vector.extract_strided_slice %2 {offsets = [0, 383], sizes = [16, 1], strides = [1, 1]} : vector<16x384xf32> to vector<16x1xf32>
    %27 = vector.extract_strided_slice %2 {offsets = [0, 0], sizes = [16, 383], strides = [1, 1]} : vector<16x384xf32> to vector<16x383xf32>
    %28 = tpu.concatenate %26, %27 in 1 : vector<16x1xf32>, vector<16x383xf32> -> vector<16x384xf32>
    %c3 = arith.constant 3 : index
    %c0_13 = arith.constant 0 : index
    %c0_14 = arith.constant 0 : index
    %29 = vector.load %arg2[%c3, %c0_13, %c0_14] : memref<45x16x16xbf16, #tpu.memory_space<vmem>>, vector<1x16x16xbf16>
    %30 = vector.shape_cast %29 : vector<1x16x16xbf16> to vector<16x16xbf16>
    %31 = arith.truncf %28 : vector<16x384xf32> to vector<16x384xbf16>
    %cst_15 = arith.constant dense<0.000000e+00> : vector<16x384xf32>
    %32 = tpu.matmul %30, %31, %cst_15 {dimension_numbers = #tpu.dot_dimension_numbers<[1], [0], [0], [1], [0, 0, 1, 1], [], []>} : vector<16x16xbf16>, vector<16x384xbf16>, vector<16x384xf32> -> vector<16x384xf32>
    %33 = arith.addf %25, %32 : vector<16x384xf32>
    %c4 = arith.constant 4 : index
    %c0_16 = arith.constant 0 : index
    %c0_17 = arith.constant 0 : index
    %34 = vector.load %arg2[%c4, %c0_16, %c0_17] : memref<45x16x16xbf16, #tpu.memory_space<vmem>>, vector<1x16x16xbf16>
    %35 = vector.shape_cast %34 : vector<1x16x16xbf16> to vector<16x16xbf16>
    %36 = arith.truncf %2 : vector<16x384xf32> to vector<16x384xbf16>
    %cst_18 = arith.constant dense<0.000000e+00> : vector<16x384xf32>
    %37 = tpu.matmul %35, %36, %cst_18 {dimension_numbers = #tpu.dot_dimension_numbers<[1], [0], [0], [1], [0, 0, 1, 1], [], []>} : vector<16x16xbf16>, vector<16x384xbf16>, vector<16x384xf32> -> vector<16x384xf32>
    %38 = arith.addf %33, %37 : vector<16x384xf32>
    %39 = vector.extract_strided_slice %2 {offsets = [0, 1], sizes = [16, 383], strides = [1, 1]} : vector<16x384xf32> to vector<16x383xf32>
    %40 = vector.extract_strided_slice %2 {offsets = [0, 0], sizes = [16, 1], strides = [1, 1]} : vector<16x384xf32> to vector<16x1xf32>
    %41 = tpu.concatenate %39, %40 in 1 : vector<16x383xf32>, vector<16x1xf32> -> vector<16x384xf32>
    %c5 = arith.constant 5 : index
    %c0_19 = arith.constant 0 : index
    %c0_20 = arith.constant 0 : index
    %42 = vector.load %arg2[%c5, %c0_19, %c0_20] : memref<45x16x16xbf16, #tpu.memory_space<vmem>>, vector<1x16x16xbf16>
    %43 = vector.shape_cast %42 : vector<1x16x16xbf16> to vector<16x16xbf16>
    %44 = arith.truncf %41 : vector<16x384xf32> to vector<16x384xbf16>
    %cst_21 = arith.constant dense<0.000000e+00> : vector<16x384xf32>
    %45 = tpu.matmul %43, %44, %cst_21 {dimension_numbers = #tpu.dot_dimension_numbers<[1], [0], [0], [1], [0, 0, 1, 1], [], []>} : vector<16x16xbf16>, vector<16x384xbf16>, vector<16x384xf32> -> vector<16x384xf32>
    %46 = arith.addf %38, %45 : vector<16x384xf32>
    %47 = vector.extract_strided_slice %2 {offsets = [0, 17], sizes = [16, 367], strides = [1, 1]} : vector<16x384xf32> to vector<16x367xf32>
    %48 = vector.extract_strided_slice %2 {offsets = [0, 0], sizes = [16, 17], strides = [1, 1]} : vector<16x384xf32> to vector<16x17xf32>
    %49 = tpu.concatenate %47, %48 in 1 : vector<16x367xf32>, vector<16x17xf32> -> vector<16x384xf32>
    %c6 = arith.constant 6 : index
    %c0_22 = arith.constant 0 : index
    %c0_23 = arith.constant 0 : index
    %50 = vector.load %arg2[%c6, %c0_22, %c0_23] : memref<45x16x16xbf16, #tpu.memory_space<vmem>>, vector<1x16x16xbf16>
    %51 = vector.shape_cast %50 : vector<1x16x16xbf16> to vector<16x16xbf16>
    %52 = arith.truncf %49 : vector<16x384xf32> to vector<16x384xbf16>
    %cst_24 = arith.constant dense<0.000000e+00> : vector<16x384xf32>
    %53 = tpu.matmul %51, %52, %cst_24 {dimension_numbers = #tpu.dot_dimension_numbers<[1], [0], [0], [1], [0, 0, 1, 1], [], []>} : vector<16x16xbf16>, vector<16x384xbf16>, vector<16x384xf32> -> vector<16x384xf32>
    %54 = arith.addf %46, %53 : vector<16x384xf32>
    %55 = vector.extract_strided_slice %2 {offsets = [0, 18], sizes = [16, 366], strides = [1, 1]} : vector<16x384xf32> to vector<16x366xf32>
    %56 = vector.extract_strided_slice %2 {offsets = [0, 0], sizes = [16, 18], strides = [1, 1]} : vector<16x384xf32> to vector<16x18xf32>
    %57 = tpu.concatenate %55, %56 in 1 : vector<16x366xf32>, vector<16x18xf32> -> vector<16x384xf32>
    %c7 = arith.constant 7 : index
    %c0_25 = arith.constant 0 : index
    %c0_26 = arith.constant 0 : index
    %58 = vector.load %arg2[%c7, %c0_25, %c0_26] : memref<45x16x16xbf16, #tpu.memory_space<vmem>>, vector<1x16x16xbf16>
    %59 = vector.shape_cast %58 : vector<1x16x16xbf16> to vector<16x16xbf16>
    %60 = arith.truncf %57 : vector<16x384xf32> to vector<16x384xbf16>
    %cst_27 = arith.constant dense<0.000000e+00> : vector<16x384xf32>
    %61 = tpu.matmul %59, %60, %cst_27 {dimension_numbers = #tpu.dot_dimension_numbers<[1], [0], [0], [1], [0, 0, 1, 1], [], []>} : vector<16x16xbf16>, vector<16x384xbf16>, vector<16x384xf32> -> vector<16x384xf32>
    %62 = arith.addf %54, %61 : vector<16x384xf32>
    %63 = vector.extract_strided_slice %2 {offsets = [0, 19], sizes = [16, 365], strides = [1, 1]} : vector<16x384xf32> to vector<16x365xf32>
    %64 = vector.extract_strided_slice %2 {offsets = [0, 0], sizes = [16, 19], strides = [1, 1]} : vector<16x384xf32> to vector<16x19xf32>
    %65 = tpu.concatenate %63, %64 in 1 : vector<16x365xf32>, vector<16x19xf32> -> vector<16x384xf32>
    %c8 = arith.constant 8 : index
    %c0_28 = arith.constant 0 : index
    %c0_29 = arith.constant 0 : index
    %66 = vector.load %arg2[%c8, %c0_28, %c0_29] : memref<45x16x16xbf16, #tpu.memory_space<vmem>>, vector<1x16x16xbf16>
    %67 = vector.shape_cast %66 : vector<1x16x16xbf16> to vector<16x16xbf16>
    %68 = arith.truncf %65 : vector<16x384xf32> to vector<16x384xbf16>
    %cst_30 = arith.constant dense<0.000000e+00> : vector<16x384xf32>
    %69 = tpu.matmul %67, %68, %cst_30 {dimension_numbers = #tpu.dot_dimension_numbers<[1], [0], [0], [1], [0, 0, 1, 1], [], []>} : vector<16x16xbf16>, vector<16x384xbf16>, vector<16x384xf32> -> vector<16x384xf32>
    %70 = arith.addf %62, %69 : vector<16x384xf32>
    %c0_31 = arith.constant 0 : index
    %c0_32 = arith.constant 0 : index
    %c0_33 = arith.constant 0 : index
    %71 = vector.load %arg3[%c0_31, %c0_32, %c0_33] : memref<5x16x1xf32, #tpu.memory_space<vmem>>, vector<1x16x1xf32>
    %72 = vector.shape_cast %71 : vector<1x16x1xf32> to vector<16x1xf32>
    %73 = vector.broadcast %72 : vector<16x1xf32> to vector<16x384xf32>
    %74 = arith.addf %70, %73 : vector<16x384xf32>
    %cst_34 = arith.constant 0.000000e+00 : f32
    %75 = vector.broadcast %cst_34 : f32 to vector<16x384xf32>
    %76 = arith.cmpf oge, %74, %75 : vector<16x384xf32>
    %cst_35 = arith.constant 0.00999999977 : f32
    %77 = vector.broadcast %cst_35 : f32 to vector<16x384xf32>
    %78 = arith.mulf %77, %74 : vector<16x384xf32>
    %79 = arith.select %76, %74, %78 : vector<16x384xi1>, vector<16x384xf32>
    %80 = vector.broadcast %0 : vector<1x384xf32> to vector<16x384xf32>
    %81 = arith.mulf %79, %80 : vector<16x384xf32>
    %82 = vector.extract_strided_slice %81 {offsets = [0, 365], sizes = [16, 19], strides = [1, 1]} : vector<16x384xf32> to vector<16x19xf32>
    %83 = vector.extract_strided_slice %81 {offsets = [0, 0], sizes = [16, 365], strides = [1, 1]} : vector<16x384xf32> to vector<16x365xf32>
    %84 = tpu.concatenate %82, %83 in 1 : vector<16x19xf32>, vector<16x365xf32> -> vector<16x384xf32>
    %c9 = arith.constant 9 : index
    %c0_36 = arith.constant 0 : index
    %c0_37 = arith.constant 0 : index
    %85 = vector.load %arg2[%c9, %c0_36, %c0_37] : memref<45x16x16xbf16, #tpu.memory_space<vmem>>, vector<1x16x16xbf16>
    %86 = vector.shape_cast %85 : vector<1x16x16xbf16> to vector<16x16xbf16>
    %87 = arith.truncf %84 : vector<16x384xf32> to vector<16x384xbf16>
    %cst_38 = arith.constant dense<0.000000e+00> : vector<16x384xf32>
    %88 = tpu.matmul %86, %87, %cst_38 {dimension_numbers = #tpu.dot_dimension_numbers<[1], [0], [0], [1], [0, 0, 1, 1], [], []>} : vector<16x16xbf16>, vector<16x384xbf16>, vector<16x384xf32> -> vector<16x384xf32>
    %89 = vector.extract_strided_slice %81 {offsets = [0, 366], sizes = [16, 18], strides = [1, 1]} : vector<16x384xf32> to vector<16x18xf32>
    %90 = vector.extract_strided_slice %81 {offsets = [0, 0], sizes = [16, 366], strides = [1, 1]} : vector<16x384xf32> to vector<16x366xf32>
    %91 = tpu.concatenate %89, %90 in 1 : vector<16x18xf32>, vector<16x366xf32> -> vector<16x384xf32>
    %c10 = arith.constant 10 : index
    %c0_39 = arith.constant 0 : index
    %c0_40 = arith.constant 0 : index
    %92 = vector.load %arg2[%c10, %c0_39, %c0_40] : memref<45x16x16xbf16, #tpu.memory_space<vmem>>, vector<1x16x16xbf16>
    %93 = vector.shape_cast %92 : vector<1x16x16xbf16> to vector<16x16xbf16>
    %94 = arith.truncf %91 : vector<16x384xf32> to vector<16x384xbf16>
    %cst_41 = arith.constant dense<0.000000e+00> : vector<16x384xf32>
    %95 = tpu.matmul %93, %94, %cst_41 {dimension_numbers = #tpu.dot_dimension_numbers<[1], [0], [0], [1], [0, 0, 1, 1], [], []>} : vector<16x16xbf16>, vector<16x384xbf16>, vector<16x384xf32> -> vector<16x384xf32>
    %96 = arith.addf %88, %95 : vector<16x384xf32>
    %97 = vector.extract_strided_slice %81 {offsets = [0, 367], sizes = [16, 17], strides = [1, 1]} : vector<16x384xf32> to vector<16x17xf32>
    %98 = vector.extract_strided_slice %81 {offsets = [0, 0], sizes = [16, 367], strides = [1, 1]} : vector<16x384xf32> to vector<16x367xf32>
    %99 = tpu.concatenate %97, %98 in 1 : vector<16x17xf32>, vector<16x367xf32> -> vector<16x384xf32>
    %c11 = arith.constant 11 : index
    %c0_42 = arith.constant 0 : index
    %c0_43 = arith.constant 0 : index
    %100 = vector.load %arg2[%c11, %c0_42, %c0_43] : memref<45x16x16xbf16, #tpu.memory_space<vmem>>, vector<1x16x16xbf16>
    %101 = vector.shape_cast %100 : vector<1x16x16xbf16> to vector<16x16xbf16>
    %102 = arith.truncf %99 : vector<16x384xf32> to vector<16x384xbf16>
    %cst_44 = arith.constant dense<0.000000e+00> : vector<16x384xf32>
    %103 = tpu.matmul %101, %102, %cst_44 {dimension_numbers = #tpu.dot_dimension_numbers<[1], [0], [0], [1], [0, 0, 1, 1], [], []>} : vector<16x16xbf16>, vector<16x384xbf16>, vector<16x384xf32> -> vector<16x384xf32>
    %104 = arith.addf %96, %103 : vector<16x384xf32>
    %105 = vector.extract_strided_slice %81 {offsets = [0, 383], sizes = [16, 1], strides = [1, 1]} : vector<16x384xf32> to vector<16x1xf32>
    %106 = vector.extract_strided_slice %81 {offsets = [0, 0], sizes = [16, 383], strides = [1, 1]} : vector<16x384xf32> to vector<16x383xf32>
    %107 = tpu.concatenate %105, %106 in 1 : vector<16x1xf32>, vector<16x383xf32> -> vector<16x384xf32>
    %c12 = arith.constant 12 : index
    %c0_45 = arith.constant 0 : index
    %c0_46 = arith.constant 0 : index
    %108 = vector.load %arg2[%c12, %c0_45, %c0_46] : memref<45x16x16xbf16, #tpu.memory_space<vmem>>, vector<1x16x16xbf16>
    %109 = vector.shape_cast %108 : vector<1x16x16xbf16> to vector<16x16xbf16>
    %110 = arith.truncf %107 : vector<16x384xf32> to vector<16x384xbf16>
    %cst_47 = arith.constant dense<0.000000e+00> : vector<16x384xf32>
    %111 = tpu.matmul %109, %110, %cst_47 {dimension_numbers = #tpu.dot_dimension_numbers<[1], [0], [0], [1], [0, 0, 1, 1], [], []>} : vector<16x16xbf16>, vector<16x384xbf16>, vector<16x384xf32> -> vector<16x384xf32>
    %112 = arith.addf %104, %111 : vector<16x384xf32>
    %c13 = arith.constant 13 : index
    %c0_48 = arith.constant 0 : index
    %c0_49 = arith.constant 0 : index
    %113 = vector.load %arg2[%c13, %c0_48, %c0_49] : memref<45x16x16xbf16, #tpu.memory_space<vmem>>, vector<1x16x16xbf16>
    %114 = vector.shape_cast %113 : vector<1x16x16xbf16> to vector<16x16xbf16>
    %115 = arith.truncf %81 : vector<16x384xf32> to vector<16x384xbf16>
    %cst_50 = arith.constant dense<0.000000e+00> : vector<16x384xf32>
    %116 = tpu.matmul %114, %115, %cst_50 {dimension_numbers = #tpu.dot_dimension_numbers<[1], [0], [0], [1], [0, 0, 1, 1], [], []>} : vector<16x16xbf16>, vector<16x384xbf16>, vector<16x384xf32> -> vector<16x384xf32>
    %117 = arith.addf %112, %116 : vector<16x384xf32>
    %118 = vector.extract_strided_slice %81 {offsets = [0, 1], sizes = [16, 383], strides = [1, 1]} : vector<16x384xf32> to vector<16x383xf32>
    %119 = vector.extract_strided_slice %81 {offsets = [0, 0], sizes = [16, 1], strides = [1, 1]} : vector<16x384xf32> to vector<16x1xf32>
    %120 = tpu.concatenate %118, %119 in 1 : vector<16x383xf32>, vector<16x1xf32> -> vector<16x384xf32>
    %c14 = arith.constant 14 : index
    %c0_51 = arith.constant 0 : index
    %c0_52 = arith.constant 0 : index
    %121 = vector.load %arg2[%c14, %c0_51, %c0_52] : memref<45x16x16xbf16, #tpu.memory_space<vmem>>, vector<1x16x16xbf16>
    %122 = vector.shape_cast %121 : vector<1x16x16xbf16> to vector<16x16xbf16>
    %123 = arith.truncf %120 : vector<16x384xf32> to vector<16x384xbf16>
    %cst_53 = arith.constant dense<0.000000e+00> : vector<16x384xf32>
    %124 = tpu.matmul %122, %123, %cst_53 {dimension_numbers = #tpu.dot_dimension_numbers<[1], [0], [0], [1], [0, 0, 1, 1], [], []>} : vector<16x16xbf16>, vector<16x384xbf16>, vector<16x384xf32> -> vector<16x384xf32>
    %125 = arith.addf %117, %124 : vector<16x384xf32>
    %126 = vector.extract_strided_slice %81 {offsets = [0, 17], sizes = [16, 367], strides = [1, 1]} : vector<16x384xf32> to vector<16x367xf32>
    %127 = vector.extract_strided_slice %81 {offsets = [0, 0], sizes = [16, 17], strides = [1, 1]} : vector<16x384xf32> to vector<16x17xf32>
    %128 = tpu.concatenate %126, %127 in 1 : vector<16x367xf32>, vector<16x17xf32> -> vector<16x384xf32>
    %c15 = arith.constant 15 : index
    %c0_54 = arith.constant 0 : index
    %c0_55 = arith.constant 0 : index
    %129 = vector.load %arg2[%c15, %c0_54, %c0_55] : memref<45x16x16xbf16, #tpu.memory_space<vmem>>, vector<1x16x16xbf16>
    %130 = vector.shape_cast %129 : vector<1x16x16xbf16> to vector<16x16xbf16>
    %131 = arith.truncf %128 : vector<16x384xf32> to vector<16x384xbf16>
    %cst_56 = arith.constant dense<0.000000e+00> : vector<16x384xf32>
    %132 = tpu.matmul %130, %131, %cst_56 {dimension_numbers = #tpu.dot_dimension_numbers<[1], [0], [0], [1], [0, 0, 1, 1], [], []>} : vector<16x16xbf16>, vector<16x384xbf16>, vector<16x384xf32> -> vector<16x384xf32>
    %133 = arith.addf %125, %132 : vector<16x384xf32>
    %134 = vector.extract_strided_slice %81 {offsets = [0, 18], sizes = [16, 366], strides = [1, 1]} : vector<16x384xf32> to vector<16x366xf32>
    %135 = vector.extract_strided_slice %81 {offsets = [0, 0], sizes = [16, 18], strides = [1, 1]} : vector<16x384xf32> to vector<16x18xf32>
    %136 = tpu.concatenate %134, %135 in 1 : vector<16x366xf32>, vector<16x18xf32> -> vector<16x384xf32>
    %c16 = arith.constant 16 : index
    %c0_57 = arith.constant 0 : index
    %c0_58 = arith.constant 0 : index
    %137 = vector.load %arg2[%c16, %c0_57, %c0_58] : memref<45x16x16xbf16, #tpu.memory_space<vmem>>, vector<1x16x16xbf16>
    %138 = vector.shape_cast %137 : vector<1x16x16xbf16> to vector<16x16xbf16>
    %139 = arith.truncf %136 : vector<16x384xf32> to vector<16x384xbf16>
    %cst_59 = arith.constant dense<0.000000e+00> : vector<16x384xf32>
    %140 = tpu.matmul %138, %139, %cst_59 {dimension_numbers = #tpu.dot_dimension_numbers<[1], [0], [0], [1], [0, 0, 1, 1], [], []>} : vector<16x16xbf16>, vector<16x384xbf16>, vector<16x384xf32> -> vector<16x384xf32>
    %141 = arith.addf %133, %140 : vector<16x384xf32>
    %142 = vector.extract_strided_slice %81 {offsets = [0, 19], sizes = [16, 365], strides = [1, 1]} : vector<16x384xf32> to vector<16x365xf32>
    %143 = vector.extract_strided_slice %81 {offsets = [0, 0], sizes = [16, 19], strides = [1, 1]} : vector<16x384xf32> to vector<16x19xf32>
    %144 = tpu.concatenate %142, %143 in 1 : vector<16x365xf32>, vector<16x19xf32> -> vector<16x384xf32>
    %c17 = arith.constant 17 : index
    %c0_60 = arith.constant 0 : index
    %c0_61 = arith.constant 0 : index
    %145 = vector.load %arg2[%c17, %c0_60, %c0_61] : memref<45x16x16xbf16, #tpu.memory_space<vmem>>, vector<1x16x16xbf16>
    %146 = vector.shape_cast %145 : vector<1x16x16xbf16> to vector<16x16xbf16>
    %147 = arith.truncf %144 : vector<16x384xf32> to vector<16x384xbf16>
    %cst_62 = arith.constant dense<0.000000e+00> : vector<16x384xf32>
    %148 = tpu.matmul %146, %147, %cst_62 {dimension_numbers = #tpu.dot_dimension_numbers<[1], [0], [0], [1], [0, 0, 1, 1], [], []>} : vector<16x16xbf16>, vector<16x384xbf16>, vector<16x384xf32> -> vector<16x384xf32>
    %149 = arith.addf %141, %148 : vector<16x384xf32>
    %c1_63 = arith.constant 1 : index
    %c0_64 = arith.constant 0 : index
    %c0_65 = arith.constant 0 : index
    %150 = vector.load %arg3[%c1_63, %c0_64, %c0_65] : memref<5x16x1xf32, #tpu.memory_space<vmem>>, vector<1x16x1xf32>
    %151 = vector.shape_cast %150 : vector<1x16x1xf32> to vector<16x1xf32>
    %152 = vector.broadcast %151 : vector<16x1xf32> to vector<16x384xf32>
    %153 = arith.addf %149, %152 : vector<16x384xf32>
    %cst_66 = arith.constant 0.000000e+00 : f32
    %154 = vector.broadcast %cst_66 : f32 to vector<16x384xf32>
    %155 = arith.cmpf oge, %153, %154 : vector<16x384xf32>
    %cst_67 = arith.constant 0.00999999977 : f32
    %156 = vector.broadcast %cst_67 : f32 to vector<16x384xf32>
    %157 = arith.mulf %156, %153 : vector<16x384xf32>
    %158 = arith.select %155, %153, %157 : vector<16x384xi1>, vector<16x384xf32>
    %159 = vector.broadcast %0 : vector<1x384xf32> to vector<16x384xf32>
    %160 = arith.mulf %158, %159 : vector<16x384xf32>
    %161 = vector.extract_strided_slice %160 {offsets = [0, 365], sizes = [16, 19], strides = [1, 1]} : vector<16x384xf32> to vector<16x19xf32>
    %162 = vector.extract_strided_slice %160 {offsets = [0, 0], sizes = [16, 365], strides = [1, 1]} : vector<16x384xf32> to vector<16x365xf32>
    %163 = tpu.concatenate %161, %162 in 1 : vector<16x19xf32>, vector<16x365xf32> -> vector<16x384xf32>
    %c18 = arith.constant 18 : index
    %c0_68 = arith.constant 0 : index
    %c0_69 = arith.constant 0 : index
    %164 = vector.load %arg2[%c18, %c0_68, %c0_69] : memref<45x16x16xbf16, #tpu.memory_space<vmem>>, vector<1x16x16xbf16>
    %165 = vector.shape_cast %164 : vector<1x16x16xbf16> to vector<16x16xbf16>
    %166 = arith.truncf %163 : vector<16x384xf32> to vector<16x384xbf16>
    %cst_70 = arith.constant dense<0.000000e+00> : vector<16x384xf32>
    %167 = tpu.matmul %165, %166, %cst_70 {dimension_numbers = #tpu.dot_dimension_numbers<[1], [0], [0], [1], [0, 0, 1, 1], [], []>} : vector<16x16xbf16>, vector<16x384xbf16>, vector<16x384xf32> -> vector<16x384xf32>
    %168 = vector.extract_strided_slice %160 {offsets = [0, 366], sizes = [16, 18], strides = [1, 1]} : vector<16x384xf32> to vector<16x18xf32>
    %169 = vector.extract_strided_slice %160 {offsets = [0, 0], sizes = [16, 366], strides = [1, 1]} : vector<16x384xf32> to vector<16x366xf32>
    %170 = tpu.concatenate %168, %169 in 1 : vector<16x18xf32>, vector<16x366xf32> -> vector<16x384xf32>
    %c19 = arith.constant 19 : index
    %c0_71 = arith.constant 0 : index
    %c0_72 = arith.constant 0 : index
    %171 = vector.load %arg2[%c19, %c0_71, %c0_72] : memref<45x16x16xbf16, #tpu.memory_space<vmem>>, vector<1x16x16xbf16>
    %172 = vector.shape_cast %171 : vector<1x16x16xbf16> to vector<16x16xbf16>
    %173 = arith.truncf %170 : vector<16x384xf32> to vector<16x384xbf16>
    %cst_73 = arith.constant dense<0.000000e+00> : vector<16x384xf32>
    %174 = tpu.matmul %172, %173, %cst_73 {dimension_numbers = #tpu.dot_dimension_numbers<[1], [0], [0], [1], [0, 0, 1, 1], [], []>} : vector<16x16xbf16>, vector<16x384xbf16>, vector<16x384xf32> -> vector<16x384xf32>
    %175 = arith.addf %167, %174 : vector<16x384xf32>
    %176 = vector.extract_strided_slice %160 {offsets = [0, 367], sizes = [16, 17], strides = [1, 1]} : vector<16x384xf32> to vector<16x17xf32>
    %177 = vector.extract_strided_slice %160 {offsets = [0, 0], sizes = [16, 367], strides = [1, 1]} : vector<16x384xf32> to vector<16x367xf32>
    %178 = tpu.concatenate %176, %177 in 1 : vector<16x17xf32>, vector<16x367xf32> -> vector<16x384xf32>
    %c20 = arith.constant 20 : index
    %c0_74 = arith.constant 0 : index
    %c0_75 = arith.constant 0 : index
    %179 = vector.load %arg2[%c20, %c0_74, %c0_75] : memref<45x16x16xbf16, #tpu.memory_space<vmem>>, vector<1x16x16xbf16>
    %180 = vector.shape_cast %179 : vector<1x16x16xbf16> to vector<16x16xbf16>
    %181 = arith.truncf %178 : vector<16x384xf32> to vector<16x384xbf16>
    %cst_76 = arith.constant dense<0.000000e+00> : vector<16x384xf32>
    %182 = tpu.matmul %180, %181, %cst_76 {dimension_numbers = #tpu.dot_dimension_numbers<[1], [0], [0], [1], [0, 0, 1, 1], [], []>} : vector<16x16xbf16>, vector<16x384xbf16>, vector<16x384xf32> -> vector<16x384xf32>
    %183 = arith.addf %175, %182 : vector<16x384xf32>
    %184 = vector.extract_strided_slice %160 {offsets = [0, 383], sizes = [16, 1], strides = [1, 1]} : vector<16x384xf32> to vector<16x1xf32>
    %185 = vector.extract_strided_slice %160 {offsets = [0, 0], sizes = [16, 383], strides = [1, 1]} : vector<16x384xf32> to vector<16x383xf32>
    %186 = tpu.concatenate %184, %185 in 1 : vector<16x1xf32>, vector<16x383xf32> -> vector<16x384xf32>
    %c21 = arith.constant 21 : index
    %c0_77 = arith.constant 0 : index
    %c0_78 = arith.constant 0 : index
    %187 = vector.load %arg2[%c21, %c0_77, %c0_78] : memref<45x16x16xbf16, #tpu.memory_space<vmem>>, vector<1x16x16xbf16>
    %188 = vector.shape_cast %187 : vector<1x16x16xbf16> to vector<16x16xbf16>
    %189 = arith.truncf %186 : vector<16x384xf32> to vector<16x384xbf16>
    %cst_79 = arith.constant dense<0.000000e+00> : vector<16x384xf32>
    %190 = tpu.matmul %188, %189, %cst_79 {dimension_numbers = #tpu.dot_dimension_numbers<[1], [0], [0], [1], [0, 0, 1, 1], [], []>} : vector<16x16xbf16>, vector<16x384xbf16>, vector<16x384xf32> -> vector<16x384xf32>
    %191 = arith.addf %183, %190 : vector<16x384xf32>
    %c22 = arith.constant 22 : index
    %c0_80 = arith.constant 0 : index
    %c0_81 = arith.constant 0 : index
    %192 = vector.load %arg2[%c22, %c0_80, %c0_81] : memref<45x16x16xbf16, #tpu.memory_space<vmem>>, vector<1x16x16xbf16>
    %193 = vector.shape_cast %192 : vector<1x16x16xbf16> to vector<16x16xbf16>
    %194 = arith.truncf %160 : vector<16x384xf32> to vector<16x384xbf16>
    %cst_82 = arith.constant dense<0.000000e+00> : vector<16x384xf32>
    %195 = tpu.matmul %193, %194, %cst_82 {dimension_numbers = #tpu.dot_dimension_numbers<[1], [0], [0], [1], [0, 0, 1, 1], [], []>} : vector<16x16xbf16>, vector<16x384xbf16>, vector<16x384xf32> -> vector<16x384xf32>
    %196 = arith.addf %191, %195 : vector<16x384xf32>
    %197 = vector.extract_strided_slice %160 {offsets = [0, 1], sizes = [16, 383], strides = [1, 1]} : vector<16x384xf32> to vector<16x383xf32>
    %198 = vector.extract_strided_slice %160 {offsets = [0, 0], sizes = [16, 1], strides = [1, 1]} : vector<16x384xf32> to vector<16x1xf32>
    %199 = tpu.concatenate %197, %198 in 1 : vector<16x383xf32>, vector<16x1xf32> -> vector<16x384xf32>
    %c23 = arith.constant 23 : index
    %c0_83 = arith.constant 0 : index
    %c0_84 = arith.constant 0 : index
    %200 = vector.load %arg2[%c23, %c0_83, %c0_84] : memref<45x16x16xbf16, #tpu.memory_space<vmem>>, vector<1x16x16xbf16>
    %201 = vector.shape_cast %200 : vector<1x16x16xbf16> to vector<16x16xbf16>
    %202 = arith.truncf %199 : vector<16x384xf32> to vector<16x384xbf16>
    %cst_85 = arith.constant dense<0.000000e+00> : vector<16x384xf32>
    %203 = tpu.matmul %201, %202, %cst_85 {dimension_numbers = #tpu.dot_dimension_numbers<[1], [0], [0], [1], [0, 0, 1, 1], [], []>} : vector<16x16xbf16>, vector<16x384xbf16>, vector<16x384xf32> -> vector<16x384xf32>
    %204 = arith.addf %196, %203 : vector<16x384xf32>
    %205 = vector.extract_strided_slice %160 {offsets = [0, 17], sizes = [16, 367], strides = [1, 1]} : vector<16x384xf32> to vector<16x367xf32>
    %206 = vector.extract_strided_slice %160 {offsets = [0, 0], sizes = [16, 17], strides = [1, 1]} : vector<16x384xf32> to vector<16x17xf32>
    %207 = tpu.concatenate %205, %206 in 1 : vector<16x367xf32>, vector<16x17xf32> -> vector<16x384xf32>
    %c24 = arith.constant 24 : index
    %c0_86 = arith.constant 0 : index
    %c0_87 = arith.constant 0 : index
    %208 = vector.load %arg2[%c24, %c0_86, %c0_87] : memref<45x16x16xbf16, #tpu.memory_space<vmem>>, vector<1x16x16xbf16>
    %209 = vector.shape_cast %208 : vector<1x16x16xbf16> to vector<16x16xbf16>
    %210 = arith.truncf %207 : vector<16x384xf32> to vector<16x384xbf16>
    %cst_88 = arith.constant dense<0.000000e+00> : vector<16x384xf32>
    %211 = tpu.matmul %209, %210, %cst_88 {dimension_numbers = #tpu.dot_dimension_numbers<[1], [0], [0], [1], [0, 0, 1, 1], [], []>} : vector<16x16xbf16>, vector<16x384xbf16>, vector<16x384xf32> -> vector<16x384xf32>
    %212 = arith.addf %204, %211 : vector<16x384xf32>
    %213 = vector.extract_strided_slice %160 {offsets = [0, 18], sizes = [16, 366], strides = [1, 1]} : vector<16x384xf32> to vector<16x366xf32>
    %214 = vector.extract_strided_slice %160 {offsets = [0, 0], sizes = [16, 18], strides = [1, 1]} : vector<16x384xf32> to vector<16x18xf32>
    %215 = tpu.concatenate %213, %214 in 1 : vector<16x366xf32>, vector<16x18xf32> -> vector<16x384xf32>
    %c25 = arith.constant 25 : index
    %c0_89 = arith.constant 0 : index
    %c0_90 = arith.constant 0 : index
    %216 = vector.load %arg2[%c25, %c0_89, %c0_90] : memref<45x16x16xbf16, #tpu.memory_space<vmem>>, vector<1x16x16xbf16>
    %217 = vector.shape_cast %216 : vector<1x16x16xbf16> to vector<16x16xbf16>
    %218 = arith.truncf %215 : vector<16x384xf32> to vector<16x384xbf16>
    %cst_91 = arith.constant dense<0.000000e+00> : vector<16x384xf32>
    %219 = tpu.matmul %217, %218, %cst_91 {dimension_numbers = #tpu.dot_dimension_numbers<[1], [0], [0], [1], [0, 0, 1, 1], [], []>} : vector<16x16xbf16>, vector<16x384xbf16>, vector<16x384xf32> -> vector<16x384xf32>
    %220 = arith.addf %212, %219 : vector<16x384xf32>
    %221 = vector.extract_strided_slice %160 {offsets = [0, 19], sizes = [16, 365], strides = [1, 1]} : vector<16x384xf32> to vector<16x365xf32>
    %222 = vector.extract_strided_slice %160 {offsets = [0, 0], sizes = [16, 19], strides = [1, 1]} : vector<16x384xf32> to vector<16x19xf32>
    %223 = tpu.concatenate %221, %222 in 1 : vector<16x365xf32>, vector<16x19xf32> -> vector<16x384xf32>
    %c26 = arith.constant 26 : index
    %c0_92 = arith.constant 0 : index
    %c0_93 = arith.constant 0 : index
    %224 = vector.load %arg2[%c26, %c0_92, %c0_93] : memref<45x16x16xbf16, #tpu.memory_space<vmem>>, vector<1x16x16xbf16>
    %225 = vector.shape_cast %224 : vector<1x16x16xbf16> to vector<16x16xbf16>
    %226 = arith.truncf %223 : vector<16x384xf32> to vector<16x384xbf16>
    %cst_94 = arith.constant dense<0.000000e+00> : vector<16x384xf32>
    %227 = tpu.matmul %225, %226, %cst_94 {dimension_numbers = #tpu.dot_dimension_numbers<[1], [0], [0], [1], [0, 0, 1, 1], [], []>} : vector<16x16xbf16>, vector<16x384xbf16>, vector<16x384xf32> -> vector<16x384xf32>
    %228 = arith.addf %220, %227 : vector<16x384xf32>
    %c2_95 = arith.constant 2 : index
    %c0_96 = arith.constant 0 : index
    %c0_97 = arith.constant 0 : index
    %229 = vector.load %arg3[%c2_95, %c0_96, %c0_97] : memref<5x16x1xf32, #tpu.memory_space<vmem>>, vector<1x16x1xf32>
    %230 = vector.shape_cast %229 : vector<1x16x1xf32> to vector<16x1xf32>
    %231 = vector.broadcast %230 : vector<16x1xf32> to vector<16x384xf32>
    %232 = arith.addf %228, %231 : vector<16x384xf32>
    %cst_98 = arith.constant 0.000000e+00 : f32
    %233 = vector.broadcast %cst_98 : f32 to vector<16x384xf32>
    %234 = arith.cmpf oge, %232, %233 : vector<16x384xf32>
    %cst_99 = arith.constant 0.00999999977 : f32
    %235 = vector.broadcast %cst_99 : f32 to vector<16x384xf32>
    %236 = arith.mulf %235, %232 : vector<16x384xf32>
    %237 = arith.select %234, %232, %236 : vector<16x384xi1>, vector<16x384xf32>
    %238 = vector.broadcast %0 : vector<1x384xf32> to vector<16x384xf32>
    %239 = arith.mulf %237, %238 : vector<16x384xf32>
    %240 = vector.extract_strided_slice %239 {offsets = [0, 365], sizes = [16, 19], strides = [1, 1]} : vector<16x384xf32> to vector<16x19xf32>
    %241 = vector.extract_strided_slice %239 {offsets = [0, 0], sizes = [16, 365], strides = [1, 1]} : vector<16x384xf32> to vector<16x365xf32>
    %242 = tpu.concatenate %240, %241 in 1 : vector<16x19xf32>, vector<16x365xf32> -> vector<16x384xf32>
    %c27 = arith.constant 27 : index
    %c0_100 = arith.constant 0 : index
    %c0_101 = arith.constant 0 : index
    %243 = vector.load %arg2[%c27, %c0_100, %c0_101] : memref<45x16x16xbf16, #tpu.memory_space<vmem>>, vector<1x16x16xbf16>
    %244 = vector.shape_cast %243 : vector<1x16x16xbf16> to vector<16x16xbf16>
    %245 = arith.truncf %242 : vector<16x384xf32> to vector<16x384xbf16>
    %cst_102 = arith.constant dense<0.000000e+00> : vector<16x384xf32>
    %246 = tpu.matmul %244, %245, %cst_102 {dimension_numbers = #tpu.dot_dimension_numbers<[1], [0], [0], [1], [0, 0, 1, 1], [], []>} : vector<16x16xbf16>, vector<16x384xbf16>, vector<16x384xf32> -> vector<16x384xf32>
    %247 = vector.extract_strided_slice %239 {offsets = [0, 366], sizes = [16, 18], strides = [1, 1]} : vector<16x384xf32> to vector<16x18xf32>
    %248 = vector.extract_strided_slice %239 {offsets = [0, 0], sizes = [16, 366], strides = [1, 1]} : vector<16x384xf32> to vector<16x366xf32>
    %249 = tpu.concatenate %247, %248 in 1 : vector<16x18xf32>, vector<16x366xf32> -> vector<16x384xf32>
    %c28 = arith.constant 28 : index
    %c0_103 = arith.constant 0 : index
    %c0_104 = arith.constant 0 : index
    %250 = vector.load %arg2[%c28, %c0_103, %c0_104] : memref<45x16x16xbf16, #tpu.memory_space<vmem>>, vector<1x16x16xbf16>
    %251 = vector.shape_cast %250 : vector<1x16x16xbf16> to vector<16x16xbf16>
    %252 = arith.truncf %249 : vector<16x384xf32> to vector<16x384xbf16>
    %cst_105 = arith.constant dense<0.000000e+00> : vector<16x384xf32>
    %253 = tpu.matmul %251, %252, %cst_105 {dimension_numbers = #tpu.dot_dimension_numbers<[1], [0], [0], [1], [0, 0, 1, 1], [], []>} : vector<16x16xbf16>, vector<16x384xbf16>, vector<16x384xf32> -> vector<16x384xf32>
    %254 = arith.addf %246, %253 : vector<16x384xf32>
    %255 = vector.extract_strided_slice %239 {offsets = [0, 367], sizes = [16, 17], strides = [1, 1]} : vector<16x384xf32> to vector<16x17xf32>
    %256 = vector.extract_strided_slice %239 {offsets = [0, 0], sizes = [16, 367], strides = [1, 1]} : vector<16x384xf32> to vector<16x367xf32>
    %257 = tpu.concatenate %255, %256 in 1 : vector<16x17xf32>, vector<16x367xf32> -> vector<16x384xf32>
    %c29 = arith.constant 29 : index
    %c0_106 = arith.constant 0 : index
    %c0_107 = arith.constant 0 : index
    %258 = vector.load %arg2[%c29, %c0_106, %c0_107] : memref<45x16x16xbf16, #tpu.memory_space<vmem>>, vector<1x16x16xbf16>
    %259 = vector.shape_cast %258 : vector<1x16x16xbf16> to vector<16x16xbf16>
    %260 = arith.truncf %257 : vector<16x384xf32> to vector<16x384xbf16>
    %cst_108 = arith.constant dense<0.000000e+00> : vector<16x384xf32>
    %261 = tpu.matmul %259, %260, %cst_108 {dimension_numbers = #tpu.dot_dimension_numbers<[1], [0], [0], [1], [0, 0, 1, 1], [], []>} : vector<16x16xbf16>, vector<16x384xbf16>, vector<16x384xf32> -> vector<16x384xf32>
    %262 = arith.addf %254, %261 : vector<16x384xf32>
    %263 = vector.extract_strided_slice %239 {offsets = [0, 383], sizes = [16, 1], strides = [1, 1]} : vector<16x384xf32> to vector<16x1xf32>
    %264 = vector.extract_strided_slice %239 {offsets = [0, 0], sizes = [16, 383], strides = [1, 1]} : vector<16x384xf32> to vector<16x383xf32>
    %265 = tpu.concatenate %263, %264 in 1 : vector<16x1xf32>, vector<16x383xf32> -> vector<16x384xf32>
    %c30 = arith.constant 30 : index
    %c0_109 = arith.constant 0 : index
    %c0_110 = arith.constant 0 : index
    %266 = vector.load %arg2[%c30, %c0_109, %c0_110] : memref<45x16x16xbf16, #tpu.memory_space<vmem>>, vector<1x16x16xbf16>
    %267 = vector.shape_cast %266 : vector<1x16x16xbf16> to vector<16x16xbf16>
    %268 = arith.truncf %265 : vector<16x384xf32> to vector<16x384xbf16>
    %cst_111 = arith.constant dense<0.000000e+00> : vector<16x384xf32>
    %269 = tpu.matmul %267, %268, %cst_111 {dimension_numbers = #tpu.dot_dimension_numbers<[1], [0], [0], [1], [0, 0, 1, 1], [], []>} : vector<16x16xbf16>, vector<16x384xbf16>, vector<16x384xf32> -> vector<16x384xf32>
    %270 = arith.addf %262, %269 : vector<16x384xf32>
    %c31 = arith.constant 31 : index
    %c0_112 = arith.constant 0 : index
    %c0_113 = arith.constant 0 : index
    %271 = vector.load %arg2[%c31, %c0_112, %c0_113] : memref<45x16x16xbf16, #tpu.memory_space<vmem>>, vector<1x16x16xbf16>
    %272 = vector.shape_cast %271 : vector<1x16x16xbf16> to vector<16x16xbf16>
    %273 = arith.truncf %239 : vector<16x384xf32> to vector<16x384xbf16>
    %cst_114 = arith.constant dense<0.000000e+00> : vector<16x384xf32>
    %274 = tpu.matmul %272, %273, %cst_114 {dimension_numbers = #tpu.dot_dimension_numbers<[1], [0], [0], [1], [0, 0, 1, 1], [], []>} : vector<16x16xbf16>, vector<16x384xbf16>, vector<16x384xf32> -> vector<16x384xf32>
    %275 = arith.addf %270, %274 : vector<16x384xf32>
    %276 = vector.extract_strided_slice %239 {offsets = [0, 1], sizes = [16, 383], strides = [1, 1]} : vector<16x384xf32> to vector<16x383xf32>
    %277 = vector.extract_strided_slice %239 {offsets = [0, 0], sizes = [16, 1], strides = [1, 1]} : vector<16x384xf32> to vector<16x1xf32>
    %278 = tpu.concatenate %276, %277 in 1 : vector<16x383xf32>, vector<16x1xf32> -> vector<16x384xf32>
    %c32 = arith.constant 32 : index
    %c0_115 = arith.constant 0 : index
    %c0_116 = arith.constant 0 : index
    %279 = vector.load %arg2[%c32, %c0_115, %c0_116] : memref<45x16x16xbf16, #tpu.memory_space<vmem>>, vector<1x16x16xbf16>
    %280 = vector.shape_cast %279 : vector<1x16x16xbf16> to vector<16x16xbf16>
    %281 = arith.truncf %278 : vector<16x384xf32> to vector<16x384xbf16>
    %cst_117 = arith.constant dense<0.000000e+00> : vector<16x384xf32>
    %282 = tpu.matmul %280, %281, %cst_117 {dimension_numbers = #tpu.dot_dimension_numbers<[1], [0], [0], [1], [0, 0, 1, 1], [], []>} : vector<16x16xbf16>, vector<16x384xbf16>, vector<16x384xf32> -> vector<16x384xf32>
    %283 = arith.addf %275, %282 : vector<16x384xf32>
    %284 = vector.extract_strided_slice %239 {offsets = [0, 17], sizes = [16, 367], strides = [1, 1]} : vector<16x384xf32> to vector<16x367xf32>
    %285 = vector.extract_strided_slice %239 {offsets = [0, 0], sizes = [16, 17], strides = [1, 1]} : vector<16x384xf32> to vector<16x17xf32>
    %286 = tpu.concatenate %284, %285 in 1 : vector<16x367xf32>, vector<16x17xf32> -> vector<16x384xf32>
    %c33 = arith.constant 33 : index
    %c0_118 = arith.constant 0 : index
    %c0_119 = arith.constant 0 : index
    %287 = vector.load %arg2[%c33, %c0_118, %c0_119] : memref<45x16x16xbf16, #tpu.memory_space<vmem>>, vector<1x16x16xbf16>
    %288 = vector.shape_cast %287 : vector<1x16x16xbf16> to vector<16x16xbf16>
    %289 = arith.truncf %286 : vector<16x384xf32> to vector<16x384xbf16>
    %cst_120 = arith.constant dense<0.000000e+00> : vector<16x384xf32>
    %290 = tpu.matmul %288, %289, %cst_120 {dimension_numbers = #tpu.dot_dimension_numbers<[1], [0], [0], [1], [0, 0, 1, 1], [], []>} : vector<16x16xbf16>, vector<16x384xbf16>, vector<16x384xf32> -> vector<16x384xf32>
    %291 = arith.addf %283, %290 : vector<16x384xf32>
    %292 = vector.extract_strided_slice %239 {offsets = [0, 18], sizes = [16, 366], strides = [1, 1]} : vector<16x384xf32> to vector<16x366xf32>
    %293 = vector.extract_strided_slice %239 {offsets = [0, 0], sizes = [16, 18], strides = [1, 1]} : vector<16x384xf32> to vector<16x18xf32>
    %294 = tpu.concatenate %292, %293 in 1 : vector<16x366xf32>, vector<16x18xf32> -> vector<16x384xf32>
    %c34 = arith.constant 34 : index
    %c0_121 = arith.constant 0 : index
    %c0_122 = arith.constant 0 : index
    %295 = vector.load %arg2[%c34, %c0_121, %c0_122] : memref<45x16x16xbf16, #tpu.memory_space<vmem>>, vector<1x16x16xbf16>
    %296 = vector.shape_cast %295 : vector<1x16x16xbf16> to vector<16x16xbf16>
    %297 = arith.truncf %294 : vector<16x384xf32> to vector<16x384xbf16>
    %cst_123 = arith.constant dense<0.000000e+00> : vector<16x384xf32>
    %298 = tpu.matmul %296, %297, %cst_123 {dimension_numbers = #tpu.dot_dimension_numbers<[1], [0], [0], [1], [0, 0, 1, 1], [], []>} : vector<16x16xbf16>, vector<16x384xbf16>, vector<16x384xf32> -> vector<16x384xf32>
    %299 = arith.addf %291, %298 : vector<16x384xf32>
    %300 = vector.extract_strided_slice %239 {offsets = [0, 19], sizes = [16, 365], strides = [1, 1]} : vector<16x384xf32> to vector<16x365xf32>
    %301 = vector.extract_strided_slice %239 {offsets = [0, 0], sizes = [16, 19], strides = [1, 1]} : vector<16x384xf32> to vector<16x19xf32>
    %302 = tpu.concatenate %300, %301 in 1 : vector<16x365xf32>, vector<16x19xf32> -> vector<16x384xf32>
    %c35 = arith.constant 35 : index
    %c0_124 = arith.constant 0 : index
    %c0_125 = arith.constant 0 : index
    %303 = vector.load %arg2[%c35, %c0_124, %c0_125] : memref<45x16x16xbf16, #tpu.memory_space<vmem>>, vector<1x16x16xbf16>
    %304 = vector.shape_cast %303 : vector<1x16x16xbf16> to vector<16x16xbf16>
    %305 = arith.truncf %302 : vector<16x384xf32> to vector<16x384xbf16>
    %cst_126 = arith.constant dense<0.000000e+00> : vector<16x384xf32>
    %306 = tpu.matmul %304, %305, %cst_126 {dimension_numbers = #tpu.dot_dimension_numbers<[1], [0], [0], [1], [0, 0, 1, 1], [], []>} : vector<16x16xbf16>, vector<16x384xbf16>, vector<16x384xf32> -> vector<16x384xf32>
    %307 = arith.addf %299, %306 : vector<16x384xf32>
    %c3_127 = arith.constant 3 : index
    %c0_128 = arith.constant 0 : index
    %c0_129 = arith.constant 0 : index
    %308 = vector.load %arg3[%c3_127, %c0_128, %c0_129] : memref<5x16x1xf32, #tpu.memory_space<vmem>>, vector<1x16x1xf32>
    %309 = vector.shape_cast %308 : vector<1x16x1xf32> to vector<16x1xf32>
    %310 = vector.broadcast %309 : vector<16x1xf32> to vector<16x384xf32>
    %311 = arith.addf %307, %310 : vector<16x384xf32>
    %cst_130 = arith.constant 0.000000e+00 : f32
    %312 = vector.broadcast %cst_130 : f32 to vector<16x384xf32>
    %313 = arith.cmpf oge, %311, %312 : vector<16x384xf32>
    %cst_131 = arith.constant 0.00999999977 : f32
    %314 = vector.broadcast %cst_131 : f32 to vector<16x384xf32>
    %315 = arith.mulf %314, %311 : vector<16x384xf32>
    %316 = arith.select %313, %311, %315 : vector<16x384xi1>, vector<16x384xf32>
    %317 = vector.broadcast %0 : vector<1x384xf32> to vector<16x384xf32>
    %318 = arith.mulf %316, %317 : vector<16x384xf32>
    %319 = vector.extract_strided_slice %318 {offsets = [0, 365], sizes = [16, 19], strides = [1, 1]} : vector<16x384xf32> to vector<16x19xf32>
    %320 = vector.extract_strided_slice %318 {offsets = [0, 0], sizes = [16, 365], strides = [1, 1]} : vector<16x384xf32> to vector<16x365xf32>
    %321 = tpu.concatenate %319, %320 in 1 : vector<16x19xf32>, vector<16x365xf32> -> vector<16x384xf32>
    %c36 = arith.constant 36 : index
    %c0_132 = arith.constant 0 : index
    %c0_133 = arith.constant 0 : index
    %322 = vector.load %arg2[%c36, %c0_132, %c0_133] : memref<45x16x16xbf16, #tpu.memory_space<vmem>>, vector<1x16x16xbf16>
    %323 = vector.shape_cast %322 : vector<1x16x16xbf16> to vector<16x16xbf16>
    %324 = arith.truncf %321 : vector<16x384xf32> to vector<16x384xbf16>
    %cst_134 = arith.constant dense<0.000000e+00> : vector<16x384xf32>
    %325 = tpu.matmul %323, %324, %cst_134 {dimension_numbers = #tpu.dot_dimension_numbers<[1], [0], [0], [1], [0, 0, 1, 1], [], []>} : vector<16x16xbf16>, vector<16x384xbf16>, vector<16x384xf32> -> vector<16x384xf32>
    %326 = vector.extract_strided_slice %318 {offsets = [0, 366], sizes = [16, 18], strides = [1, 1]} : vector<16x384xf32> to vector<16x18xf32>
    %327 = vector.extract_strided_slice %318 {offsets = [0, 0], sizes = [16, 366], strides = [1, 1]} : vector<16x384xf32> to vector<16x366xf32>
    %328 = tpu.concatenate %326, %327 in 1 : vector<16x18xf32>, vector<16x366xf32> -> vector<16x384xf32>
    %c37 = arith.constant 37 : index
    %c0_135 = arith.constant 0 : index
    %c0_136 = arith.constant 0 : index
    %329 = vector.load %arg2[%c37, %c0_135, %c0_136] : memref<45x16x16xbf16, #tpu.memory_space<vmem>>, vector<1x16x16xbf16>
    %330 = vector.shape_cast %329 : vector<1x16x16xbf16> to vector<16x16xbf16>
    %331 = arith.truncf %328 : vector<16x384xf32> to vector<16x384xbf16>
    %cst_137 = arith.constant dense<0.000000e+00> : vector<16x384xf32>
    %332 = tpu.matmul %330, %331, %cst_137 {dimension_numbers = #tpu.dot_dimension_numbers<[1], [0], [0], [1], [0, 0, 1, 1], [], []>} : vector<16x16xbf16>, vector<16x384xbf16>, vector<16x384xf32> -> vector<16x384xf32>
    %333 = arith.addf %325, %332 : vector<16x384xf32>
    %334 = vector.extract_strided_slice %318 {offsets = [0, 367], sizes = [16, 17], strides = [1, 1]} : vector<16x384xf32> to vector<16x17xf32>
    %335 = vector.extract_strided_slice %318 {offsets = [0, 0], sizes = [16, 367], strides = [1, 1]} : vector<16x384xf32> to vector<16x367xf32>
    %336 = tpu.concatenate %334, %335 in 1 : vector<16x17xf32>, vector<16x367xf32> -> vector<16x384xf32>
    %c38 = arith.constant 38 : index
    %c0_138 = arith.constant 0 : index
    %c0_139 = arith.constant 0 : index
    %337 = vector.load %arg2[%c38, %c0_138, %c0_139] : memref<45x16x16xbf16, #tpu.memory_space<vmem>>, vector<1x16x16xbf16>
    %338 = vector.shape_cast %337 : vector<1x16x16xbf16> to vector<16x16xbf16>
    %339 = arith.truncf %336 : vector<16x384xf32> to vector<16x384xbf16>
    %cst_140 = arith.constant dense<0.000000e+00> : vector<16x384xf32>
    %340 = tpu.matmul %338, %339, %cst_140 {dimension_numbers = #tpu.dot_dimension_numbers<[1], [0], [0], [1], [0, 0, 1, 1], [], []>} : vector<16x16xbf16>, vector<16x384xbf16>, vector<16x384xf32> -> vector<16x384xf32>
    %341 = arith.addf %333, %340 : vector<16x384xf32>
    %342 = vector.extract_strided_slice %318 {offsets = [0, 383], sizes = [16, 1], strides = [1, 1]} : vector<16x384xf32> to vector<16x1xf32>
    %343 = vector.extract_strided_slice %318 {offsets = [0, 0], sizes = [16, 383], strides = [1, 1]} : vector<16x384xf32> to vector<16x383xf32>
    %344 = tpu.concatenate %342, %343 in 1 : vector<16x1xf32>, vector<16x383xf32> -> vector<16x384xf32>
    %c39 = arith.constant 39 : index
    %c0_141 = arith.constant 0 : index
    %c0_142 = arith.constant 0 : index
    %345 = vector.load %arg2[%c39, %c0_141, %c0_142] : memref<45x16x16xbf16, #tpu.memory_space<vmem>>, vector<1x16x16xbf16>
    %346 = vector.shape_cast %345 : vector<1x16x16xbf16> to vector<16x16xbf16>
    %347 = arith.truncf %344 : vector<16x384xf32> to vector<16x384xbf16>
    %cst_143 = arith.constant dense<0.000000e+00> : vector<16x384xf32>
    %348 = tpu.matmul %346, %347, %cst_143 {dimension_numbers = #tpu.dot_dimension_numbers<[1], [0], [0], [1], [0, 0, 1, 1], [], []>} : vector<16x16xbf16>, vector<16x384xbf16>, vector<16x384xf32> -> vector<16x384xf32>
    %349 = arith.addf %341, %348 : vector<16x384xf32>
    %c40 = arith.constant 40 : index
    %c0_144 = arith.constant 0 : index
    %c0_145 = arith.constant 0 : index
    %350 = vector.load %arg2[%c40, %c0_144, %c0_145] : memref<45x16x16xbf16, #tpu.memory_space<vmem>>, vector<1x16x16xbf16>
    %351 = vector.shape_cast %350 : vector<1x16x16xbf16> to vector<16x16xbf16>
    %352 = arith.truncf %318 : vector<16x384xf32> to vector<16x384xbf16>
    %cst_146 = arith.constant dense<0.000000e+00> : vector<16x384xf32>
    %353 = tpu.matmul %351, %352, %cst_146 {dimension_numbers = #tpu.dot_dimension_numbers<[1], [0], [0], [1], [0, 0, 1, 1], [], []>} : vector<16x16xbf16>, vector<16x384xbf16>, vector<16x384xf32> -> vector<16x384xf32>
    %354 = arith.addf %349, %353 : vector<16x384xf32>
    %355 = vector.extract_strided_slice %318 {offsets = [0, 1], sizes = [16, 383], strides = [1, 1]} : vector<16x384xf32> to vector<16x383xf32>
    %356 = vector.extract_strided_slice %318 {offsets = [0, 0], sizes = [16, 1], strides = [1, 1]} : vector<16x384xf32> to vector<16x1xf32>
    %357 = tpu.concatenate %355, %356 in 1 : vector<16x383xf32>, vector<16x1xf32> -> vector<16x384xf32>
    %c41 = arith.constant 41 : index
    %c0_147 = arith.constant 0 : index
    %c0_148 = arith.constant 0 : index
    %358 = vector.load %arg2[%c41, %c0_147, %c0_148] : memref<45x16x16xbf16, #tpu.memory_space<vmem>>, vector<1x16x16xbf16>
    %359 = vector.shape_cast %358 : vector<1x16x16xbf16> to vector<16x16xbf16>
    %360 = arith.truncf %357 : vector<16x384xf32> to vector<16x384xbf16>
    %cst_149 = arith.constant dense<0.000000e+00> : vector<16x384xf32>
    %361 = tpu.matmul %359, %360, %cst_149 {dimension_numbers = #tpu.dot_dimension_numbers<[1], [0], [0], [1], [0, 0, 1, 1], [], []>} : vector<16x16xbf16>, vector<16x384xbf16>, vector<16x384xf32> -> vector<16x384xf32>
    %362 = arith.addf %354, %361 : vector<16x384xf32>
    %363 = vector.extract_strided_slice %318 {offsets = [0, 17], sizes = [16, 367], strides = [1, 1]} : vector<16x384xf32> to vector<16x367xf32>
    %364 = vector.extract_strided_slice %318 {offsets = [0, 0], sizes = [16, 17], strides = [1, 1]} : vector<16x384xf32> to vector<16x17xf32>
    %365 = tpu.concatenate %363, %364 in 1 : vector<16x367xf32>, vector<16x17xf32> -> vector<16x384xf32>
    %c42 = arith.constant 42 : index
    %c0_150 = arith.constant 0 : index
    %c0_151 = arith.constant 0 : index
    %366 = vector.load %arg2[%c42, %c0_150, %c0_151] : memref<45x16x16xbf16, #tpu.memory_space<vmem>>, vector<1x16x16xbf16>
    %367 = vector.shape_cast %366 : vector<1x16x16xbf16> to vector<16x16xbf16>
    %368 = arith.truncf %365 : vector<16x384xf32> to vector<16x384xbf16>
    %cst_152 = arith.constant dense<0.000000e+00> : vector<16x384xf32>
    %369 = tpu.matmul %367, %368, %cst_152 {dimension_numbers = #tpu.dot_dimension_numbers<[1], [0], [0], [1], [0, 0, 1, 1], [], []>} : vector<16x16xbf16>, vector<16x384xbf16>, vector<16x384xf32> -> vector<16x384xf32>
    %370 = arith.addf %362, %369 : vector<16x384xf32>
    %371 = vector.extract_strided_slice %318 {offsets = [0, 18], sizes = [16, 366], strides = [1, 1]} : vector<16x384xf32> to vector<16x366xf32>
    %372 = vector.extract_strided_slice %318 {offsets = [0, 0], sizes = [16, 18], strides = [1, 1]} : vector<16x384xf32> to vector<16x18xf32>
    %373 = tpu.concatenate %371, %372 in 1 : vector<16x366xf32>, vector<16x18xf32> -> vector<16x384xf32>
    %c43 = arith.constant 43 : index
    %c0_153 = arith.constant 0 : index
    %c0_154 = arith.constant 0 : index
    %374 = vector.load %arg2[%c43, %c0_153, %c0_154] : memref<45x16x16xbf16, #tpu.memory_space<vmem>>, vector<1x16x16xbf16>
    %375 = vector.shape_cast %374 : vector<1x16x16xbf16> to vector<16x16xbf16>
    %376 = arith.truncf %373 : vector<16x384xf32> to vector<16x384xbf16>
    %cst_155 = arith.constant dense<0.000000e+00> : vector<16x384xf32>
    %377 = tpu.matmul %375, %376, %cst_155 {dimension_numbers = #tpu.dot_dimension_numbers<[1], [0], [0], [1], [0, 0, 1, 1], [], []>} : vector<16x16xbf16>, vector<16x384xbf16>, vector<16x384xf32> -> vector<16x384xf32>
    %378 = arith.addf %370, %377 : vector<16x384xf32>
    %379 = vector.extract_strided_slice %318 {offsets = [0, 19], sizes = [16, 365], strides = [1, 1]} : vector<16x384xf32> to vector<16x365xf32>
    %380 = vector.extract_strided_slice %318 {offsets = [0, 0], sizes = [16, 19], strides = [1, 1]} : vector<16x384xf32> to vector<16x19xf32>
    %381 = tpu.concatenate %379, %380 in 1 : vector<16x365xf32>, vector<16x19xf32> -> vector<16x384xf32>
    %c44 = arith.constant 44 : index
    %c0_156 = arith.constant 0 : index
    %c0_157 = arith.constant 0 : index
    %382 = vector.load %arg2[%c44, %c0_156, %c0_157] : memref<45x16x16xbf16, #tpu.memory_space<vmem>>, vector<1x16x16xbf16>
    %383 = vector.shape_cast %382 : vector<1x16x16xbf16> to vector<16x16xbf16>
    %384 = arith.truncf %381 : vector<16x384xf32> to vector<16x384xbf16>
    %cst_158 = arith.constant dense<0.000000e+00> : vector<16x384xf32>
    %385 = tpu.matmul %383, %384, %cst_158 {dimension_numbers = #tpu.dot_dimension_numbers<[1], [0], [0], [1], [0, 0, 1, 1], [], []>} : vector<16x16xbf16>, vector<16x384xbf16>, vector<16x384xf32> -> vector<16x384xf32>
    %386 = arith.addf %378, %385 : vector<16x384xf32>
    %c4_159 = arith.constant 4 : index
    %c0_160 = arith.constant 0 : index
    %c0_161 = arith.constant 0 : index
    %387 = vector.load %arg3[%c4_159, %c0_160, %c0_161] : memref<5x16x1xf32, #tpu.memory_space<vmem>>, vector<1x16x1xf32>
    %388 = vector.shape_cast %387 : vector<1x16x1xf32> to vector<16x1xf32>
    %389 = vector.broadcast %388 : vector<16x1xf32> to vector<16x384xf32>
    %390 = arith.addf %386, %389 : vector<16x384xf32>
    %391 = vector.extract_strided_slice %390 {offsets = [0, 0], sizes = [2, 384], strides = [1, 1]} : vector<16x384xf32> to vector<2x384xf32>
    %c0_162 = arith.constant 0 : index
    %c0_163 = arith.constant 0 : index
    %c0_164 = arith.constant 0 : index
    %392 = vector.load %arg5[%c0_162, %c0_163, %c0_164] : memref<1x2x384xf32, #tpu.memory_space<vmem>>, vector<1x2x384xf32>
    %393 = vector.shape_cast %392 : vector<1x2x384xf32> to vector<2x384xf32>
    %394 = vector.shape_cast %391 : vector<2x384xf32> to vector<1x2x384xf32>
    tpu.vector_store %arg5[%c0_162, %c0_163, %c0_164], %394 {strides = array<i32>} : memref<1x2x384xf32, #tpu.memory_space<vmem>>, vector<1x2x384xf32>,
    return
  }
  func.func @transform_0(%arg0: i32) -> (i32, i32, i32) {
    %c0_i32 = arith.constant 0 : i32
    %c0_i32_0 = arith.constant 0 : i32
    %c0_i32_1 = arith.constant 0 : i32
    return %arg0, %c0_i32, %c0_i32_0 : i32, i32, i32
  }
  func.func @transform_1(%arg0: i32) -> (i32, i32, i32) {
    %c0_i32 = arith.constant 0 : i32
    %c0_i32_0 = arith.constant 0 : i32
    %c0_i32_1 = arith.constant 0 : i32
    %c0_i32_2 = arith.constant 0 : i32
    return %c0_i32, %c0_i32_0, %c0_i32_1 : i32, i32, i32
  }
  func.func @transform_2(%arg0: i32) -> (i32, i32, i32) {
    %c0_i32 = arith.constant 0 : i32
    %c0_i32_0 = arith.constant 0 : i32
    %c0_i32_1 = arith.constant 0 : i32
    %c0_i32_2 = arith.constant 0 : i32
    return %c0_i32, %c0_i32_0, %c0_i32_1 : i32, i32, i32
  }
  func.func @transform_3(%arg0: i32) -> (i32, i32) {
    %c0_i32 = arith.constant 0 : i32
    %c0_i32_0 = arith.constant 0 : i32
    %c0_i32_1 = arith.constant 0 : i32
    return %c0_i32, %c0_i32_0 : i32, i32
  }
  func.func @transform_4(%arg0: i32) -> (i32, i32, i32) {
    %c0_i32 = arith.constant 0 : i32
    %c0_i32_0 = arith.constant 0 : i32
    %c0_i32_1 = arith.constant 0 : i32
    return %arg0, %c0_i32, %c0_i32_0 : i32, i32, i32
  }
}

</mosaic_0001>

<bundles_post_ra>
// kernel: tpu_custom_call.1
= control target key start
LH: loop header
LB: loop body
LE: loop exit
PB: predicated region body
PF: predicated region fallthrough
CT: control target
= control target key end

     0   :  { %9 = vsyncpa [#allocation3], 0  ;;  %s8959_s0 = inlined_call_operand.vmem [shape: f32[2,16,384], index: 0, kind: input, shape index: {}]   ;;  %s8960_s1 = inlined_call_operand.vmem [shape: bf16[45,16,16], index: 1, kind: input, shape index: {}]   ;;  %s8961_s2 = inlined_call_operand.vmem [shape: f32[5,16,1], index: 2, kind: input, shape index: {}]   ;;  %s8962_s3 = inlined_call_operand.vmem [shape: f32[1,384], index: 3, kind: input, shape index: {}]   ;;  %s8963_s4 = inlined_call_operand.hbm [shape: f32[2,2,384], index: 4, kind: output, shape index: {}]  }
   0x1   :  { %11 = vsyncpa [#allocation3 + $0x1], 0  ;;  %s7675_s15 = smov 0   ;;  %s7677_s16 = smov 0  }
   0x2   :  { %s7679_s17 = smov 0   ;;  %s7681_s18 = smov 0  }
   0x3 LB: > { %s7696_s19 = sadd.s32 4294967295, %s7635_s18   ;;  %s6146_s20 = sadd.s32 4294967294, %s7635_s18   ;;  %s7635_s18 = sphi %s7681_s18, %s8969_s18   ;;  %s7631_s17 = sphi %s7679_s17, %s8968_s17   ;;  %s7627_s16 = sphi %s7677_s16, %s8967_s16   ;;  %s7623_s15 = sphi %s7675_s15, %s8966_s15  }
   0x4   : > { %s7700_s21 = sadd.s32 1, %s7635_s18   ;;  %s113_s22 = sadd.s32 1, %s7631_s17 }
   0x5   : > { %s110_s23 = ssub.s32 %s7635_s18, %s7700_s21  ;;  %p123_p0 = scmp.ne.s32.totalorder %s7631_s17, %s7627_s16 }
   0x6   : > { %p111_p1 = scmp.eq.s32.totalorder %s110_s23, 0  ;;  %p124_p2 = scmp.eq.s32.totalorder %s7696_s19, 1 }
   0x7   : > { %p129_p3 = scmp.ne.s32.totalorder %s7627_s16, %s7623_s15  ;;  %p130_p4 = scmp.eq.s32.totalorder %s6146_s20, 1 }
   0x8   : > { %s7711_s24 = scalar_select %p111_p1, %s7631_s17, %s113_s22  }
   0x9   : > { %p7713_p5 = por %p124_p2, %p123_p0  ;;  %p7717_p6 = por %p130_p4, %p129_p3 }
   0xa   : > { %p6149_p7 = scmp.ge.s32.totalorder %s7635_s18, 1  ;;  %p165_p8 = scmp.lt.s32.totalorder %s7635_s18, 3 }
   0xc   : > { %p166_p9 = pnand %p6149_p7, %p165_p8 }
   0xd   : > { %p191_p10 = scmp.lt.s32.totalorder (!%p166_p9), %s7696_s19, 1  ;;  %v7637_v0 = vmov (!%p166_p9), 0.0   ;;  %s7638_s6 = smov (!%p166_p9), 18   ;;  %vm7640_vm0 = vmmov (!%p166_p9), 0   ;;  %v7641_v10 = vmov (!%p166_p9), 0   ;;  %v1350_v17 = vld [vmem:[%s8961_s2] sm:$0xff] (!%p166_p9) }
   0xe   : > { %169 = sbr.rel (%p166_p9) target bundleno = 2239 (0x8bf), region = 36  ;;  %6474 = vmatprep.subr.bf16.mxu1 (!%p166_p9), %v7637_v0  ;;  %s7639_s7 = smov (!%p166_p9), 19   ;;  %6476 = vmatprep.mubr.msk.bf16.mxu1 (!%p166_p9), %vm7640_vm0, %v7637_v0  ;;  %v1351_v18 = vld [vmem:[%s8961_s2 + $0x8] sm:$0xff] (!%p166_p9)  ;;  %vm256_vm1 = vcmask (!%p166_p9), 146432   ;;  %vm224_vm2 = vcmask (!%p166_p9), 154624   ;;  %vm280_vm3 = vcmask (!%p166_p9), 130048  }
   0xf   : > { %316 = vmatprep.mubr.bf16.mxu0 (!%p166_p9), %v7641_v10  ;;  %7046 = vset.pattern.permute.xlu0 (!%p166_p9), %v7641_v10  ;;  %s7642_s8 = smov (!%p166_p9), 17   ;;  %s7643_s9 = smov (!%p166_p9), 1   ;;  %v7528_v46 = vld [vmem:[%s8960_s1 + $0x8] sm:$0xff] (!%p166_p9)   ;;  %vm474_vm4 = vcmask (!%p166_p9), 138240   ;;  %vm605_vm5 = vcmask (!%p166_p9), 7168   ;;  %vm838_vm6 = vcmask (!%p166_p9), 1039360  }
  0x10   : > { %7047 = vset.pattern.permute.xlu1 (!%p166_p9), %v7641_v10  ;;  %s7644_s10 = smov (!%p166_p9), 127   ;;  %s7645_s11 = smov (!%p166_p9), 111   ;;  %vm969_vm7 = vcmask (!%p166_p9), 908288   ;;  %vm1100_vm8 = vcmask (!%p166_p9), 900096   ;;  %vm1231_vm9 = vcmask (!%p166_p9), 891904  }
  0x11   : > { %s7646_s12 = smov (!%p166_p9), 110   ;;  %s7647_s13 = smov (!%p166_p9), 109  }
  0x15   : > { %s192_s27 = scalar_select %p191_p10, %s7696_s19, 1 }
  0x17   : > { %s6873_s28 = smul.u32 48, %s192_s27 }
  0x19   : > { %s195_s5 = scalar_lea.vmem %s8959_s0, %s6873_s28 }
  0x1a   : > { %v7729_v1 = vld [vmem:[%s195_s5 + $0x10] sm:$0xff]  ;;  %v7731_v2 = vld [vmem:[%s195_s5 + $0x28] sm:$0xff]  ;;  %v7733_v3 = vld [vmem:[%s195_s5] sm:$0xff] }
  0x1b   : > { %v6936_v4 = vpack.i.bf16 %v7731_v2, %v7729_v1  ;;  %v7737_v5 = vld [vmem:[%s195_s5 + $0x8] sm:$0xff]  ;;  %v7739_v6 = vld [vmem:[%s195_s5 + $0x18] sm:$0xff]  ;;  %v7741_v7 = vld [vmem:[%s195_s5 + $0x20] sm:$0xff]  ;;  %v727_v14 = vpack.c.bf16 %v7731_v2, %v7729_v1 }
  0x1c   : > { %v6926_v8 = vpack.i.bf16 %v7737_v5, %v7733_v3  ;;  %v6931_v9 = vpack.i.bf16 %v7741_v7, %v7739_v6  ;;  %v6991_v11 = vpack.i.bf16 %v7731_v2, %v7741_v7  ;;  %v6986_v12 = vpack.i.bf16 %v7729_v1, %v7737_v5  ;;  %v7532_v1 = vld [vmem:[%s8960_s1 + $0x20] sm:$0xff]  }
  0x1d   : > { %6937 = vrot.lane.b32.xlu1 %v6936_v4, %s7638_s6  ;;  %v6996_v13 = vpack.i.bf16 %v7739_v6, %v7733_v3  ;;  %v726_v15 = vpack.c.bf16 %v7741_v7, %v7737_v5  ;;  %v725_v16 = vpack.c.bf16 %v7739_v6, %v7733_v3 }
  0x1e   : > { %6927 = vrot.lane.b32.xlu0 %v6926_v8, %s7638_s6 }
  0x21   : > { %6942 = vrot.lane.b32.xlu1 %v6926_v8, %s7639_s7 }
  0x22   : > { %6932 = vrot.lane.b32.xlu0 %v6931_v9, %s7638_s6 }
  0x25   : > { %6952 = vrot.lane.b32.xlu1 %v6936_v4, %s7639_s7 }
  0x26   : > { %6947 = vrot.lane.b32.xlu0 %v6931_v9, %s7639_s7 }
  0x29   : > { %6962 = vrot.lane.b32.xlu1 %v6931_v9, %s7642_s8 }
  0x2a   : > { %6957 = vrot.lane.b32.xlu0 %v6926_v8, %s7642_s8 }
  0x2d   : > { %6972 = vrot.lane.b32.xlu1 %v6926_v8, %s7643_s9 }
  0x2e   : > { %6967 = vrot.lane.b32.xlu0 %v6936_v4, %s7642_s8 }
  0x31   : > { %6982 = vrot.lane.b32.xlu1 %v6936_v4, %s7643_s9 }
  0x32   : > { %6977 = vrot.lane.b32.xlu0 %v6931_v9, %s7643_s9 }
  0x35   : > { %6992 = vrot.lane.b32.xlu1 %v6991_v11, %s7644_s10 }
  0x36   : > { %6987 = vrot.lane.b32.xlu0 %v6986_v12, %s7644_s10 }
  0x39   : > { %7002 = vrot.lane.b32.xlu1 %v6986_v12, %s7645_s11 }
  0x3a   : > { %6997 = vrot.lane.b32.xlu0 %v6996_v13, %s7644_s10 }
  0x3d   : > { %7012 = vrot.lane.b32.xlu1 %v6996_v13, %s7645_s11 }
  0x3e   : > { %7007 = vrot.lane.b32.xlu0 %v6991_v11, %s7645_s11 }
  0x41   : > { %7022 = vrot.lane.b32.xlu1 %v6991_v11, %s7646_s12 }
  0x42   : > { %7017 = vrot.lane.b32.xlu0 %v6986_v12, %s7646_s12 }
  0x45   : > { %7032 = vrot.lane.b32.xlu1 %v6986_v12, %s7647_s13 }
  0x46   : > { %7027 = vrot.lane.b32.xlu0 %v6996_v13, %s7646_s12 }
  0x49   : > { %7042 = vrot.lane.b32.xlu1 %v6996_v13, %s7647_s13  ;;  %v7529_v13 = vld [vmem:[%s8960_s1] sm:$0xff]  }
  0x4a   : > { %7037 = vrot.lane.b32.xlu0 %v6991_v11, %s7647_s13 }
  0x4d   : > { %1359 = vperm.xlu1 %7047, %v1351_v18  }
  0x4e   : > { %1354 = vperm.xlu0 %7046, %v1350_v17  }
  0x8f   : > { %v6938_v19 = vpop.permute.xlu1 %6937 }
  0x90   : > { %v6928_v20 = vpop.permute.xlu0 %6927  ;;  %v6939_v21 = vunpack.i.l.bf16 %v6938_v19  ;;  %v6940_v24 = vunpack.i.h.bf16 %v6938_v19 }
  0x91   : > { %v6930_v22 = vunpack.i.h.bf16 %v6928_v20  ;;  %v6929_v23 = vunpack.i.l.bf16 %v6928_v20 }
  0x93   : > { %v6943_v25 = vpop.permute.xlu1 %6942  ;;  %v257_v31 = vsel %vm256_vm1, %v6929_v23, %v6930_v22  ;;  %v258_v32 = vsel %vm256_vm1, %v6930_v22, %v6939_v21  ;;  %v267_v36 = vsel %vm256_vm1, %v6939_v21, %v6929_v23 }
  0x94   : > { %v6933_v26 = vpop.permute.xlu0 %6932  ;;  %v6945_v29 = vunpack.i.h.bf16 %v6943_v25  ;;  %v6944_v30 = vunpack.i.l.bf16 %v6943_v25 }
  0x95   : > { %v6935_v27 = vunpack.i.h.bf16 %v6933_v26  ;;  %v6934_v28 = vunpack.i.l.bf16 %v6933_v26 }
  0x96   : > { %v225_v47 = vsel %vm224_vm2, %v6944_v30, %v6945_v29 }
  0x97   : > { %v6953_v33 = vpop.permute.xlu1 %6952  ;;  %v259_v34 = vsel %vm256_vm1, %v6934_v28, %v6935_v27  ;;  %v260_v35 = vsel %vm256_vm1, %v6935_v27, %v6940_v24  ;;  %v268_v37 = vsel %vm256_vm1, %v6940_v24, %v6934_v28 }
  0x98   : > { %v6948_v38 = vpop.permute.xlu0 %6947  ;;  %v6955_v39 = vunpack.i.h.bf16 %v6953_v33  ;;  %v6954_v40 = vunpack.i.l.bf16 %v6953_v33  ;;  %v273_v41 = vpack.c.bf16 %v259_v34, %v257_v31  ;;  %v274_v42 = vpack.c.bf16 %v260_v35, %v258_v32 }
  0x99   : > { %v6950_v43 = vunpack.i.h.bf16 %v6948_v38  ;;  %v6949_v44 = vunpack.i.l.bf16 %v6948_v38  ;;  %v272_v45 = vpack.c.bf16 %v268_v37, %v267_v36  ;;  %v7530_v36 = vld [vmem:[%s8960_s1 + $0x10] sm:$0xff]  }
  0x9a   : > { %v226_v48 = vsel %vm224_vm2, %v6945_v29, %v6954_v40  ;;  %v235_v49 = vsel %vm224_vm2, %v6954_v40, %v6944_v30  ;;  %284 = vmatprep.subr.bf16.mxu0 %v273_v41  ;;  %6475 = vmatpush3.bf16.msra.mxu1 %v274_v42 }
  0x9b   : > { %v228_v50 = vsel %vm224_vm2, %v6950_v43, %v6955_v39  ;;  %v236_v51 = vsel %vm224_vm2, %v6955_v39, %v6949_v44  ;;  %285 = vmatpush1.bf16.msra.mxu0 %v272_v45  ;;  %v227_v52 = vsel %vm224_vm2, %v6949_v44, %v6950_v43  ;;  %6480 = vmatprep.subr.bf16.mxu1 %v7637_v0  ;;  %v6963_v53 = vpop.permute.xlu1 %6962  ;;  %v7531_v43 = vld [vmem:[%s8960_s1 + $0x18] sm:$0xff]  }
  0x9c   : > { %v240_v54 = vpack.c.bf16 %v227_v52, %v225_v47  ;;  %v239_v55 = vpack.c.bf16 %v236_v51, %v235_v49  ;;  %v241_v56 = vpack.c.bf16 %v228_v50, %v226_v48  ;;  %v6958_v57 = vpop.permute.xlu0 %6957  ;;  %v6965_v60 = vunpack.i.h.bf16 %v6963_v53 }
  0x9d   : > { %6477 = vmatmul.mubr.msk.bf16.vlgmr.msra.gmra.mrb[0].mxu1 %vm280_vm3, %v7528_v46  ;;  %v6960_v58 = vunpack.i.h.bf16 %v6958_v57  ;;  %v6959_v59 = vunpack.i.l.bf16 %v6958_v57  ;;  %v6964_v61 = vunpack.i.l.bf16 %v6963_v53 }
  0x9e   : > { %6154 = vmatmul.mubr.msk.bf16.vlgmr.msra.gmra.mrb[0].mxu0 %vm280_vm3, %v7528_v46  ;;  %376 = vmatprep.subr.bf16.mxu0 %v240_v54 }
  0x9f   : > { %377 = vmatpush1.bf16.msra.mxu0 %v239_v55  ;;  %6481 = vmatpush3.bf16.msra.mxu1 %v241_v56  ;;  %v6973_v62 = vpop.permute.xlu1 %6972  ;;  %v475_v63 = vsel %vm474_vm4, %v6959_v59, %v6960_v58  ;;  %v477_v4 = vsel %vm474_vm4, %v6964_v61, %v6965_v60 }
  0xa0   : > { %v6968_v8 = vpop.permute.xlu0 %6967  ;;  %6482 = vmatprep.mubr.msk.bf16.mxu1 %vm7640_vm0, %v7637_v0  ;;  %408 = vmatprep.mubr.bf16.mxu0 %v7641_v10  ;;  %v491_v9 = vpack.c.bf16 %v477_v4, %v475_v63  ;;  %v6974_v17 = vunpack.i.l.bf16 %v6973_v62  ;;  %v6975_v21 = vunpack.i.h.bf16 %v6973_v62  ;;  %v7533_v4 = vld [vmem:[%s8960_s1 + $0x28] sm:$0xff]  }
  0xa1   : > { %v6970_v11 = vunpack.i.h.bf16 %v6968_v8  ;;  %v6969_v12 = vunpack.i.l.bf16 %v6968_v8  ;;  %6486 = vmatprep.subr.bf16.mxu1 %v7637_v0 }
  0xa2   : > { %501 = vmatprep.subr.bf16.mxu0 %v491_v9  ;;  %v606_v30 = vsel %vm605_vm5, %v6974_v17, %v6975_v21 }
  0xa3   : > { %v478_v18 = vsel %vm474_vm4, %v6965_v60, %v6970_v11  ;;  %v486_v19 = vsel %vm474_vm4, %v6970_v11, %v6964_v61  ;;  %v476_v20 = vsel %vm474_vm4, %v6960_v58, %v6969_v12  ;;  %v6983_v22 = vpop.permute.xlu1 %6982  ;;  %v485_v23 = vsel %vm474_vm4, %v6969_v12, %v6959_v59 }
  0xa4   : > { %v492_v24 = vpack.c.bf16 %v478_v18, %v476_v20  ;;  %v6985_v25 = vunpack.i.h.bf16 %v6983_v22  ;;  %v6984_v26 = vunpack.i.l.bf16 %v6983_v22  ;;  %v6978_v27 = vpop.permute.xlu0 %6977  ;;  %v490_v31 = vpack.c.bf16 %v486_v19, %v485_v23  ;;  %v7534_v23 = vld [vmem:[%s8960_s1 + $0x30] sm:$0xff]  }
  0xa5   : > { %6483 = vmatmul.mubr.msk.bf16.vlgmr.msra.gmra.mrb[4].mxu1 %vm280_vm3, %v7529_v13  ;;  %v6980_v28 = vunpack.i.h.bf16 %v6978_v27  ;;  %v6979_v29 = vunpack.i.l.bf16 %v6978_v27 }
  0xa6   : > { %6487 = vmatpush3.bf16.msra.mxu1 %v492_v24  ;;  %6488 = vmatprep.mubr.msk.bf16.mxu1 %vm7640_vm0, %v7637_v0  ;;  %v607_v32 = vsel %vm605_vm5, %v6975_v21, %v6984_v26  ;;  %v616_v40 = vsel %vm605_vm5, %v6984_v26, %v6974_v17 }
  0xa7   : > { %v609_v33 = vsel %vm605_vm5, %v6980_v28, %v6985_v25  ;;  %6492 = vmatprep.subr.bf16.mxu1 %v7637_v0  ;;  %v608_v34 = vsel %vm605_vm5, %v6979_v29, %v6980_v28  ;;  %v7840_v39 = vpop.permute.xlu1 %6992  ;;  %v617_v41 = vsel %vm605_vm5, %v6985_v25, %v6979_v29 }
  0xa8   : > { %v622_v35 = vpack.c.bf16 %v608_v34, %v606_v30  ;;  %v623_v37 = vpack.c.bf16 %v609_v33, %v607_v32  ;;  %v7837_v38 = vpop.permute.xlu0 %6987  ;;  %v621_v44 = vpack.c.bf16 %v617_v41, %v616_v40  ;;  %v6995_v47 = vunpack.i.h.bf16 %v7840_v39 }
  0xa9   : > { %v6990_v46 = vunpack.i.h.bf16 %v7837_v38  ;;  %v6989_v54 = vunpack.i.l.bf16 %v7837_v38  ;;  %v6994_v55 = vunpack.i.l.bf16 %v7840_v39 }
  0xaa   : > { %6157 = vmatmul.mubr.msk.bf16.vlgmr.msra.gmra.mrb[0].mxu0 %vm280_vm3, %v7529_v13 }
  0xab   : > { %502 = vmatpush1.bf16.msra.mxu0 %v490_v31  ;;  %533 = vmatprep.mubr.bf16.mxu0 %v7641_v10  ;;  %v7851_v45 = vpop.permute.xlu1 %7002  ;;  %v840_v61 = vsel %vm838_vm6, %v6989_v54, %v6990_v46  ;;  %v842_v5 = vsel %vm838_vm6, %v6994_v55, %v6995_v47 }
  0xac   : > { %632 = vmatprep.subr.bf16.mxu0 %v622_v35  ;;  %v6998_v42 = vpop.permute.xlu0 %6997  ;;  %v7005_v56 = vunpack.i.h.bf16 %v7851_v45  ;;  %v857_v63 = vpack.c.bf16 %v842_v5, %v840_v61  ;;  %v7004_v18 = vunpack.i.l.bf16 %v7851_v45  ;;  %v7536_v45 = vld [vmem:[%s8960_s1 + $0x40] sm:$0xff]  }
  0xad   : > { %6489 = vmatmul.mubr.msk.bf16.vlgmr.msra.gmra.mrb[8].mxu1 %vm280_vm3, %v7530_v36  ;;  %v7000_v48 = vunpack.i.h.bf16 %v6998_v42  ;;  %v6999_v49 = vunpack.i.l.bf16 %v6998_v42 }
  0xae   : > { %6493 = vmatpush3.bf16.msra.mxu1 %v623_v37  ;;  %6494 = vmatprep.mubr.msk.bf16.mxu1 %vm7640_vm0, %v7637_v0  ;;  %v971_v26 = vsel %vm969_vm7, %v7004_v18, %v7005_v56  ;;  %v7535_v37 = vld [vmem:[%s8960_s1 + $0x38] sm:$0xff]  }
  0xaf   : > { %6498 = vmatprep.subr.bf16.mxu1 %v7637_v0  ;;  %v852_v51 = vsel %vm838_vm6, %v6995_v47, %v7000_v48  ;;  %v851_v52 = vsel %vm838_vm6, %v6990_v46, %v6999_v49  ;;  %v7868_v53 = vpop.permute.xlu1 %7012  ;;  %v841_v3 = vsel %vm838_vm6, %v7000_v48, %v6994_v55  ;;  %v839_v6 = vsel %vm838_vm6, %v6999_v49, %v6989_v54 }
  0xb0   : > { %v7855_v50 = vpop.permute.xlu0 %7007  ;;  %v858_v2 = vpack.c.bf16 %v852_v51, %v851_v52  ;;  %v7015_v57 = vunpack.i.h.bf16 %v7868_v53  ;;  %v7014_v58 = vunpack.i.l.bf16 %v7868_v53  ;;  %v856_v24 = vpack.c.bf16 %v841_v3, %v839_v6 }
  0xb1   : > { %v7010_v59 = vunpack.i.h.bf16 %v7855_v50  ;;  %v7009_v19 = vunpack.i.l.bf16 %v7855_v50 }
  0xb2   : > { %v982_v7 = vsel %vm969_vm7, %v7005_v56, %v7014_v58  ;;  %v970_v39 = vsel %vm969_vm7, %v7014_v58, %v7004_v18 }
  0xb3   : > { %v7884_v60 = vpop.permute.xlu1 %7022  ;;  %v973_v27 = vsel %vm969_vm7, %v7009_v19, %v7010_v59  ;;  %v972_v40 = vsel %vm969_vm7, %v7015_v57, %v7009_v19 }
  0xb4   : > { %v7025_v12 = vunpack.i.h.bf16 %v7884_v60  ;;  %v988_v32 = vpack.c.bf16 %v973_v27, %v971_v26 }
  0xb5   : > { %6495 = vmatmul.mubr.msk.bf16.vlgmr.msra.gmra.mrb[12].mxu1 %vm280_vm3, %v7531_v43 }
  0xb6   : > { %6162 = vmatmul.mubr.msk.bf16.vlgmr.msra.gmra.mrb[0].mxu0 %vm280_vm3, %v7530_v36  ;;  %6499 = vmatpush3.bf16.msra.mxu1 %v727_v14  ;;  %v7878_v14 = vpop.permute.xlu0 %7017  ;;  %v7024_v36 = vunpack.i.l.bf16 %v7884_v60 }
  0xb7   : > { %633 = vmatpush1.bf16.msra.mxu0 %v621_v44  ;;  %6500 = vmatprep.mubr.msk.bf16.mxu1 %vm7640_vm0, %v7637_v0  ;;  %v7904_v9 = vpop.permute.xlu1 %7032  ;;  %v7020_v11 = vunpack.i.h.bf16 %v7878_v14  ;;  %v7019_v35 = vunpack.i.l.bf16 %v7878_v14 }
  0xb8   : > { %664 = vmatprep.mubr.bf16.mxu0 %v7641_v10  ;;  %6504 = vmatprep.subr.bf16.mxu1 %v7637_v0  ;;  %v7035_v28 = vunpack.i.h.bf16 %v7904_v9  ;;  %v1104_v42 = vsel %vm1100_vm8, %v7024_v36, %v7025_v12  ;;  %v7034_v46 = vunpack.i.l.bf16 %v7904_v9 }
  0xb9   : > { %736 = vmatprep.subr.bf16.mxu0 %v726_v15  ;;  %v983_v15 = vsel %vm969_vm7, %v7010_v59, %v7015_v57  ;;  %v1102_v41 = vsel %vm1100_vm8, %v7019_v35, %v7020_v11 }
  0xba   : > { %v7898_v62 = vpop.permute.xlu0 %7027  ;;  %v989_v8 = vpack.c.bf16 %v983_v15, %v982_v7  ;;  %v1119_v44 = vpack.c.bf16 %v1104_v42, %v1102_v41  ;;  %v1233_v50 = vsel %vm1231_vm9, %v7034_v46, %v7035_v28 }
  0xbb   : > { %v7030_v13 = vunpack.i.h.bf16 %v7898_v62  ;;  %v7029_v17 = vunpack.i.l.bf16 %v7898_v62  ;;  %v7043_v21 = vpop.permute.xlu1 %7042 }
  0xbc   : > { %v7045_v29 = vunpack.i.h.bf16 %v7043_v21  ;;  %v7044_v30 = vunpack.i.l.bf16 %v7043_v21 }
  0xbd   : > { %6501 = vmatmul.mubr.msk.bf16.vlgmr.msra.gmra.mrb[16].mxu1 %vm280_vm3, %v7532_v1  ;;  %v1113_v20 = vsel %vm1100_vm8, %v7020_v11, %v7029_v17  ;;  %v1103_v48 = vsel %vm1100_vm8, %v7030_v13, %v7024_v36  ;;  %v1101_v49 = vsel %vm1100_vm8, %v7029_v17, %v7019_v35 }
  0xbe   : > { %6505 = vmatpush3.bf16.msra.mxu1 %v858_v2  ;;  %6506 = vmatprep.mubr.msk.bf16.mxu1 %vm7640_vm0, %v7637_v0  ;;  %v7038_v22 = vpop.permute.xlu0 %7037  ;;  %v1244_v33 = vsel %vm1231_vm9, %v7035_v28, %v7044_v30  ;;  %v1118_v52 = vpack.c.bf16 %v1103_v48, %v1101_v49  ;;  %v1232_v54 = vsel %vm1231_vm9, %v7044_v30, %v7034_v46 }
  0xbf   : > { %6510 = vmatprep.subr.bf16.mxu1 %v7637_v0  ;;  %v7040_v31 = vunpack.i.h.bf16 %v7038_v22  ;;  %v7039_v47 = vunpack.i.l.bf16 %v7038_v22 }
  0xc1   : > { %v1245_v34 = vsel %vm1231_vm9, %v7040_v31, %v7045_v29  ;;  %v1235_v51 = vsel %vm1231_vm9, %v7039_v47, %v7040_v31  ;;  %v1234_v55 = vsel %vm1231_vm9, %v7045_v29, %v7039_v47 }
  0xc2   : > { %6167 = vmatmul.mubr.msk.bf16.vlgmr.msra.gmra.mrb[0].mxu0 %vm280_vm3, %v7531_v43  ;;  %v1251_v38 = vpack.c.bf16 %v1245_v34, %v1244_v33  ;;  %v987_v43 = vpack.c.bf16 %v972_v40, %v970_v39  ;;  %v1250_v53 = vpack.c.bf16 %v1235_v51, %v1233_v50  ;;  %v1387_v39 = vlaneseq  ;;  %v197_v50 = vld [vmem:[%s8962_s3] sm:$0x7] }
  0xc3   : > { %737 = vmatpush1.bf16.msra.mxu0 %v725_v16  ;;  %768 = vmatprep.mubr.bf16.mxu0 %v7641_v10  ;;  %v1114_v16 = vsel %vm1100_vm8, %v7025_v12, %v7030_v13 }
  0xc4   : > { %867 = vmatprep.subr.bf16.mxu0 %v857_v63  ;;  %v1120_v25 = vpack.c.bf16 %v1114_v16, %v1113_v20  ;;  %v7976_v42 = vshrl.u32 %v1387_v39, 7 }
  0xc5   : > { %6507 = vmatmul.mubr.msk.bf16.vlgmr.msra.gmra.mrb[20].mxu1 %vm280_vm3, %v7533_v4 }
  0xc6   : > { %6511 = vmatpush3.bf16.msra.mxu1 %v989_v8  ;;  %6512 = vmatprep.mubr.msk.bf16.mxu1 %vm7640_vm0, %v7637_v0  ;;  %v1397_v47 = vsub.s32 2, %v7976_v42 }
  0xc7   : > { %6516 = vmatprep.subr.bf16.mxu1 %v7637_v0 }
  0xcc   : > { %v1360_v49 = vpop.permute.xlu1 %1359 }
  0xcd   : > { %6513 = vmatmul.mubr.msk.bf16.vlgmr.msra.gmra.mrb[24].mxu1 %vm280_vm3, %v7534_v23 }
  0xce   : > { %6172 = vmatmul.mubr.msk.bf16.vlgmr.msra.gmra.mrb[0].mxu0 %vm280_vm3, %v7532_v1  ;;  %6517 = vmatpush3.bf16.msra.mxu1 %v1120_v25  ;;  %v1249_v1 = vpack.c.bf16 %v1234_v55, %v1232_v54 }
  0xcf   : > { %868 = vmatpush1.bf16.msra.mxu0 %v856_v24  ;;  %6518 = vmatprep.mubr.msk.bf16.mxu1 %vm7640_vm0, %v7637_v0 }
  0xd0   : > { %899 = vmatprep.mubr.bf16.mxu0 %v7641_v10  ;;  %6522 = vmatprep.subr.bf16.mxu1 %v7637_v0 }
  0xd1   : > { %998 = vmatprep.subr.bf16.mxu0 %v988_v32 }
  0xd5   : > { %6519 = vmatmul.mubr.msk.bf16.vlgmr.msra.gmra.mrb[28].mxu1 %vm280_vm3, %v7535_v37 }
  0xd6   : > { %6523 = vmatpush3.bf16.msra.mxu1 %v1251_v38  ;;  %6524 = vmatprep.mubr.msk.bf16.mxu1 %vm7640_vm0, %v7637_v0 }
  0xd7   : > { %6528 = vmatprep.subr.bf16.mxu1 %v7637_v0 }
  0xda   : > { %6177 = vmatmul.mubr.msk.bf16.vlgmr.msra.gmra.mrb[0].mxu0 %vm280_vm3, %v7533_v4 }
  0xdb   : > { %999 = vmatpush1.bf16.msra.mxu0 %v987_v43  ;;  %1030 = vmatprep.mubr.bf16.mxu0 %v7641_v10 }
  0xdc   : > { %1129 = vmatprep.subr.bf16.mxu0 %v1119_v44  ;;  %v1355_v44 = vpop.permute.xlu0 %1354 }
  0xdd   : > { %6525 = vmatmul.mubr.msk.bf16.vlgmr.msra.gmra.mrb[32].mxu1 %vm280_vm3, %v7536_v45 }
  0xde   : > { %6530 = vmatprep.mubr.msk.bf16.mxu1 %vm7640_vm0, %v7637_v0 }
  0xe6   : > { %6182 = vmatmul.mubr.msk.bf16.vlgmr.msra.gmra.mrb[0].mxu0 %vm280_vm3, %v7534_v23 }
  0xe7   : > { %1130 = vmatpush1.bf16.msra.mxu0 %v1118_v52  ;;  %1161 = vmatprep.mubr.bf16.mxu0 %v7641_v10 }
  0xe8   : > { %1260 = vmatprep.subr.bf16.mxu0 %v1250_v53 }
  0xf2   : > { %6187 = vmatmul.mubr.msk.bf16.vlgmr.msra.gmra.mrb[0].mxu0 %vm280_vm3, %v7535_v37 }
  0xf3   : > { %1261 = vmatpush1.bf16.msra.mxu0 %v1249_v1  ;;  %1292 = vmatprep.mubr.bf16.mxu0 %v7641_v10  ;;  %v7982_v1 = vrot.slane %v197_v50, %v1397_v47 }
  0xfe   : > { %6192 = vmatmul.mubr.msk.bf16.vlgmr.msra.gmra.mrb[0].mxu0 %vm280_vm3, %v7536_v45 }
  0xff   : > { %1518 = vmatprep.mubr.bf16.mxu0 %v7641_v10 }
 0x170   : > { %v361_v2 = vpop.f32.mrb[0].mxu1 }
 0x171   : > { %v6478_v14 = vpop.f32.mrb[1].mxu1 }
 0x172   : > { %v364_v56 = vpop.f32.mrb[2].mxu1 }
 0x173   : > { %v6479_v57 = vpop.f32.mrb[3].mxu1 }
 0x178   : > { %v453_v58 = vpop.f32.mrb[4].mxu1 }
 0x179   : > { %v454_v59 = vadd.f32 %v453_v58, %v361_v2  ;;  %v6484_v60 = vpop.f32.mrb[5].mxu1 }
 0x17a   : > { %v456_v61 = vpop.f32.mrb[6].mxu1 }
 0x17b   : > { %v457_v5 = vadd.f32 %v456_v61, %v364_v56  ;;  %v6485_v7 = vpop.f32.mrb[7].mxu1  ;;  %v1389_v61 = vsub.s32 0, %v7976_v42 }
 0x180   : > { %v578_v15 = vpop.f32.mrb[8].mxu1 }
 0x181   : > { %v587_v62 = vadd.f32 %v578_v15, %v454_v59  ;;  %v6490_v63 = vpop.f32.mrb[9].mxu1 }
 0x182   : > { %v581_v4 = vpop.f32.mrb[10].mxu1  ;;  %v7996_v63 = vrot.slane %v197_v50, %v1389_v61  ;;  %v7537_v61 = vld [vmem:[%s8960_s1 + $0x50] sm:$0xff]  }
 0x183   : > { %v590_v8 = vadd.f32 %v581_v4, %v457_v5  ;;  %v6491_v9 = vpop.f32.mrb[11].mxu1  ;;  %v1393_v5 = vsub.s32 1, %v7976_v42 }
 0x188   : > { %v709_v11 = vpop.f32.mrb[12].mxu1 }
 0x189   : > { %v718_v12 = vadd.f32 %v709_v11, %v587_v62  ;;  %v6496_v13 = vpop.f32.mrb[13].mxu1  ;;  %v7998_v11 = vrot.slane %v197_v50, %v1393_v5 }
 0x18a   : > { %v712_v17 = vpop.f32.mrb[14].mxu1 }
 0x18b   : > { %v721_v18 = vadd.f32 %v712_v17, %v590_v8  ;;  %v6497_v19 = vpop.f32.mrb[15].mxu1 }
 0x190   : > { %v813_v3 = vpop.f32.mrb[16].mxu1 }
 0x191   : > { %v822_v6 = vadd.f32 %v813_v3, %v718_v12  ;;  %v6502_v16 = vpop.f32.mrb[17].mxu1 }
 0x192   : > { %v816_v20 = vpop.f32.mrb[18].mxu1 }
 0x193   : > { %v825_v21 = vadd.f32 %v816_v20, %v721_v18  ;;  %v6503_v22 = vpop.f32.mrb[19].mxu1 }
 0x198   : > { %v944_v23 = vpop.f32.mrb[20].mxu1 }
 0x199   : > { %v953_v24 = vadd.f32 %v944_v23, %v822_v6  ;;  %v6508_v25 = vpop.f32.mrb[21].mxu1 }
 0x19a   : > { %v947_v26 = vpop.f32.mrb[22].mxu1 }
 0x19b   : > { %v956_v27 = vadd.f32 %v947_v26, %v825_v21  ;;  %v6509_v28 = vpop.f32.mrb[23].mxu1 }
 0x1a0   : > { %v1075_v29 = vpop.f32.mrb[24].mxu1 }
 0x1a1   : > { %v1084_v30 = vadd.f32 %v1075_v29, %v953_v24  ;;  %v6514_v31 = vpop.f32.mrb[25].mxu1 }
 0x1a2   : > { %v1078_v32 = vpop.f32.mrb[26].mxu1 }
 0x1a3   : > { %v1087_v33 = vadd.f32 %v1078_v32, %v956_v27  ;;  %v6515_v34 = vpop.f32.mrb[27].mxu1 }
 0x1a4   : > { %v6240_v34 = vld [vmem:[%s8961_s2 + $0x18] sm:$0xff] }
 0x1a8   : > { %v1206_v35 = vpop.f32.mrb[28].mxu1 }
 0x1a9   : > { %v1215_v36 = vadd.f32 %v1206_v35, %v1084_v30  ;;  %v6520_v37 = vpop.f32.mrb[29].mxu1 }
 0x1aa   : > { %v1209_v38 = vpop.f32.mrb[30].mxu1 }
 0x1ab   : > { %v1218_v40 = vadd.f32 %v1209_v38, %v1087_v33  ;;  %v6521_v41 = vpop.f32.mrb[31].mxu1  ;;  %v6239_v33 = vld [vmem:[%s8961_s2 + $0x10] sm:$0xff] }
 0x1b0   : > { %v1337_v43 = vpop.f32.mrb[32].mxu1 }
 0x1b1   : > { %v1346_v45 = vadd.f32 %v1337_v43, %v1215_v36  ;;  %v6526_v46 = vpop.f32.mrb[33].mxu1 }
 0x1b2   : > { %v1340_v48 = vpop.f32.mrb[34].mxu1 }
 0x1b3   : > { %v1364_v51 = vadd.f32 %v1355_v44, %v1346_v45  ;;  %v1349_v52 = vadd.f32 %v1340_v48, %v1218_v40  ;;  %v6527_v53 = vpop.f32.mrb[35].mxu1 }
 0x1b5   : > { %vm1370_vm10 = vcmp.ge.f32.partialorder %v1364_v51, 0.0  ;;  %v1376_v54 = vmul.f32 0.01, %v1364_v51  ;;  %v1367_v55 = vadd.f32 %v1360_v49, %v1349_v52 }
 0x1b7   : > { %v1382_v2 = vsel %vm1370_vm10, %v1364_v51, %v1376_v54  ;;  %vm1373_vm11 = vcmp.ge.f32.partialorder %v1367_v55, 0.0  ;;  %v1379_v14 = vmul.f32 0.01, %v1367_v55 }
 0x1b8   : > { %v7985_v57 = vmul.f32 %v7982_v1, %v1382_v2 }
 0x1b9   : > { %v1385_v56 = vsel %vm1373_vm11, %v1367_v55, %v1379_v14 }
 0x1ba   : > { %v7988_v58 = vmul.f32 %v7982_v1, %v1385_v56 }
 0x1bc   : > { %v7058_v59 = vpack.i.bf16 %v7988_v58, %v7985_v57  ;;  %v1927_v60 = vpack.c.bf16 %v7988_v58, %v7985_v57 }
 0x1d1   : > { %v1294_v7 = vpop.f32.mrb[0].mxu0 }
 0x1d2   : > { %v1362_v15 = vadd.f32 %v1355_v44, %v1294_v7  ;;  %v1296_v62 = vpop.f32.mrb[1].mxu0 }
 0x1d3   : > { %v1363_v4 = vadd.f32 %v1355_v44, %v1296_v62  ;;  %v1298_v8 = vpop.f32.mrb[2].mxu0 }
 0x1d4   : > { %vm1368_vm12 = vcmp.ge.f32.partialorder %v1362_v15, 0.0  ;;  %v1374_v9 = vmul.f32 0.01, %v1362_v15  ;;  %v1365_v12 = vadd.f32 %v1360_v49, %v1298_v8  ;;  %v1300_v13 = vpop.f32.mrb[3].mxu0 }
 0x1d5   : > { %vm1369_vm13 = vcmp.ge.f32.partialorder %v1363_v4, 0.0  ;;  %v1375_v17 = vmul.f32 0.01, %v1363_v4  ;;  %v1366_v18 = vadd.f32 %v1360_v49, %v1300_v13 }
 0x1d6   : > { %v1380_v19 = vsel %vm1368_vm12, %v1362_v15, %v1374_v9  ;;  %vm1371_vm14 = vcmp.ge.f32.partialorder %v1365_v12, 0.0  ;;  %v1377_v3 = vmul.f32 0.01, %v1365_v12 }
 0x1d7   : > { %v8001_v6 = vmul.f32 %v7996_v63, %v1380_v19  ;;  %v1381_v16 = vsel %vm1369_vm13, %v1363_v4, %v1375_v17  ;;  %vm1372_vm15 = vcmp.ge.f32.partialorder %v1366_v18, 0.0  ;;  %v1378_v20 = vmul.f32 0.01, %v1366_v18 }
 0x1d8   : > { %v8004_v21 = vmul.f32 %v7998_v11, %v1381_v16  ;;  %v1383_v22 = vsel %vm1371_vm14, %v1365_v12, %v1377_v3 }
 0x1d9   : > { %v8007_v23 = vmul.f32 %v7996_v63, %v1383_v22  ;;  %v1384_v24 = vsel %vm1372_vm15, %v1366_v18, %v1378_v20 }
 0x1da   : > { %v8010_v25 = vmul.f32 %v7998_v11, %v1384_v24  ;;  %v7048_v26 = vpack.i.bf16 %v8004_v21, %v8001_v6  ;;  %v7108_v27 = vpack.i.bf16 %v7985_v57, %v8004_v21 }
 0x1db   : > { %v7118_v28 = vpack.i.bf16 %v8007_v23, %v8001_v6  ;;  %v1925_v32 = vpack.c.bf16 %v8007_v23, %v8001_v6 }
 0x1dc   : > { %7049 = vrot.lane.b32.xlu1 %v7048_v26, %s7638_s6  ;;  %v7053_v29 = vpack.i.bf16 %v8010_v25, %v8007_v23  ;;  %v7113_v30 = vpack.i.bf16 %v7988_v58, %v8010_v25  ;;  %v1926_v31 = vpack.c.bf16 %v8010_v25, %v8004_v21  ;;  %v7541_v21 = vld [vmem:[%s8960_s1 + $0x68] sm:$0xff]  }
 0x1de   : > { %7054 = vrot.lane.b32.xlu0 %v7053_v29, %s7638_s6 }
 0x1e0   : > { %7059 = vrot.lane.b32.xlu1 %v7058_v59, %s7638_s6 }
 0x1e2   : > { %7064 = vrot.lane.b32.xlu0 %v7048_v26, %s7639_s7 }
 0x1e4   : > { %7069 = vrot.lane.b32.xlu1 %v7053_v29, %s7639_s7 }
 0x1e6   : > { %7074 = vrot.lane.b32.xlu0 %v7058_v59, %s7639_s7 }
 0x1e8   : > { %7079 = vrot.lane.b32.xlu1 %v7048_v26, %s7642_s8 }
 0x1ea   : > { %7084 = vrot.lane.b32.xlu0 %v7053_v29, %s7642_s8 }
 0x1ec   : > { %7089 = vrot.lane.b32.xlu1 %v7058_v59, %s7642_s8 }
 0x1ee   : > { %7094 = vrot.lane.b32.xlu0 %v7048_v26, %s7643_s9 }
 0x1f0   : > { %7099 = vrot.lane.b32.xlu1 %v7053_v29, %s7643_s9 }
 0x1f2   : > { %7104 = vrot.lane.b32.xlu0 %v7058_v59, %s7643_s9 }
 0x1f4   : > { %7109 = vrot.lane.b32.xlu1 %v7108_v27, %s7644_s10 }
 0x1f6   : > { %7114 = vrot.lane.b32.xlu0 %v7113_v30, %s7644_s10 }
 0x1f8   : > { %7119 = vrot.lane.b32.xlu1 %v7118_v28, %s7644_s10 }
 0x1fa   : > { %7124 = vrot.lane.b32.xlu0 %v7108_v27, %s7645_s11 }
 0x1fc   : > { %7129 = vrot.lane.b32.xlu1 %v7113_v30, %s7645_s11 }
 0x1fe   : > { %7134 = vrot.lane.b32.xlu0 %v7118_v28, %s7645_s11 }
 0x200   : > { %7139 = vrot.lane.b32.xlu1 %v7108_v27, %s7646_s12 }
 0x202   : > { %7144 = vrot.lane.b32.xlu0 %v7113_v30, %s7646_s12 }
 0x204   : > { %7149 = vrot.lane.b32.xlu1 %v7118_v28, %s7646_s12 }
 0x206   : > { %7154 = vrot.lane.b32.xlu0 %v7108_v27, %s7647_s13 }
 0x208   : > { %7159 = vrot.lane.b32.xlu1 %v7113_v30, %s7647_s13 }
 0x20a   : > { %7164 = vrot.lane.b32.xlu0 %v7118_v28, %s7647_s13 }
 0x20c   : > { %2551 = vperm.xlu1 %7047, %v6239_v33  }
 0x20e   : > { %2556 = vperm.xlu0 %7046, %v6240_v34  }
 0x24e   : > { %v7050_v35 = vpop.permute.xlu1 %7049 }
 0x24f   : > { %v7052_v36 = vunpack.i.h.bf16 %v7050_v35  ;;  %v7051_v37 = vunpack.i.l.bf16 %v7050_v35 }
 0x250   : > { %v7055_v38 = vpop.permute.xlu0 %7054 }
 0x251   : > { %v7057_v39 = vunpack.i.h.bf16 %v7055_v38  ;;  %v7056_v40 = vunpack.i.l.bf16 %v7055_v38  ;;  %v1460_v45 = vsel %vm256_vm1, %v7051_v37, %v7052_v36 }
 0x252   : > { %v7060_v41 = vpop.permute.xlu1 %7059 }
 0x253   : > { %v7062_v43 = vunpack.i.h.bf16 %v7060_v41  ;;  %v7061_v44 = vunpack.i.l.bf16 %v7060_v41  ;;  %v1462_v46 = vsel %vm256_vm1, %v7056_v40, %v7057_v39 }
 0x254   : > { %v7065_v47 = vpop.permute.xlu0 %7064  ;;  %v1476_v48 = vpack.c.bf16 %v1462_v46, %v1460_v45 }
 0x255   : > { %v1461_v49 = vsel %vm256_vm1, %v7052_v36, %v7061_v44  ;;  %v1463_v50 = vsel %vm256_vm1, %v7057_v39, %v7062_v43  ;;  %v1470_v51 = vsel %vm256_vm1, %v7061_v44, %v7051_v37  ;;  %v1471_v52 = vsel %vm256_vm1, %v7062_v43, %v7056_v40  ;;  %v7538_v36 = vld [vmem:[%s8960_s1 + $0x48] sm:$0xff]  }
 0x256   : > { %v7067_v53 = vunpack.i.h.bf16 %v7065_v47  ;;  %v7066_v54 = vunpack.i.l.bf16 %v7065_v47  ;;  %v7070_v55 = vpop.permute.xlu1 %7069  ;;  %1486 = vmatprep.subr.bf16.mxu0 %v1476_v48  ;;  %v1475_v2 = vpack.c.bf16 %v1471_v52, %v1470_v51  ;;  %v1477_v14 = vpack.c.bf16 %v1463_v50, %v1461_v49 }
 0x257   : > { %v7072_v56 = vunpack.i.h.bf16 %v7070_v55  ;;  %v7071_v59 = vunpack.i.l.bf16 %v7070_v55 }
 0x258   : > { %v7075_v5 = vpop.permute.xlu0 %7074  ;;  %1487 = vmatpush1.bf16.msra.mxu0 %v1475_v2  ;;  %6529 = vmatpush3.bf16.msra.mxu1 %v1477_v14  ;;  %v1428_v62 = vsel %vm224_vm2, %v7066_v54, %v7067_v53  ;;  %v7539_v14 = vld [vmem:[%s8960_s1 + $0x58] sm:$0xff]  }
 0x259   : > { %v7077_v7 = vunpack.i.h.bf16 %v7075_v5  ;;  %v7076_v15 = vunpack.i.l.bf16 %v7075_v5  ;;  %v1430_v4 = vsel %vm224_vm2, %v7071_v59, %v7072_v56  ;;  %6534 = vmatprep.subr.bf16.mxu1 %v7637_v0 }
 0x25a   : > { %v7080_v8 = vpop.permute.xlu1 %7079  ;;  %v1444_v9 = vpack.c.bf16 %v1430_v4, %v1428_v62  ;;  %v7540_v62 = vld [vmem:[%s8960_s1 + $0x60] sm:$0xff]  }
 0x25b   : > { %v1431_v12 = vsel %vm224_vm2, %v7072_v56, %v7077_v7  ;;  %v1439_v13 = vsel %vm224_vm2, %v7077_v7, %v7071_v59  ;;  %v1429_v17 = vsel %vm224_vm2, %v7067_v53, %v7076_v15  ;;  %v1438_v18 = vsel %vm224_vm2, %v7076_v15, %v7066_v54  ;;  %6199 = vmatmul.mubr.msk.bf16.vlgmr.msra.gmra.mrb[4].mxu0 %vm280_vm3, %v7537_v61 }
 0x25c   : > { %v1443_v19 = vpack.c.bf16 %v1439_v13, %v1438_v18  ;;  %v1445_v3 = vpack.c.bf16 %v1431_v12, %v1429_v17  ;;  %v7082_v16 = vunpack.i.h.bf16 %v7080_v8  ;;  %v7081_v20 = vunpack.i.l.bf16 %v7080_v8  ;;  %6531 = vmatmul.mubr.msk.bf16.vlgmr.msra.gmra.mrb[36].mxu1 %vm280_vm3, %v7537_v61  ;;  %v7085_v22 = vpop.permute.xlu0 %7084  ;;  %1578 = vmatprep.subr.bf16.mxu0 %v1444_v9 }
 0x25d   : > { %v7087_v24 = vunpack.i.h.bf16 %v7085_v22  ;;  %v7086_v26 = vunpack.i.l.bf16 %v7085_v22  ;;  %6536 = vmatprep.mubr.msk.bf16.mxu1 %vm7640_vm0, %v7637_v0  ;;  %1610 = vmatprep.mubr.bf16.mxu0 %v7641_v10 }
 0x25e   : > { %v7090_v27 = vpop.permute.xlu1 %7089  ;;  %1579 = vmatpush1.bf16.msra.mxu0 %v1443_v19  ;;  %6535 = vmatpush3.bf16.msra.mxu1 %v1445_v3  ;;  %v1676_v30 = vsel %vm474_vm4, %v7081_v20, %v7082_v16 }
 0x25f   : > { %v7092_v28 = vunpack.i.h.bf16 %v7090_v27  ;;  %v7091_v29 = vunpack.i.l.bf16 %v7090_v27  ;;  %v1678_v33 = vsel %vm474_vm4, %v7086_v26, %v7087_v24  ;;  %6540 = vmatprep.subr.bf16.mxu1 %v7637_v0 }
 0x260   : > { %v7095_v34 = vpop.permute.xlu0 %7094  ;;  %v1692_v35 = vpack.c.bf16 %v1678_v33, %v1676_v30 }
 0x261   : > { %v1677_v37 = vsel %vm474_vm4, %v7082_v16, %v7091_v29  ;;  %v1679_v38 = vsel %vm474_vm4, %v7087_v24, %v7092_v28  ;;  %v7097_v40 = vunpack.i.h.bf16 %v7095_v34  ;;  %v7096_v41 = vunpack.i.l.bf16 %v7095_v34  ;;  %v7542_v34 = vld [vmem:[%s8960_s1 + $0x70] sm:$0xff]  }
 0x262   : > { %v1693_v39 = vpack.c.bf16 %v1679_v38, %v1677_v37  ;;  %v7100_v43 = vpop.permute.xlu1 %7099  ;;  %1702 = vmatprep.subr.bf16.mxu0 %v1692_v35  ;;  %v1686_v44 = vsel %vm474_vm4, %v7091_v29, %v7081_v20  ;;  %v1687_v45 = vsel %vm474_vm4, %v7092_v28, %v7086_v26 }
 0x263   : > { %v7102_v46 = vunpack.i.h.bf16 %v7100_v43  ;;  %v7101_v47 = vunpack.i.l.bf16 %v7100_v43  ;;  %v1806_v51 = vsel %vm605_vm5, %v7096_v41, %v7097_v40  ;;  %v1691_v53 = vpack.c.bf16 %v1687_v45, %v1686_v44 }
 0x264   : > { %6537 = vmatmul.mubr.msk.bf16.vlgmr.msra.gmra.mrb[40].mxu1 %vm280_vm3, %v7538_v36  ;;  %v7105_v48 = vpop.permute.xlu0 %7104 }
 0x265   : > { %v7107_v49 = vunpack.i.h.bf16 %v7105_v48  ;;  %v7106_v50 = vunpack.i.l.bf16 %v7105_v48  ;;  %6541 = vmatpush3.bf16.msra.mxu1 %v1693_v39  ;;  %v1808_v52 = vsel %vm605_vm5, %v7101_v47, %v7102_v46  ;;  %6542 = vmatprep.mubr.msk.bf16.mxu1 %vm7640_vm0, %v7637_v0 }
 0x266   : > { %v1822_v54 = vpack.c.bf16 %v1808_v52, %v1806_v51  ;;  %6546 = vmatprep.subr.bf16.mxu1 %v7637_v0  ;;  %v8100_v59 = vpop.permute.xlu1 %7109 }
 0x267   : > { %v1809_v55 = vsel %vm605_vm5, %v7102_v46, %v7107_v49  ;;  %v1807_v2 = vsel %vm605_vm5, %v7097_v40, %v7106_v50  ;;  %6202 = vmatmul.mubr.msk.bf16.vlgmr.msra.gmra.mrb[4].mxu0 %vm280_vm3, %v7538_v36  ;;  %v1817_v5 = vsel %vm605_vm5, %v7107_v49, %v7101_v47  ;;  %v1816_v7 = vsel %vm605_vm5, %v7106_v50, %v7096_v41  ;;  %v7543_v46 = vld [vmem:[%s8960_s1 + $0x78] sm:$0xff]  }
 0x268   : > { %1703 = vmatpush1.bf16.msra.mxu0 %v1691_v53  ;;  %1734 = vmatprep.mubr.bf16.mxu0 %v7641_v10  ;;  %v1823_v56 = vpack.c.bf16 %v1809_v55, %v1807_v2  ;;  %v8102_v61 = vpop.permute.xlu0 %7114  ;;  %v1821_v8 = vpack.c.bf16 %v1817_v5, %v1816_v7  ;;  %v7112_v17 = vunpack.i.h.bf16 %v8100_v59  ;;  %v7111_v25 = vunpack.i.l.bf16 %v8100_v59  ;;  %v7544_v5 = vld [vmem:[%s8960_s1 + $0x80] sm:$0xff]  }
 0x269   : > { %1832 = vmatprep.subr.bf16.mxu0 %v1822_v54  ;;  %v7117_v18 = vunpack.i.h.bf16 %v8102_v61  ;;  %v7116_v57 = vunpack.i.l.bf16 %v8102_v61 }
 0x26a   : > { %v7120_v15 = vpop.permute.xlu1 %7119  ;;  %v2039_v28 = vsel %vm838_vm6, %v7111_v25, %v7112_v17 }
 0x26b   : > { %v7122_v9 = vunpack.i.h.bf16 %v7120_v15  ;;  %v7121_v12 = vunpack.i.l.bf16 %v7120_v15  ;;  %v2041_v22 = vsel %vm838_vm6, %v7116_v57, %v7117_v18 }
 0x26c   : > { %6543 = vmatmul.mubr.msk.bf16.vlgmr.msra.gmra.mrb[44].mxu1 %vm280_vm3, %v7539_v14  ;;  %v8113_v4 = vpop.permute.xlu0 %7124  ;;  %v2056_v29 = vpack.c.bf16 %v2041_v22, %v2039_v28 }
 0x26d   : > { %6547 = vmatpush3.bf16.msra.mxu1 %v1823_v56  ;;  %6548 = vmatprep.mubr.msk.bf16.mxu1 %vm7640_vm0, %v7637_v0  ;;  %v2050_v58 = vsel %vm838_vm6, %v7112_v17, %v7121_v12  ;;  %v7127_v26 = vunpack.i.h.bf16 %v8113_v4  ;;  %v7126_v6 = vunpack.i.l.bf16 %v8113_v4  ;;  %v2038_v41 = vsel %vm838_vm6, %v7121_v12, %v7111_v25  ;;  %v7545_v17 = vld [vmem:[%s8960_s1 + $0x88] sm:$0xff]  }
 0x26e   : > { %6552 = vmatprep.subr.bf16.mxu1 %v7637_v0  ;;  %v8117_v13 = vpop.permute.xlu1 %7129  ;;  %v2040_v43 = vsel %vm838_vm6, %v7122_v9, %v7116_v57 }
 0x26f   : > { %v7132_v27 = vunpack.i.h.bf16 %v8117_v13  ;;  %v7131_v38 = vunpack.i.l.bf16 %v8117_v13  ;;  %v2055_v49 = vpack.c.bf16 %v2040_v43, %v2038_v41  ;;  %v2169_v50 = vsel %vm969_vm7, %v7126_v6, %v7127_v26 }
 0x270   : > { %v8130_v19 = vpop.permute.xlu0 %7134 }
 0x271   : > { %v7137_v16 = vunpack.i.h.bf16 %v8130_v19  ;;  %v7136_v20 = vunpack.i.l.bf16 %v8130_v19  ;;  %v2171_v47 = vsel %vm969_vm7, %v7131_v38, %v7132_v27 }
 0x272   : > { %v8140_v3 = vpop.permute.xlu1 %7139  ;;  %v2186_v53 = vpack.c.bf16 %v2171_v47, %v2169_v50 }
 0x273   : > { %6207 = vmatmul.mubr.msk.bf16.vlgmr.msra.gmra.mrb[4].mxu0 %vm280_vm3, %v7539_v14  ;;  %v2181_v30 = vsel %vm969_vm7, %v7132_v27, %v7137_v16  ;;  %v2180_v33 = vsel %vm969_vm7, %v7127_v26, %v7136_v20  ;;  %v7142_v23 = vunpack.i.h.bf16 %v8140_v3  ;;  %v7141_v7 = vunpack.i.l.bf16 %v8140_v3 }
 0x274   : > { %1833 = vmatpush1.bf16.msra.mxu0 %v1821_v8  ;;  %6549 = vmatmul.mubr.msk.bf16.vlgmr.msra.gmra.mrb[48].mxu1 %vm280_vm3, %v7540_v62  ;;  %v8146_v24 = vpop.permute.xlu0 %7144  ;;  %v2187_v36 = vpack.c.bf16 %v2181_v30, %v2180_v33  ;;  %v2170_v15 = vsel %vm969_vm7, %v7137_v16, %v7131_v38 }
 0x275   : > { %6553 = vmatpush3.bf16.msra.mxu1 %v1927_v60  ;;  %1936 = vmatprep.subr.bf16.mxu0 %v1926_v31  ;;  %v2051_v60 = vsel %vm838_vm6, %v7117_v18, %v7122_v9  ;;  %v7146_v56 = vunpack.i.l.bf16 %v8146_v24  ;;  %v2299_v12 = vsel %vm1100_vm8, %v7141_v7, %v7142_v23 }
 0x276   : > { %6554 = vmatprep.mubr.msk.bf16.mxu1 %vm7640_vm0, %v7637_v0  ;;  %6558 = vmatprep.subr.bf16.mxu1 %v7637_v0  ;;  %v2057_v31 = vpack.c.bf16 %v2051_v60, %v2050_v58  ;;  %v8164_v35 = vpop.permute.xlu1 %7149 }
 0x277   : > { %1864 = vmatprep.mubr.bf16.mxu0 %v7641_v10  ;;  %v7152_v39 = vunpack.i.h.bf16 %v8164_v35  ;;  %v7151_v40 = vunpack.i.l.bf16 %v8164_v35 }
 0x278   : > { %v8166_v37 = vpop.permute.xlu0 %7154 }
 0x279   : > { %v2310_v44 = vsel %vm1100_vm8, %v7142_v23, %v7151_v40  ;;  %v7157_v2 = vunpack.i.h.bf16 %v8166_v37  ;;  %v7156_v19 = vunpack.i.l.bf16 %v8166_v37  ;;  %v2298_v57 = vsel %vm1100_vm8, %v7151_v40, %v7141_v7 }
 0x27a   : > { %v7160_v52 = vpop.permute.xlu1 %7159  ;;  %v2300_v58 = vsel %vm1100_vm8, %v7152_v39, %v7146_v56 }
 0x27b   : > { %v7162_v14 = vunpack.i.h.bf16 %v7160_v52  ;;  %v7161_v18 = vunpack.i.l.bf16 %v7160_v52  ;;  %v2429_v25 = vsel %vm1231_vm9, %v7156_v19, %v7157_v2 }
 0x27c   : > { %6555 = vmatmul.mubr.msk.bf16.vlgmr.msra.gmra.mrb[52].mxu1 %vm280_vm3, %v7541_v21  ;;  %v7165_v48 = vpop.permute.xlu0 %7164 }
 0x27d   : > { %6559 = vmatpush3.bf16.msra.mxu1 %v2057_v31  ;;  %6560 = vmatprep.mubr.msk.bf16.mxu1 %vm7640_vm0, %v7637_v0  ;;  %v7167_v54 = vunpack.i.h.bf16 %v7165_v48  ;;  %v7166_v55 = vunpack.i.l.bf16 %v7165_v48  ;;  %v2431_v60 = vsel %vm1231_vm9, %v7161_v18, %v7162_v14 }
 0x27e   : > { %6564 = vmatprep.subr.bf16.mxu1 %v7637_v0  ;;  %v2446_v31 = vpack.c.bf16 %v2431_v60, %v2429_v25 }
 0x27f   : > { %6212 = vmatmul.mubr.msk.bf16.vlgmr.msra.gmra.mrb[4].mxu0 %vm280_vm3, %v7540_v62  ;;  %v2441_v59 = vsel %vm1231_vm9, %v7162_v14, %v7167_v54  ;;  %v2440_v61 = vsel %vm1231_vm9, %v7157_v2, %v7166_v55  ;;  %v2168_v62 = vsel %vm969_vm7, %v7136_v20, %v7126_v6  ;;  %v2430_v3 = vsel %vm1231_vm9, %v7167_v54, %v7161_v18 }
 0x280   : > { %1937 = vmatpush1.bf16.msra.mxu0 %v1925_v32  ;;  %1968 = vmatprep.mubr.bf16.mxu0 %v7641_v10  ;;  %v7147_v32 = vunpack.i.h.bf16 %v8146_v24  ;;  %v2447_v4 = vpack.c.bf16 %v2441_v59, %v2440_v61  ;;  %v2185_v9 = vpack.c.bf16 %v2170_v15, %v2168_v62  ;;  %v2428_v16 = vsel %vm1231_vm9, %v7166_v55, %v7156_v19 }
 0x281   : > { %2066 = vmatprep.subr.bf16.mxu0 %v2056_v29  ;;  %v2445_v20 = vpack.c.bf16 %v2430_v3, %v2428_v16 }
 0x282   : > { %v2311_v45 = vsel %vm1100_vm8, %v7147_v32, %v7152_v39  ;;  %v2301_v8 = vsel %vm1100_vm8, %v7146_v56, %v7147_v32 }
 0x283   : > { %v2317_v51 = vpack.c.bf16 %v2311_v45, %v2310_v44  ;;  %v2316_v13 = vpack.c.bf16 %v2301_v8, %v2299_v12 }
 0x284   : > { %6561 = vmatmul.mubr.msk.bf16.vlgmr.msra.gmra.mrb[56].mxu1 %vm280_vm3, %v7542_v34 }
 0x285   : > { %6565 = vmatpush3.bf16.msra.mxu1 %v2187_v36  ;;  %6566 = vmatprep.mubr.msk.bf16.mxu1 %vm7640_vm0, %v7637_v0 }
 0x286   : > { %6570 = vmatprep.subr.bf16.mxu1 %v7637_v0 }
 0x28b   : > { %6217 = vmatmul.mubr.msk.bf16.vlgmr.msra.gmra.mrb[4].mxu0 %vm280_vm3, %v7541_v21  ;;  %v2315_v21 = vpack.c.bf16 %v2300_v58, %v2298_v57  ;;  %v2552_v57 = vpop.permute.xlu1 %2551 }
 0x28c   : > { %2067 = vmatpush1.bf16.msra.mxu0 %v2055_v49  ;;  %6567 = vmatmul.mubr.msk.bf16.vlgmr.msra.gmra.mrb[60].mxu1 %vm280_vm3, %v7543_v46 }
 0x28d   : > { %6571 = vmatpush3.bf16.msra.mxu1 %v2317_v51  ;;  %2196 = vmatprep.subr.bf16.mxu0 %v2186_v53 }
 0x28e   : > { %6572 = vmatprep.mubr.msk.bf16.mxu1 %vm7640_vm0, %v7637_v0  ;;  %6576 = vmatprep.subr.bf16.mxu1 %v7637_v0 }
 0x28f   : > { %2098 = vmatprep.mubr.bf16.mxu0 %v7641_v10 }
 0x294   : > { %6573 = vmatmul.mubr.msk.bf16.vlgmr.msra.gmra.mrb[64].mxu1 %vm280_vm3, %v7544_v5 }
 0x295   : > { %6577 = vmatpush3.bf16.msra.mxu1 %v2447_v4  ;;  %6578 = vmatprep.mubr.msk.bf16.mxu1 %vm7640_vm0, %v7637_v0 }
 0x296   : > { %6582 = vmatprep.subr.bf16.mxu1 %v7637_v0 }
 0x297   : > { %6222 = vmatmul.mubr.msk.bf16.vlgmr.msra.gmra.mrb[4].mxu0 %vm280_vm3, %v7542_v34 }
 0x298   : > { %2197 = vmatpush1.bf16.msra.mxu0 %v2185_v9  ;;  %2228 = vmatprep.mubr.bf16.mxu0 %v7641_v10 }
 0x299   : > { %2326 = vmatprep.subr.bf16.mxu0 %v2316_v13 }
 0x29c   : > { %6579 = vmatmul.mubr.msk.bf16.vlgmr.msra.gmra.mrb[68].mxu1 %vm280_vm3, %v7545_v17 }
 0x29d   : > { %6584 = vmatprep.mubr.msk.bf16.mxu1 %vm7640_vm0, %v7637_v0 }
 0x2a3   : > { %6227 = vmatmul.mubr.msk.bf16.vlgmr.msra.gmra.mrb[4].mxu0 %vm280_vm3, %v7543_v46 }
 0x2a4   : > { %2327 = vmatpush1.bf16.msra.mxu0 %v2315_v21  ;;  %2358 = vmatprep.mubr.bf16.mxu0 %v7641_v10 }
 0x2a5   : > { %2456 = vmatprep.subr.bf16.mxu0 %v2446_v31  ;;  %v2557_v31 = vpop.permute.xlu0 %2556 }
 0x2af   : > { %6232 = vmatmul.mubr.msk.bf16.vlgmr.msra.gmra.mrb[4].mxu0 %vm280_vm3, %v7544_v5 }
 0x2b0   : > { %2457 = vmatpush1.bf16.msra.mxu0 %v2445_v20  ;;  %2488 = vmatprep.mubr.bf16.mxu0 %v7641_v10 }
 0x2bb   : > { %6237 = vmatmul.mubr.msk.bf16.vlgmr.msra.gmra.mrb[4].mxu0 %vm280_vm3, %v7545_v17 }
 0x2bc   : > { %2699 = vmatprep.mubr.bf16.mxu0 %v7641_v10 }
 0x32f   : > { %v1563_v22 = vpop.f32.mrb[36].mxu1 }
 0x330   : > { %v6532_v24 = vpop.f32.mrb[37].mxu1 }
 0x331   : > { %v1566_v26 = vpop.f32.mrb[38].mxu1 }
 0x332   : > { %v6533_v27 = vpop.f32.mrb[39].mxu1 }
 0x337   : > { %v1655_v28 = vpop.f32.mrb[40].mxu1 }
 0x338   : > { %v1656_v29 = vadd.f32 %v1655_v28, %v1563_v22  ;;  %v6538_v30 = vpop.f32.mrb[41].mxu1 }
 0x339   : > { %v1658_v33 = vpop.f32.mrb[42].mxu1 }
 0x33a   : > { %v1659_v34 = vadd.f32 %v1658_v33, %v1566_v26  ;;  %v6539_v35 = vpop.f32.mrb[43].mxu1 }
 0x33f   : > { %v1779_v36 = vpop.f32.mrb[44].mxu1 }
 0x340   : > { %v1788_v37 = vadd.f32 %v1779_v36, %v1656_v29  ;;  %v6544_v38 = vpop.f32.mrb[45].mxu1 }
 0x341   : > { %v1782_v39 = vpop.f32.mrb[46].mxu1 }
 0x342   : > { %v1791_v40 = vadd.f32 %v1782_v39, %v1659_v34  ;;  %v6545_v6 = vpop.f32.mrb[47].mxu1 }
 0x347   : > { %v1909_v23 = vpop.f32.mrb[48].mxu1 }
 0x348   : > { %v1918_v32 = vadd.f32 %v1909_v23, %v1788_v37  ;;  %v6550_v41 = vpop.f32.mrb[49].mxu1 }
 0x349   : > { %v1912_v43 = vpop.f32.mrb[50].mxu1 }
 0x34a   : > { %v1921_v44 = vadd.f32 %v1912_v43, %v1791_v40  ;;  %v6551_v45 = vpop.f32.mrb[51].mxu1 }
 0x34f   : > { %v2013_v46 = vpop.f32.mrb[52].mxu1 }
 0x350   : > { %v2022_v47 = vadd.f32 %v2013_v46, %v1918_v32  ;;  %v6556_v48 = vpop.f32.mrb[53].mxu1 }
 0x351   : > { %v2016_v49 = vpop.f32.mrb[54].mxu1 }
 0x352   : > { %v2025_v50 = vadd.f32 %v2016_v49, %v1921_v44  ;;  %v6557_v51 = vpop.f32.mrb[55].mxu1 }
 0x357   : > { %v2143_v52 = vpop.f32.mrb[56].mxu1 }
 0x358   : > { %v2152_v53 = vadd.f32 %v2143_v52, %v2022_v47  ;;  %v6562_v54 = vpop.f32.mrb[57].mxu1 }
 0x359   : > { %v2146_v55 = vpop.f32.mrb[58].mxu1 }
 0x35a   : > { %v2155_v2 = vadd.f32 %v2146_v55, %v2025_v50  ;;  %v6563_v14 = vpop.f32.mrb[59].mxu1 }
 0x35b   : > { %v6286_v14 = vld [vmem:[%s8961_s2 + $0x20] sm:$0xff] }
 0x35f   : > { %v2273_v56 = vpop.f32.mrb[60].mxu1 }
 0x360   : > { %v2282_v59 = vadd.f32 %v2273_v56, %v2152_v53  ;;  %v6568_v61 = vpop.f32.mrb[61].mxu1  ;;  %v6287_v56 = vld [vmem:[%s8961_s2 + $0x28] sm:$0xff] }
 0x361   : > { %v2276_v5 = vpop.f32.mrb[62].mxu1 }
 0x362   : > { %v2285_v7 = vadd.f32 %v2276_v5, %v2155_v2  ;;  %v6569_v15 = vpop.f32.mrb[63].mxu1 }
 0x367   : > { %v2403_v62 = vpop.f32.mrb[64].mxu1 }
 0x368   : > { %v2412_v4 = vadd.f32 %v2403_v62, %v2282_v59  ;;  %v6574_v8 = vpop.f32.mrb[65].mxu1 }
 0x369   : > { %v2406_v9 = vpop.f32.mrb[66].mxu1 }
 0x36a   : > { %v2415_v12 = vadd.f32 %v2406_v9, %v2285_v7  ;;  %v6575_v13 = vpop.f32.mrb[67].mxu1 }
 0x36f   : > { %v2533_v17 = vpop.f32.mrb[68].mxu1 }
 0x370   : > { %v2542_v18 = vadd.f32 %v2533_v17, %v2412_v4  ;;  %v6580_v19 = vpop.f32.mrb[69].mxu1 }
 0x371   : > { %v2536_v58 = vpop.f32.mrb[70].mxu1 }
 0x372   : > { %v2561_v60 = vadd.f32 %v2552_v57, %v2542_v18  ;;  %v2545_v21 = vadd.f32 %v2536_v58, %v2415_v12  ;;  %v6581_v25 = vpop.f32.mrb[71].mxu1 }
 0x374   : > { %vm2567_vm10 = vcmp.ge.f32.partialorder %v2561_v60, 0.0  ;;  %v2573_v3 = vmul.f32 0.01, %v2561_v60  ;;  %v2564_v16 = vadd.f32 %v2557_v31, %v2545_v21 }
 0x376   : > { %v2579_v20 = vsel %vm2567_vm10, %v2561_v60, %v2573_v3  ;;  %vm2570_vm11 = vcmp.ge.f32.partialorder %v2564_v16, 0.0  ;;  %v2576_v22 = vmul.f32 0.01, %v2564_v16 }
 0x377   : > { %v8231_v26 = vmul.f32 %v2579_v20, %v7982_v1 }
 0x378   : > { %v2582_v24 = vsel %vm2570_vm11, %v2564_v16, %v2576_v22 }
 0x379   : > { %v8234_v27 = vmul.f32 %v2582_v24, %v7982_v1  ;;  %v7546_v24 = vld [vmem:[%s8960_s1 + $0x98] sm:$0xff]  }
 0x37b   : > { %v7178_v28 = vpack.i.bf16 %v8234_v27, %v8231_v26  ;;  %v3108_v29 = vpack.c.bf16 %v8234_v27, %v8231_v26 }
 0x38e   : > { %v2490_v30 = vpop.f32.mrb[4].mxu0 }
 0x38f   : > { %v2559_v33 = vadd.f32 %v2552_v57, %v2490_v30  ;;  %v2492_v34 = vpop.f32.mrb[5].mxu0 }
 0x390   : > { %v2560_v35 = vadd.f32 %v2552_v57, %v2492_v34  ;;  %v2494_v36 = vpop.f32.mrb[6].mxu0 }
 0x391   : > { %vm2565_vm12 = vcmp.ge.f32.partialorder %v2559_v33, 0.0  ;;  %v2571_v37 = vmul.f32 0.01, %v2559_v33  ;;  %v2562_v38 = vadd.f32 %v2557_v31, %v2494_v36  ;;  %v2496_v39 = vpop.f32.mrb[7].mxu0 }
 0x392   : > { %vm2566_vm13 = vcmp.ge.f32.partialorder %v2560_v35, 0.0  ;;  %v2572_v40 = vmul.f32 0.01, %v2560_v35  ;;  %v2563_v6 = vadd.f32 %v2557_v31, %v2496_v39 }
 0x393   : > { %v2577_v23 = vsel %vm2565_vm12, %v2559_v33, %v2571_v37  ;;  %vm2568_vm14 = vcmp.ge.f32.partialorder %v2562_v38, 0.0  ;;  %v2574_v32 = vmul.f32 0.01, %v2562_v38 }
 0x394   : > { %v8241_v41 = vmul.f32 %v2577_v23, %v7996_v63  ;;  %v2578_v43 = vsel %vm2566_vm13, %v2560_v35, %v2572_v40  ;;  %vm2569_vm15 = vcmp.ge.f32.partialorder %v2563_v6, 0.0  ;;  %v2575_v44 = vmul.f32 0.01, %v2563_v6 }
 0x395   : > { %v8244_v45 = vmul.f32 %v2578_v43, %v7998_v11  ;;  %v2580_v46 = vsel %vm2568_vm14, %v2562_v38, %v2574_v32 }
 0x396   : > { %v8247_v47 = vmul.f32 %v2580_v46, %v7996_v63  ;;  %v2581_v48 = vsel %vm2569_vm15, %v2563_v6, %v2575_v44 }
 0x397   : > { %v8250_v49 = vmul.f32 %v2581_v48, %v7998_v11  ;;  %v7168_v50 = vpack.i.bf16 %v8244_v45, %v8241_v41  ;;  %v7228_v51 = vpack.i.bf16 %v8231_v26, %v8244_v45 }
 0x398   : > { %v7238_v52 = vpack.i.bf16 %v8247_v47, %v8241_v41  ;;  %v3106_v2 = vpack.c.bf16 %v8247_v47, %v8241_v41 }
 0x399   : > { %7169 = vrot.lane.b32.xlu1 %v7168_v50, %s7638_s6  ;;  %v7173_v53 = vpack.i.bf16 %v8250_v49, %v8247_v47  ;;  %v7233_v54 = vpack.i.bf16 %v8234_v27, %v8250_v49  ;;  %v3107_v55 = vpack.c.bf16 %v8250_v49, %v8244_v45  ;;  %v7550_v45 = vld [vmem:[%s8960_s1 + $0xb0] sm:$0xff]  }
 0x39b   : > { %7174 = vrot.lane.b32.xlu0 %v7173_v53, %s7638_s6 }
 0x39d   : > { %7179 = vrot.lane.b32.xlu1 %v7178_v28, %s7638_s6 }
 0x39f   : > { %7184 = vrot.lane.b32.xlu0 %v7168_v50, %s7639_s7 }
 0x3a1   : > { %7189 = vrot.lane.b32.xlu1 %v7173_v53, %s7639_s7 }
 0x3a3   : > { %7194 = vrot.lane.b32.xlu0 %v7178_v28, %s7639_s7 }
 0x3a5   : > { %7199 = vrot.lane.b32.xlu1 %v7168_v50, %s7642_s8 }
 0x3a7   : > { %7204 = vrot.lane.b32.xlu0 %v7173_v53, %s7642_s8 }
 0x3a9   : > { %7209 = vrot.lane.b32.xlu1 %v7178_v28, %s7642_s8 }
 0x3ab   : > { %7214 = vrot.lane.b32.xlu0 %v7168_v50, %s7643_s9 }
 0x3ad   : > { %7219 = vrot.lane.b32.xlu1 %v7173_v53, %s7643_s9 }
 0x3af   : > { %7224 = vrot.lane.b32.xlu0 %v7178_v28, %s7643_s9 }
 0x3b1   : > { %7229 = vrot.lane.b32.xlu1 %v7228_v51, %s7644_s10 }
 0x3b3   : > { %7234 = vrot.lane.b32.xlu0 %v7233_v54, %s7644_s10 }
 0x3b5   : > { %7239 = vrot.lane.b32.xlu1 %v7238_v52, %s7644_s10 }
 0x3b7   : > { %7244 = vrot.lane.b32.xlu0 %v7228_v51, %s7645_s11 }
 0x3b9   : > { %7249 = vrot.lane.b32.xlu1 %v7233_v54, %s7645_s11 }
 0x3bb   : > { %7254 = vrot.lane.b32.xlu0 %v7238_v52, %s7645_s11 }
 0x3bd   : > { %7259 = vrot.lane.b32.xlu1 %v7228_v51, %s7646_s12 }
 0x3bf   : > { %7264 = vrot.lane.b32.xlu0 %v7233_v54, %s7646_s12 }
 0x3c1   : > { %7269 = vrot.lane.b32.xlu1 %v7238_v52, %s7646_s12 }
 0x3c3   : > { %7274 = vrot.lane.b32.xlu0 %v7228_v51, %s7647_s13 }
 0x3c5   : > { %7279 = vrot.lane.b32.xlu1 %v7233_v54, %s7647_s13 }
 0x3c7   : > { %7284 = vrot.lane.b32.xlu0 %v7238_v52, %s7647_s13 }
 0x3c9   : > { %3732 = vperm.xlu1 %7047, %v6286_v14  }
 0x3cb   : > { %3737 = vperm.xlu0 %7046, %v6287_v56  }
 0x40b   : > { %v7170_v59 = vpop.permute.xlu1 %7169 }
 0x40c   : > { %v7172_v61 = vunpack.i.h.bf16 %v7170_v59  ;;  %v7171_v5 = vunpack.i.l.bf16 %v7170_v59 }
 0x40d   : > { %v7175_v7 = vpop.permute.xlu0 %7174 }
 0x40e   : > { %v7177_v15 = vunpack.i.h.bf16 %v7175_v7  ;;  %v7176_v62 = vunpack.i.l.bf16 %v7175_v7  ;;  %v2641_v12 = vsel %vm256_vm1, %v7171_v5, %v7172_v61 }
 0x40f   : > { %v7180_v4 = vpop.permute.xlu1 %7179 }
 0x410   : > { %v7182_v8 = vunpack.i.h.bf16 %v7180_v4  ;;  %v7181_v9 = vunpack.i.l.bf16 %v7180_v4  ;;  %v2643_v13 = vsel %vm256_vm1, %v7176_v62, %v7177_v15 }
 0x411   : > { %v7185_v17 = vpop.permute.xlu0 %7184  ;;  %v2657_v18 = vpack.c.bf16 %v2643_v13, %v2641_v12 }
 0x412   : > { %v2642_v19 = vsel %vm256_vm1, %v7172_v61, %v7181_v9  ;;  %v2644_v57 = vsel %vm256_vm1, %v7177_v15, %v7182_v8  ;;  %v2651_v58 = vsel %vm256_vm1, %v7181_v9, %v7171_v5  ;;  %v2652_v60 = vsel %vm256_vm1, %v7182_v8, %v7176_v62  ;;  %v7547_v61 = vld [vmem:[%s8960_s1 + $0x90] sm:$0xff]  }
 0x413   : > { %v2656_v21 = vpack.c.bf16 %v2652_v60, %v2651_v58  ;;  %v2658_v25 = vpack.c.bf16 %v2644_v57, %v2642_v19  ;;  %v7187_v31 = vunpack.i.h.bf16 %v7185_v17  ;;  %v7186_v3 = vunpack.i.l.bf16 %v7185_v17  ;;  %v7190_v16 = vpop.permute.xlu1 %7189  ;;  %2667 = vmatprep.subr.bf16.mxu0 %v2657_v18 }
 0x414   : > { %v7192_v20 = vunpack.i.h.bf16 %v7190_v16  ;;  %v7191_v22 = vunpack.i.l.bf16 %v7190_v16  ;;  %v7548_v16 = vld [vmem:[%s8960_s1 + $0xa0] sm:$0xff]  }
 0x415   : > { %v7195_v28 = vpop.permute.xlu0 %7194  ;;  %2668 = vmatpush1.bf16.msra.mxu0 %v2656_v21  ;;  %6583 = vmatpush3.bf16.msra.mxu1 %v2658_v25  ;;  %v2609_v34 = vsel %vm224_vm2, %v7186_v3, %v7187_v31 }
 0x416   : > { %v7197_v30 = vunpack.i.h.bf16 %v7195_v28  ;;  %v7196_v33 = vunpack.i.l.bf16 %v7195_v28  ;;  %v2611_v35 = vsel %vm224_vm2, %v7191_v22, %v7192_v20  ;;  %6588 = vmatprep.subr.bf16.mxu1 %v7637_v0 }
 0x417   : > { %v7200_v36 = vpop.permute.xlu1 %7199  ;;  %v2625_v37 = vpack.c.bf16 %v2611_v35, %v2609_v34  ;;  %v7549_v34 = vld [vmem:[%s8960_s1 + $0xa8] sm:$0xff]  }
 0x418   : > { %v2612_v38 = vsel %vm224_vm2, %v7192_v20, %v7197_v30  ;;  %v2620_v39 = vsel %vm224_vm2, %v7197_v30, %v7191_v22  ;;  %v2610_v40 = vsel %vm224_vm2, %v7187_v31, %v7196_v33  ;;  %v2619_v6 = vsel %vm224_vm2, %v7196_v33, %v7186_v3  ;;  %6246 = vmatmul.mubr.msk.bf16.vlgmr.msra.gmra.mrb[8].mxu0 %vm280_vm3, %v7546_v24 }
 0x419   : > { %v2624_v23 = vpack.c.bf16 %v2620_v39, %v2619_v6  ;;  %v2626_v32 = vpack.c.bf16 %v2612_v38, %v2610_v40  ;;  %v7202_v43 = vunpack.i.h.bf16 %v7200_v36  ;;  %v7201_v44 = vunpack.i.l.bf16 %v7200_v36  ;;  %6585 = vmatmul.mubr.msk.bf16.vlgmr.msra.gmra.mrb[72].mxu1 %vm280_vm3, %v7546_v24  ;;  %v7205_v46 = vpop.permute.xlu0 %7204  ;;  %2759 = vmatprep.subr.bf16.mxu0 %v2625_v37 }
 0x41a   : > { %v7207_v48 = vunpack.i.h.bf16 %v7205_v46  ;;  %v7206_v50 = vunpack.i.l.bf16 %v7205_v46  ;;  %6590 = vmatprep.mubr.msk.bf16.mxu1 %vm7640_vm0, %v7637_v0  ;;  %2791 = vmatprep.mubr.bf16.mxu0 %v7641_v10 }
 0x41b   : > { %v7210_v51 = vpop.permute.xlu1 %7209  ;;  %2760 = vmatpush1.bf16.msra.mxu0 %v2624_v23  ;;  %6589 = vmatpush3.bf16.msra.mxu1 %v2626_v32  ;;  %v2857_v54 = vsel %vm474_vm4, %v7201_v44, %v7202_v43 }
 0x41c   : > { %v7212_v52 = vunpack.i.h.bf16 %v7210_v51  ;;  %v7211_v53 = vunpack.i.l.bf16 %v7210_v51  ;;  %v2859_v14 = vsel %vm474_vm4, %v7206_v50, %v7207_v48  ;;  %6594 = vmatprep.subr.bf16.mxu1 %v7637_v0 }
 0x41d   : > { %v7215_v56 = vpop.permute.xlu0 %7214  ;;  %v2873_v59 = vpack.c.bf16 %v2859_v14, %v2857_v54 }
 0x41e   : > { %v2858_v5 = vsel %vm474_vm4, %v7202_v43, %v7211_v53  ;;  %v2860_v7 = vsel %vm474_vm4, %v7207_v48, %v7212_v52  ;;  %v7217_v62 = vunpack.i.h.bf16 %v7215_v56  ;;  %v7216_v4 = vunpack.i.l.bf16 %v7215_v56  ;;  %v7551_v56 = vld [vmem:[%s8960_s1 + $0xb8] sm:$0xff]  }
 0x41f   : > { %v2874_v15 = vpack.c.bf16 %v2860_v7, %v2858_v5  ;;  %v7220_v8 = vpop.permute.xlu1 %7219  ;;  %2883 = vmatprep.subr.bf16.mxu0 %v2873_v59  ;;  %v2867_v9 = vsel %vm474_vm4, %v7211_v53, %v7201_v44  ;;  %v2868_v12 = vsel %vm474_vm4, %v7212_v52, %v7206_v50 }
 0x420   : > { %v7222_v13 = vunpack.i.h.bf16 %v7220_v8  ;;  %v7221_v17 = vunpack.i.l.bf16 %v7220_v8  ;;  %v2987_v58 = vsel %vm605_vm5, %v7216_v4, %v7217_v62  ;;  %v2872_v21 = vpack.c.bf16 %v2868_v12, %v2867_v9 }
 0x421   : > { %6591 = vmatmul.mubr.msk.bf16.vlgmr.msra.gmra.mrb[76].mxu1 %vm280_vm3, %v7547_v61  ;;  %v7225_v18 = vpop.permute.xlu0 %7224 }
 0x422   : > { %v7227_v19 = vunpack.i.h.bf16 %v7225_v18  ;;  %v7226_v57 = vunpack.i.l.bf16 %v7225_v18  ;;  %6595 = vmatpush3.bf16.msra.mxu1 %v2874_v15  ;;  %v2989_v60 = vsel %vm605_vm5, %v7221_v17, %v7222_v13  ;;  %6596 = vmatprep.mubr.msk.bf16.mxu1 %vm7640_vm0, %v7637_v0 }
 0x423   : > { %v3003_v25 = vpack.c.bf16 %v2989_v60, %v2987_v58  ;;  %6600 = vmatprep.subr.bf16.mxu1 %v7637_v0  ;;  %v8340_v22 = vpop.permute.xlu1 %7229 }
 0x424   : > { %v2990_v31 = vsel %vm605_vm5, %v7222_v13, %v7227_v19  ;;  %v2988_v3 = vsel %vm605_vm5, %v7217_v62, %v7226_v57  ;;  %6249 = vmatmul.mubr.msk.bf16.vlgmr.msra.gmra.mrb[8].mxu0 %vm280_vm3, %v7547_v61  ;;  %v2998_v28 = vsel %vm605_vm5, %v7227_v19, %v7221_v17  ;;  %v2997_v30 = vsel %vm605_vm5, %v7226_v57, %v7216_v4  ;;  %v7552_v13 = vld [vmem:[%s8960_s1 + $0xc0] sm:$0xff]  }
 0x425   : > { %2884 = vmatpush1.bf16.msra.mxu0 %v2872_v21  ;;  %2915 = vmatprep.mubr.bf16.mxu0 %v7641_v10  ;;  %v3004_v20 = vpack.c.bf16 %v2990_v31, %v2988_v3  ;;  %v8342_v24 = vpop.permute.xlu0 %7234  ;;  %v3002_v36 = vpack.c.bf16 %v2998_v28, %v2997_v30  ;;  %v7232_v40 = vunpack.i.h.bf16 %v8340_v22  ;;  %v7231_v49 = vunpack.i.l.bf16 %v8340_v22  ;;  %v7553_v28 = vld [vmem:[%s8960_s1 + $0xc8] sm:$0xff]  }
 0x426   : > { %3013 = vmatprep.subr.bf16.mxu0 %v3003_v25  ;;  %v7237_v6 = vunpack.i.h.bf16 %v8342_v24  ;;  %v7236_v26 = vunpack.i.l.bf16 %v8342_v24 }
 0x427   : > { %v7240_v33 = vpop.permute.xlu1 %7239  ;;  %v3220_v52 = vsel %vm838_vm6, %v7231_v49, %v7232_v40 }
 0x428   : > { %v7242_v37 = vunpack.i.h.bf16 %v7240_v33  ;;  %v7241_v38 = vunpack.i.l.bf16 %v7240_v33  ;;  %v3222_v46 = vsel %vm838_vm6, %v7236_v26, %v7237_v6 }
 0x429   : > { %6597 = vmatmul.mubr.msk.bf16.vlgmr.msra.gmra.mrb[80].mxu1 %vm280_vm3, %v7548_v16  ;;  %v8353_v35 = vpop.permute.xlu0 %7244  ;;  %v3237_v53 = vpack.c.bf16 %v3222_v46, %v3220_v52 }
 0x42a   : > { %6601 = vmatpush3.bf16.msra.mxu1 %v3004_v20  ;;  %6602 = vmatprep.mubr.msk.bf16.mxu1 %vm7640_vm0, %v7637_v0  ;;  %v3231_v27 = vsel %vm838_vm6, %v7232_v40, %v7241_v38  ;;  %v7247_v50 = vunpack.i.h.bf16 %v8353_v35  ;;  %v7246_v41 = vunpack.i.l.bf16 %v8353_v35  ;;  %v3219_v4 = vsel %vm838_vm6, %v7241_v38, %v7231_v49  ;;  %v7554_v40 = vld [vmem:[%s8960_s1 + $0xd0] sm:$0xff]  }
 0x42b   : > { %6606 = vmatprep.subr.bf16.mxu1 %v7637_v0  ;;  %v8357_v39 = vpop.permute.xlu1 %7249  ;;  %v3221_v8 = vsel %vm838_vm6, %v7242_v37, %v7236_v26 }
 0x42c   : > { %v7252_v51 = vunpack.i.h.bf16 %v8357_v39  ;;  %v7251_v7 = vunpack.i.l.bf16 %v8357_v39  ;;  %v3236_v19 = vpack.c.bf16 %v3221_v8, %v3219_v4  ;;  %v3350_v57 = vsel %vm969_vm7, %v7246_v41, %v7247_v50 }
 0x42d   : > { %v8370_v23 = vpop.permute.xlu0 %7254 }
 0x42e   : > { %v7257_v43 = vunpack.i.h.bf16 %v8370_v23  ;;  %v7256_v44 = vunpack.i.l.bf16 %v8370_v23  ;;  %v3352_v17 = vsel %vm969_vm7, %v7251_v7, %v7252_v51 }
 0x42f   : > { %v8380_v32 = vpop.permute.xlu1 %7259  ;;  %v3367_v21 = vpack.c.bf16 %v3352_v17, %v3350_v57 }
 0x430   : > { %6254 = vmatmul.mubr.msk.bf16.vlgmr.msra.gmra.mrb[8].mxu0 %vm280_vm3, %v7548_v16  ;;  %v3362_v54 = vsel %vm969_vm7, %v7252_v51, %v7257_v43  ;;  %v3361_v14 = vsel %vm969_vm7, %v7247_v50, %v7256_v44  ;;  %v7262_v47 = vunpack.i.h.bf16 %v8380_v32  ;;  %v7261_v30 = vunpack.i.l.bf16 %v8380_v32 }
 0x431   : > { %3014 = vmatpush1.bf16.msra.mxu0 %v3002_v36  ;;  %6603 = vmatmul.mubr.msk.bf16.vlgmr.msra.gmra.mrb[84].mxu1 %vm280_vm3, %v7549_v34  ;;  %v8386_v48 = vpop.permute.xlu0 %7264  ;;  %v3368_v61 = vpack.c.bf16 %v3362_v54, %v3361_v14  ;;  %v3351_v33 = vsel %vm969_vm7, %v7257_v43, %v7251_v7 }
 0x432   : > { %6607 = vmatpush3.bf16.msra.mxu1 %v3108_v29  ;;  %3117 = vmatprep.subr.bf16.mxu0 %v3107_v55  ;;  %v3232_v29 = vsel %vm838_vm6, %v7237_v6, %v7242_v37  ;;  %v7266_v20 = vunpack.i.l.bf16 %v8386_v48  ;;  %v3480_v38 = vsel %vm1100_vm8, %v7261_v30, %v7262_v47 }
 0x433   : > { %6608 = vmatprep.mubr.msk.bf16.mxu1 %vm7640_vm0, %v7637_v0  ;;  %6612 = vmatprep.subr.bf16.mxu1 %v7637_v0  ;;  %v3238_v55 = vpack.c.bf16 %v3232_v29, %v3231_v27  ;;  %v8404_v59 = vpop.permute.xlu1 %7269 }
 0x434   : > { %3045 = vmatprep.mubr.bf16.mxu0 %v7641_v10  ;;  %v7272_v15 = vunpack.i.h.bf16 %v8404_v59  ;;  %v7271_v62 = vunpack.i.l.bf16 %v8404_v59 }
 0x435   : > { %v8406_v5 = vpop.permute.xlu0 %7274 }
 0x436   : > { %v3491_v9 = vsel %vm1100_vm8, %v7262_v47, %v7271_v62  ;;  %v7277_v3 = vunpack.i.h.bf16 %v8406_v5  ;;  %v7276_v23 = vunpack.i.l.bf16 %v8406_v5  ;;  %v3479_v26 = vsel %vm1100_vm8, %v7271_v62, %v7261_v30 }
 0x437   : > { %v7280_v60 = vpop.permute.xlu1 %7279  ;;  %v3481_v27 = vsel %vm1100_vm8, %v7272_v15, %v7266_v20 }
 0x438   : > { %v7282_v16 = vunpack.i.h.bf16 %v7280_v60  ;;  %v7281_v6 = vunpack.i.l.bf16 %v7280_v60  ;;  %v3610_v49 = vsel %vm1231_vm9, %v7276_v23, %v7277_v3 }
 0x439   : > { %6609 = vmatmul.mubr.msk.bf16.vlgmr.msra.gmra.mrb[88].mxu1 %vm280_vm3, %v7550_v45  ;;  %v7285_v18 = vpop.permute.xlu0 %7284 }
 0x43a   : > { %6613 = vmatpush3.bf16.msra.mxu1 %v3238_v55  ;;  %6614 = vmatprep.mubr.msk.bf16.mxu1 %vm7640_vm0, %v7637_v0  ;;  %v7287_v25 = vunpack.i.h.bf16 %v7285_v18  ;;  %v7286_v31 = vunpack.i.l.bf16 %v7285_v18  ;;  %v3612_v29 = vsel %vm1231_vm9, %v7281_v6, %v7282_v16 }
 0x43b   : > { %6618 = vmatprep.subr.bf16.mxu1 %v7637_v0  ;;  %v3627_v55 = vpack.c.bf16 %v3612_v29, %v3610_v49 }
 0x43c   : > { %6259 = vmatmul.mubr.msk.bf16.vlgmr.msra.gmra.mrb[8].mxu0 %vm280_vm3, %v7549_v34  ;;  %v3622_v22 = vsel %vm1231_vm9, %v7282_v16, %v7287_v25  ;;  %v3621_v24 = vsel %vm1231_vm9, %v7277_v3, %v7286_v31  ;;  %v3349_v34 = vsel %vm969_vm7, %v7256_v44, %v7246_v41  ;;  %v3611_v32 = vsel %vm1231_vm9, %v7287_v25, %v7281_v6 }
 0x43d   : > { %3118 = vmatpush1.bf16.msra.mxu0 %v3106_v2  ;;  %3149 = vmatprep.mubr.bf16.mxu0 %v7641_v10  ;;  %v7267_v2 = vunpack.i.h.bf16 %v8386_v48  ;;  %v3628_v35 = vpack.c.bf16 %v3622_v22, %v3621_v24  ;;  %v3366_v37 = vpack.c.bf16 %v3351_v33, %v3349_v34  ;;  %v3609_v43 = vsel %vm1231_vm9, %v7286_v31, %v7276_v23 }
 0x43e   : > { %3247 = vmatprep.subr.bf16.mxu0 %v3237_v53  ;;  %v3626_v44 = vpack.c.bf16 %v3611_v32, %v3609_v43 }
 0x43f   : > { %v3492_v12 = vsel %vm1100_vm8, %v7267_v2, %v7272_v15  ;;  %v3482_v36 = vsel %vm1100_vm8, %v7266_v20, %v7267_v2 }
 0x440   : > { %v3498_v58 = vpack.c.bf16 %v3492_v12, %v3491_v9  ;;  %v3497_v39 = vpack.c.bf16 %v3482_v36, %v3480_v38 }
 0x441   : > { %6615 = vmatmul.mubr.msk.bf16.vlgmr.msra.gmra.mrb[92].mxu1 %vm280_vm3, %v7551_v56 }
 0x442   : > { %6619 = vmatpush3.bf16.msra.mxu1 %v3368_v61  ;;  %6620 = vmatprep.mubr.msk.bf16.mxu1 %vm7640_vm0, %v7637_v0 }
 0x443   : > { %6624 = vmatprep.subr.bf16.mxu1 %v7637_v0 }
 0x448   : > { %6264 = vmatmul.mubr.msk.bf16.vlgmr.msra.gmra.mrb[8].mxu0 %vm280_vm3, %v7550_v45  ;;  %v3496_v45 = vpack.c.bf16 %v3481_v27, %v3479_v26  ;;  %v3733_v26 = vpop.permute.xlu1 %3732 }
 0x449   : > { %3248 = vmatpush1.bf16.msra.mxu0 %v3236_v19  ;;  %6621 = vmatmul.mubr.msk.bf16.vlgmr.msra.gmra.mrb[96].mxu1 %vm280_vm3, %v7552_v13 }
 0x44a   : > { %6625 = vmatpush3.bf16.msra.mxu1 %v3498_v58  ;;  %3377 = vmatprep.subr.bf16.mxu0 %v3367_v21 }
 0x44b   : > { %6626 = vmatprep.mubr.msk.bf16.mxu1 %vm7640_vm0, %v7637_v0  ;;  %6630 = vmatprep.subr.bf16.mxu1 %v7637_v0 }
 0x44c   : > { %3279 = vmatprep.mubr.bf16.mxu0 %v7641_v10 }
 0x451   : > { %6627 = vmatmul.mubr.msk.bf16.vlgmr.msra.gmra.mrb[100].mxu1 %vm280_vm3, %v7553_v28 }
 0x452   : > { %6631 = vmatpush3.bf16.msra.mxu1 %v3628_v35  ;;  %6632 = vmatprep.mubr.msk.bf16.mxu1 %vm7640_vm0, %v7637_v0 }
 0x453   : > { %6636 = vmatprep.subr.bf16.mxu1 %v7637_v0 }
 0x454   : > { %6269 = vmatmul.mubr.msk.bf16.vlgmr.msra.gmra.mrb[8].mxu0 %vm280_vm3, %v7551_v56 }
 0x455   : > { %3378 = vmatpush1.bf16.msra.mxu0 %v3366_v37  ;;  %3409 = vmatprep.mubr.bf16.mxu0 %v7641_v10 }
 0x456   : > { %3507 = vmatprep.subr.bf16.mxu0 %v3497_v39 }
 0x459   : > { %6633 = vmatmul.mubr.msk.bf16.vlgmr.msra.gmra.mrb[104].mxu1 %vm280_vm3, %v7554_v40 }
 0x45a   : > { %6638 = vmatprep.mubr.msk.bf16.mxu1 %vm7640_vm0, %v7637_v0 }
 0x460   : > { %6274 = vmatmul.mubr.msk.bf16.vlgmr.msra.gmra.mrb[8].mxu0 %vm280_vm3, %v7552_v13 }
 0x461   : > { %3508 = vmatpush1.bf16.msra.mxu0 %v3496_v45  ;;  %3539 = vmatprep.mubr.bf16.mxu0 %v7641_v10 }
 0x462   : > { %3637 = vmatprep.subr.bf16.mxu0 %v3627_v55  ;;  %v3738_v55 = vpop.permute.xlu0 %3737 }
 0x46c   : > { %6279 = vmatmul.mubr.msk.bf16.vlgmr.msra.gmra.mrb[8].mxu0 %vm280_vm3, %v7553_v28 }
 0x46d   : > { %3638 = vmatpush1.bf16.msra.mxu0 %v3626_v44  ;;  %3669 = vmatprep.mubr.bf16.mxu0 %v7641_v10 }
 0x478   : > { %6284 = vmatmul.mubr.msk.bf16.vlgmr.msra.gmra.mrb[8].mxu0 %vm280_vm3, %v7554_v40 }
 0x479   : > { %3880 = vmatprep.mubr.bf16.mxu0 %v7641_v10 }
 0x4ec   : > { %v2744_v46 = vpop.f32.mrb[72].mxu1 }
 0x4ed   : > { %v6586_v48 = vpop.f32.mrb[73].mxu1 }
 0x4ee   : > { %v2747_v50 = vpop.f32.mrb[74].mxu1 }
 0x4ef   : > { %v6587_v51 = vpop.f32.mrb[75].mxu1 }
 0x4f4   : > { %v2836_v52 = vpop.f32.mrb[76].mxu1 }
 0x4f5   : > { %v2837_v53 = vadd.f32 %v2836_v52, %v2744_v46  ;;  %v6592_v54 = vpop.f32.mrb[77].mxu1 }
 0x4f6   : > { %v2839_v14 = vpop.f32.mrb[78].mxu1 }
 0x4f7   : > { %v2840_v56 = vadd.f32 %v2839_v14, %v2747_v50  ;;  %v6593_v59 = vpop.f32.mrb[79].mxu1 }
 0x4fc   : > { %v2960_v61 = vpop.f32.mrb[80].mxu1 }
 0x4fd   : > { %v2969_v5 = vadd.f32 %v2960_v61, %v2837_v53  ;;  %v6598_v7 = vpop.f32.mrb[81].mxu1 }
 0x4fe   : > { %v2963_v15 = vpop.f32.mrb[82].mxu1 }
 0x4ff   : > { %v2972_v62 = vadd.f32 %v2963_v15, %v2840_v56  ;;  %v6599_v41 = vpop.f32.mrb[83].mxu1 }
 0x504   : > { %v3090_v47 = vpop.f32.mrb[84].mxu1 }
 0x505   : > { %v3099_v2 = vadd.f32 %v3090_v47, %v2969_v5  ;;  %v6604_v4 = vpop.f32.mrb[85].mxu1 }
 0x506   : > { %v3093_v8 = vpop.f32.mrb[86].mxu1 }
 0x507   : > { %v3102_v9 = vadd.f32 %v3093_v8, %v2972_v62  ;;  %v6605_v12 = vpop.f32.mrb[87].mxu1 }
 0x50c   : > { %v3194_v13 = vpop.f32.mrb[88].mxu1 }
 0x50d   : > { %v3203_v17 = vadd.f32 %v3194_v13, %v3099_v2  ;;  %v6610_v18 = vpop.f32.mrb[89].mxu1 }
 0x50e   : > { %v3197_v19 = vpop.f32.mrb[90].mxu1 }
 0x50f   : > { %v3206_v57 = vadd.f32 %v3197_v19, %v3102_v9  ;;  %v6611_v58 = vpop.f32.mrb[91].mxu1 }
 0x514   : > { %v3324_v60 = vpop.f32.mrb[92].mxu1 }
 0x515   : > { %v3333_v21 = vadd.f32 %v3324_v60, %v3203_v17  ;;  %v6616_v25 = vpop.f32.mrb[93].mxu1 }
 0x516   : > { %v3327_v31 = vpop.f32.mrb[94].mxu1 }
 0x517   : > { %v3336_v3 = vadd.f32 %v3327_v31, %v3206_v57  ;;  %v6617_v16 = vpop.f32.mrb[95].mxu1 }
 0x518   : > { %v6333_v16 = vld [vmem:[%s8961_s2 + $0x30] sm:$0xff] }
 0x51c   : > { %v3454_v20 = vpop.f32.mrb[96].mxu1 }
 0x51d   : > { %v3463_v22 = vadd.f32 %v3454_v20, %v3333_v21  ;;  %v6622_v24 = vpop.f32.mrb[97].mxu1  ;;  %v6334_v20 = vld [vmem:[%s8961_s2 + $0x38] sm:$0xff] }
 0x51e   : > { %v3457_v28 = vpop.f32.mrb[98].mxu1 }
 0x51f   : > { %v3466_v30 = vadd.f32 %v3457_v28, %v3336_v3  ;;  %v6623_v33 = vpop.f32.mrb[99].mxu1 }
 0x524   : > { %v3584_v34 = vpop.f32.mrb[100].mxu1 }
 0x525   : > { %v3593_v35 = vadd.f32 %v3584_v34, %v3463_v22  ;;  %v6628_v36 = vpop.f32.mrb[101].mxu1 }
 0x526   : > { %v3587_v37 = vpop.f32.mrb[102].mxu1 }
 0x527   : > { %v3596_v38 = vadd.f32 %v3587_v37, %v3466_v30  ;;  %v6629_v39 = vpop.f32.mrb[103].mxu1 }
 0x52c   : > { %v3714_v40 = vpop.f32.mrb[104].mxu1 }
 0x52d   : > { %v3723_v6 = vadd.f32 %v3714_v40, %v3593_v35  ;;  %v6634_v23 = vpop.f32.mrb[105].mxu1 }
 0x52e   : > { %v3717_v27 = vpop.f32.mrb[106].mxu1 }
 0x52f   : > { %v3742_v29 = vadd.f32 %v3733_v26, %v3723_v6  ;;  %v3726_v45 = vadd.f32 %v3717_v27, %v3596_v38  ;;  %v6635_v49 = vpop.f32.mrb[107].mxu1 }
 0x531   : > { %vm3748_vm10 = vcmp.ge.f32.partialorder %v3742_v29, 0.0  ;;  %v3754_v32 = vmul.f32 0.01, %v3742_v29  ;;  %v3745_v43 = vadd.f32 %v3738_v55, %v3726_v45 }
 0x533   : > { %v3760_v44 = vsel %vm3748_vm10, %v3742_v29, %v3754_v32  ;;  %vm3751_vm11 = vcmp.ge.f32.partialorder %v3745_v43, 0.0  ;;  %v3757_v46 = vmul.f32 0.01, %v3745_v43 }
 0x534   : > { %v8471_v50 = vmul.f32 %v3760_v44, %v7982_v1 }
 0x535   : > { %v3763_v48 = vsel %vm3751_vm11, %v3745_v43, %v3757_v46 }
 0x536   : > { %v8474_v51 = vmul.f32 %v3763_v48, %v7982_v1  ;;  %v7555_v48 = vld [vmem:[%s8960_s1 + $0xe0] sm:$0xff]  }
 0x538   : > { %v7298_v52 = vpack.i.bf16 %v8474_v51, %v8471_v50  ;;  %v4289_v53 = vpack.c.bf16 %v8474_v51, %v8471_v50 }
 0x54b   : > { %v3671_v54 = vpop.f32.mrb[8].mxu0 }
 0x54c   : > { %v3740_v14 = vadd.f32 %v3733_v26, %v3671_v54  ;;  %v3673_v56 = vpop.f32.mrb[9].mxu0 }
 0x54d   : > { %v3741_v59 = vadd.f32 %v3733_v26, %v3673_v56  ;;  %v3675_v61 = vpop.f32.mrb[10].mxu0 }
 0x54e   : > { %vm3746_vm12 = vcmp.ge.f32.partialorder %v3740_v14, 0.0  ;;  %v3752_v5 = vmul.f32 0.01, %v3740_v14  ;;  %v3743_v7 = vadd.f32 %v3738_v55, %v3675_v61  ;;  %v3677_v15 = vpop.f32.mrb[11].mxu0 }
 0x54f   : > { %vm3747_vm13 = vcmp.ge.f32.partialorder %v3741_v59, 0.0  ;;  %v3753_v62 = vmul.f32 0.01, %v3741_v59  ;;  %v3744_v41 = vadd.f32 %v3738_v55, %v3677_v15 }
 0x550   : > { %v3758_v47 = vsel %vm3746_vm12, %v3740_v14, %v3752_v5  ;;  %vm3749_vm14 = vcmp.ge.f32.partialorder %v3743_v7, 0.0  ;;  %v3755_v2 = vmul.f32 0.01, %v3743_v7 }
 0x551   : > { %v8481_v4 = vmul.f32 %v3758_v47, %v7996_v63  ;;  %v3759_v8 = vsel %vm3747_vm13, %v3741_v59, %v3753_v62  ;;  %vm3750_vm15 = vcmp.ge.f32.partialorder %v3744_v41, 0.0  ;;  %v3756_v9 = vmul.f32 0.01, %v3744_v41 }
 0x552   : > { %v8484_v12 = vmul.f32 %v3759_v8, %v7998_v11  ;;  %v3761_v13 = vsel %vm3749_vm14, %v3743_v7, %v3755_v2 }
 0x553   : > { %v8487_v17 = vmul.f32 %v3761_v13, %v7996_v63  ;;  %v3762_v18 = vsel %vm3750_vm15, %v3744_v41, %v3756_v9 }
 0x554   : > { %v8490_v19 = vmul.f32 %v3762_v18, %v7998_v11  ;;  %v7288_v57 = vpack.i.bf16 %v8484_v12, %v8481_v4  ;;  %v7348_v58 = vpack.i.bf16 %v8471_v50, %v8484_v12 }
 0x555   : > { %v7358_v60 = vpack.i.bf16 %v8487_v17, %v8481_v4  ;;  %v4287_v3 = vpack.c.bf16 %v8487_v17, %v8481_v4 }
 0x556   : > { %7289 = vrot.lane.b32.xlu1 %v7288_v57, %s7638_s6  ;;  %v7293_v21 = vpack.i.bf16 %v8490_v19, %v8487_v17  ;;  %v7353_v25 = vpack.i.bf16 %v8474_v51, %v8490_v19  ;;  %v4288_v31 = vpack.c.bf16 %v8490_v19, %v8484_v12  ;;  %v7559_v12 = vld [vmem:[%s8960_s1 + $0xf8] sm:$0xff]  }
 0x558   : > { %7294 = vrot.lane.b32.xlu0 %v7293_v21, %s7638_s6 }
 0x55a   : > { %7299 = vrot.lane.b32.xlu1 %v7298_v52, %s7638_s6 }
 0x55c   : > { %7304 = vrot.lane.b32.xlu0 %v7288_v57, %s7639_s7 }
 0x55e   : > { %7309 = vrot.lane.b32.xlu1 %v7293_v21, %s7639_s7 }
 0x560   : > { %7314 = vrot.lane.b32.xlu0 %v7298_v52, %s7639_s7 }
 0x562   : > { %7319 = vrot.lane.b32.xlu1 %v7288_v57, %s7642_s8 }
 0x564   : > { %7324 = vrot.lane.b32.xlu0 %v7293_v21, %s7642_s8 }
 0x566   : > { %7329 = vrot.lane.b32.xlu1 %v7298_v52, %s7642_s8 }
 0x568   : > { %7334 = vrot.lane.b32.xlu0 %v7288_v57, %s7643_s9 }
 0x56a   : > { %7339 = vrot.lane.b32.xlu1 %v7293_v21, %s7643_s9 }
 0x56c   : > { %7344 = vrot.lane.b32.xlu0 %v7298_v52, %s7643_s9 }
 0x56e   : > { %7349 = vrot.lane.b32.xlu1 %v7348_v58, %s7644_s10 }
 0x570   : > { %7354 = vrot.lane.b32.xlu0 %v7353_v25, %s7644_s10 }
 0x572   : > { %7359 = vrot.lane.b32.xlu1 %v7358_v60, %s7644_s10 }
 0x574   : > { %7364 = vrot.lane.b32.xlu0 %v7348_v58, %s7645_s11 }
 0x576   : > { %7369 = vrot.lane.b32.xlu1 %v7353_v25, %s7645_s11 }
 0x578   : > { %7374 = vrot.lane.b32.xlu0 %v7358_v60, %s7645_s11 }
 0x57a   : > { %7379 = vrot.lane.b32.xlu1 %v7348_v58, %s7646_s12 }
 0x57c   : > { %7384 = vrot.lane.b32.xlu0 %v7353_v25, %s7646_s12 }
 0x57e   : > { %7389 = vrot.lane.b32.xlu1 %v7358_v60, %s7646_s12 }
 0x580   : > { %7394 = vrot.lane.b32.xlu0 %v7348_v58, %s7647_s13 }
 0x582   : > { %7399 = vrot.lane.b32.xlu1 %v7353_v25, %s7647_s13 }
 0x584   : > { %7404 = vrot.lane.b32.xlu0 %v7358_v60, %s7647_s13 }
 0x586   : > { %4913 = vperm.xlu1 %7047, %v6333_v16  }
 0x588   : > { %4918 = vperm.xlu0 %7046, %v6334_v20  }
 0x5c8   : > { %v7290_v22 = vpop.permute.xlu1 %7289 }
 0x5c9   : > { %v7292_v24 = vunpack.i.h.bf16 %v7290_v22  ;;  %v7291_v28 = vunpack.i.l.bf16 %v7290_v22 }
 0x5ca   : > { %v7295_v30 = vpop.permute.xlu0 %7294 }
 0x5cb   : > { %v7297_v33 = vunpack.i.h.bf16 %v7295_v30  ;;  %v7296_v34 = vunpack.i.l.bf16 %v7295_v30  ;;  %v3822_v38 = vsel %vm256_vm1, %v7291_v28, %v7292_v24 }
 0x5cc   : > { %v7300_v35 = vpop.permute.xlu1 %7299 }
 0x5cd   : > { %v7302_v36 = vunpack.i.h.bf16 %v7300_v35  ;;  %v7301_v37 = vunpack.i.l.bf16 %v7300_v35  ;;  %v3824_v39 = vsel %vm256_vm1, %v7296_v34, %v7297_v33 }
 0x5ce   : > { %v7305_v40 = vpop.permute.xlu0 %7304  ;;  %v3838_v6 = vpack.c.bf16 %v3824_v39, %v3822_v38 }
 0x5cf   : > { %v3823_v23 = vsel %vm256_vm1, %v7292_v24, %v7301_v37  ;;  %v3825_v26 = vsel %vm256_vm1, %v7297_v33, %v7302_v36  ;;  %v3832_v27 = vsel %vm256_vm1, %v7301_v37, %v7291_v28  ;;  %v3833_v29 = vsel %vm256_vm1, %v7302_v36, %v7296_v34  ;;  %v7556_v24 = vld [vmem:[%s8960_s1 + $0xd8] sm:$0xff]  }
 0x5d0   : > { %v3837_v45 = vpack.c.bf16 %v3833_v29, %v3832_v27  ;;  %v3839_v49 = vpack.c.bf16 %v3825_v26, %v3823_v23  ;;  %v7307_v55 = vunpack.i.h.bf16 %v7305_v40  ;;  %v7306_v32 = vunpack.i.l.bf16 %v7305_v40  ;;  %v7310_v43 = vpop.permute.xlu1 %7309  ;;  %3848 = vmatprep.subr.bf16.mxu0 %v3838_v6 }
 0x5d1   : > { %v7312_v44 = vunpack.i.h.bf16 %v7310_v43  ;;  %v7311_v46 = vunpack.i.l.bf16 %v7310_v43  ;;  %v7557_v43 = vld [vmem:[%s8960_s1 + $0xe8] sm:$0xff]  }
 0x5d2   : > { %v7315_v52 = vpop.permute.xlu0 %7314  ;;  %3849 = vmatpush1.bf16.msra.mxu0 %v3837_v45  ;;  %6637 = vmatpush3.bf16.msra.mxu1 %v3839_v49  ;;  %v3790_v56 = vsel %vm224_vm2, %v7306_v32, %v7307_v55 }
 0x5d3   : > { %v7317_v54 = vunpack.i.h.bf16 %v7315_v52  ;;  %v7316_v14 = vunpack.i.l.bf16 %v7315_v52  ;;  %v3792_v59 = vsel %vm224_vm2, %v7311_v46, %v7312_v44  ;;  %6642 = vmatprep.subr.bf16.mxu1 %v7637_v0 }
 0x5d4   : > { %v7320_v61 = vpop.permute.xlu1 %7319  ;;  %v3806_v5 = vpack.c.bf16 %v3792_v59, %v3790_v56  ;;  %v7558_v56 = vld [vmem:[%s8960_s1 + $0xf0] sm:$0xff]  }
 0x5d5   : > { %v3793_v7 = vsel %vm224_vm2, %v7312_v44, %v7317_v54  ;;  %v3801_v15 = vsel %vm224_vm2, %v7317_v54, %v7311_v46  ;;  %v3791_v62 = vsel %vm224_vm2, %v7307_v55, %v7316_v14  ;;  %v3800_v41 = vsel %vm224_vm2, %v7316_v14, %v7306_v32  ;;  %6293 = vmatmul.mubr.msk.bf16.vlgmr.msra.gmra.mrb[12].mxu0 %vm280_vm3, %v7555_v48 }
 0x5d6   : > { %v3805_v47 = vpack.c.bf16 %v3801_v15, %v3800_v41  ;;  %v3807_v2 = vpack.c.bf16 %v3793_v7, %v3791_v62  ;;  %v7322_v8 = vunpack.i.h.bf16 %v7320_v61  ;;  %v7321_v9 = vunpack.i.l.bf16 %v7320_v61  ;;  %6639 = vmatmul.mubr.msk.bf16.vlgmr.msra.gmra.mrb[108].mxu1 %vm280_vm3, %v7555_v48  ;;  %v7325_v13 = vpop.permute.xlu0 %7324  ;;  %3940 = vmatprep.subr.bf16.mxu0 %v3806_v5 }
 0x5d7   : > { %v7327_v18 = vunpack.i.h.bf16 %v7325_v13  ;;  %v7326_v57 = vunpack.i.l.bf16 %v7325_v13  ;;  %6644 = vmatprep.mubr.msk.bf16.mxu1 %vm7640_vm0, %v7637_v0  ;;  %3972 = vmatprep.mubr.bf16.mxu0 %v7641_v10 }
 0x5d8   : > { %v7330_v58 = vpop.permute.xlu1 %7329  ;;  %3941 = vmatpush1.bf16.msra.mxu0 %v3805_v47  ;;  %6643 = vmatpush3.bf16.msra.mxu1 %v3807_v2  ;;  %v4038_v25 = vsel %vm474_vm4, %v7321_v9, %v7322_v8 }
 0x5d9   : > { %v7332_v60 = vunpack.i.h.bf16 %v7330_v58  ;;  %v7331_v21 = vunpack.i.l.bf16 %v7330_v58  ;;  %v4040_v16 = vsel %vm474_vm4, %v7326_v57, %v7327_v18  ;;  %6648 = vmatprep.subr.bf16.mxu1 %v7637_v0 }
 0x5da   : > { %v7335_v20 = vpop.permute.xlu0 %7334  ;;  %v4054_v22 = vpack.c.bf16 %v4040_v16, %v4038_v25 }
 0x5db   : > { %v4039_v28 = vsel %vm474_vm4, %v7322_v8, %v7331_v21  ;;  %v4041_v30 = vsel %vm474_vm4, %v7327_v18, %v7332_v60  ;;  %v7337_v34 = vunpack.i.h.bf16 %v7335_v20  ;;  %v7336_v35 = vunpack.i.l.bf16 %v7335_v20  ;;  %v7560_v20 = vld [vmem:[%s8960_s1 + $0x100] sm:$0xff]  }
 0x5dc   : > { %v4055_v33 = vpack.c.bf16 %v4041_v30, %v4039_v28  ;;  %v7340_v36 = vpop.permute.xlu1 %7339  ;;  %4064 = vmatprep.subr.bf16.mxu0 %v4054_v22  ;;  %v4048_v37 = vsel %vm474_vm4, %v7331_v21, %v7321_v9  ;;  %v4049_v38 = vsel %vm474_vm4, %v7332_v60, %v7326_v57 }
 0x5dd   : > { %v7342_v39 = vunpack.i.h.bf16 %v7340_v36  ;;  %v7341_v40 = vunpack.i.l.bf16 %v7340_v36  ;;  %v4168_v27 = vsel %vm605_vm5, %v7336_v35, %v7337_v34  ;;  %v4053_v45 = vpack.c.bf16 %v4049_v38, %v4048_v37 }
 0x5de   : > { %6645 = vmatmul.mubr.msk.bf16.vlgmr.msra.gmra.mrb[112].mxu1 %vm280_vm3, %v7556_v24  ;;  %v7345_v6 = vpop.permute.xlu0 %7344 }
 0x5df   : > { %v7347_v23 = vunpack.i.h.bf16 %v7345_v6  ;;  %v7346_v26 = vunpack.i.l.bf16 %v7345_v6  ;;  %6649 = vmatpush3.bf16.msra.mxu1 %v4055_v33  ;;  %v4170_v29 = vsel %vm605_vm5, %v7341_v40, %v7342_v39  ;;  %6650 = vmatprep.mubr.msk.bf16.mxu1 %vm7640_vm0, %v7637_v0 }
 0x5e0   : > { %v4184_v49 = vpack.c.bf16 %v4170_v29, %v4168_v27  ;;  %6654 = vmatprep.subr.bf16.mxu1 %v7637_v0  ;;  %v8580_v46 = vpop.permute.xlu1 %7349 }
 0x5e1   : > { %v4171_v55 = vsel %vm605_vm5, %v7342_v39, %v7347_v23  ;;  %v4169_v32 = vsel %vm605_vm5, %v7337_v34, %v7346_v26  ;;  %6296 = vmatmul.mubr.msk.bf16.vlgmr.msra.gmra.mrb[12].mxu0 %vm280_vm3, %v7556_v24  ;;  %v4179_v52 = vsel %vm605_vm5, %v7347_v23, %v7341_v40  ;;  %v4178_v54 = vsel %vm605_vm5, %v7346_v26, %v7336_v35  ;;  %v7561_v39 = vld [vmem:[%s8960_s1 + $0x108] sm:$0xff]  }
 0x5e2   : > { %4065 = vmatpush1.bf16.msra.mxu0 %v4053_v45  ;;  %4096 = vmatprep.mubr.bf16.mxu0 %v7641_v10  ;;  %v4185_v44 = vpack.c.bf16 %v4171_v55, %v4169_v32  ;;  %v8582_v48 = vpop.permute.xlu0 %7354  ;;  %v4183_v61 = vpack.c.bf16 %v4179_v52, %v4178_v54  ;;  %v7352_v62 = vunpack.i.h.bf16 %v8580_v46  ;;  %v7351_v19 = vunpack.i.l.bf16 %v8580_v46  ;;  %v7562_v52 = vld [vmem:[%s8960_s1 + $0x110] sm:$0xff]  }
 0x5e3   : > { %4194 = vmatprep.subr.bf16.mxu0 %v4184_v49  ;;  %v7357_v41 = vunpack.i.h.bf16 %v8582_v48  ;;  %v7356_v50 = vunpack.i.l.bf16 %v8582_v48 }
 0x5e4   : > { %v7360_v14 = vpop.permute.xlu1 %7359  ;;  %v4401_v60 = vsel %vm838_vm6, %v7351_v19, %v7352_v62 }
 0x5e5   : > { %v7362_v5 = vunpack.i.h.bf16 %v7360_v14  ;;  %v7361_v7 = vunpack.i.l.bf16 %v7360_v14  ;;  %v4403_v13 = vsel %vm838_vm6, %v7356_v50, %v7357_v41 }
 0x5e6   : > { %6651 = vmatmul.mubr.msk.bf16.vlgmr.msra.gmra.mrb[116].mxu1 %vm280_vm3, %v7557_v43  ;;  %v8593_v59 = vpop.permute.xlu0 %7364  ;;  %v4418_v21 = vpack.c.bf16 %v4403_v13, %v4401_v60 }
 0x5e7   : > { %6655 = vmatpush3.bf16.msra.mxu1 %v4185_v44  ;;  %6656 = vmatprep.mubr.msk.bf16.mxu1 %vm7640_vm0, %v7637_v0  ;;  %v4412_v51 = vsel %vm838_vm6, %v7352_v62, %v7361_v7  ;;  %v7367_v57 = vunpack.i.h.bf16 %v8593_v59  ;;  %v7366_v4 = vunpack.i.l.bf16 %v8593_v59  ;;  %v4400_v35 = vsel %vm838_vm6, %v7361_v7, %v7351_v19  ;;  %v7563_v62 = vld [vmem:[%s8960_s1 + $0x118] sm:$0xff]  }
 0x5e8   : > { %6660 = vmatprep.subr.bf16.mxu1 %v7637_v0  ;;  %v8597_v15 = vpop.permute.xlu1 %7369  ;;  %v4402_v36 = vsel %vm838_vm6, %v7362_v5, %v7356_v50 }
 0x5e9   : > { %v7372_v58 = vunpack.i.h.bf16 %v8597_v15  ;;  %v7371_v30 = vunpack.i.l.bf16 %v8597_v15  ;;  %v4417_v23 = vpack.c.bf16 %v4402_v36, %v4400_v35  ;;  %v4531_v26 = vsel %vm969_vm7, %v7366_v4, %v7367_v57 }
 0x5ea   : > { %v8610_v47 = vpop.permute.xlu0 %7374 }
 0x5eb   : > { %v7377_v8 = vunpack.i.h.bf16 %v8610_v47  ;;  %v7376_v9 = vunpack.i.l.bf16 %v8610_v47  ;;  %v4533_v40 = vsel %vm969_vm7, %v7371_v30, %v7372_v58 }
 0x5ec   : > { %v8620_v2 = vpop.permute.xlu1 %7379  ;;  %v4548_v45 = vpack.c.bf16 %v4533_v40, %v4531_v26 }
 0x5ed   : > { %6301 = vmatmul.mubr.msk.bf16.vlgmr.msra.gmra.mrb[12].mxu0 %vm280_vm3, %v7557_v43  ;;  %v4543_v25 = vsel %vm969_vm7, %v7372_v58, %v7377_v8  ;;  %v4542_v16 = vsel %vm969_vm7, %v7367_v57, %v7376_v9  ;;  %v7382_v17 = vunpack.i.h.bf16 %v8620_v2  ;;  %v7381_v54 = vunpack.i.l.bf16 %v8620_v2 }
 0x5ee   : > { %4195 = vmatpush1.bf16.msra.mxu0 %v4183_v61  ;;  %6657 = vmatmul.mubr.msk.bf16.vlgmr.msra.gmra.mrb[120].mxu1 %vm280_vm3, %v7558_v56  ;;  %v8626_v18 = vpop.permute.xlu0 %7384  ;;  %v4549_v24 = vpack.c.bf16 %v4543_v25, %v4542_v16  ;;  %v4532_v14 = vsel %vm969_vm7, %v7377_v8, %v7371_v30 }
 0x5ef   : > { %6661 = vmatpush3.bf16.msra.mxu1 %v4289_v53  ;;  %4298 = vmatprep.subr.bf16.mxu0 %v4288_v31  ;;  %v4413_v53 = vsel %vm838_vm6, %v7357_v41, %v7362_v5  ;;  %v7386_v44 = vunpack.i.l.bf16 %v8626_v18  ;;  %v4661_v7 = vsel %vm1100_vm8, %v7381_v54, %v7382_v17 }
 0x5f0   : > { %6662 = vmatprep.mubr.msk.bf16.mxu1 %vm7640_vm0, %v7637_v0  ;;  %6666 = vmatprep.subr.bf16.mxu1 %v7637_v0  ;;  %v4419_v31 = vpack.c.bf16 %v4413_v53, %v4412_v51  ;;  %v8644_v22 = vpop.permute.xlu1 %7389 }
 0x5f1   : > { %4226 = vmatprep.mubr.bf16.mxu0 %v7641_v10  ;;  %v7392_v33 = vunpack.i.h.bf16 %v8644_v22  ;;  %v7391_v34 = vunpack.i.l.bf16 %v8644_v22 }
 0x5f2   : > { %v8646_v28 = vpop.permute.xlu0 %7394 }
 0x5f3   : > { %v4672_v37 = vsel %vm1100_vm8, %v7382_v17, %v7391_v34  ;;  %v7397_v32 = vunpack.i.h.bf16 %v8646_v28  ;;  %v7396_v47 = vunpack.i.l.bf16 %v8646_v28  ;;  %v4660_v50 = vsel %vm1100_vm8, %v7391_v34, %v7381_v54 }
 0x5f4   : > { %v7400_v29 = vpop.permute.xlu1 %7399  ;;  %v4662_v51 = vsel %vm1100_vm8, %v7392_v33, %v7386_v44 }
 0x5f5   : > { %v7402_v43 = vunpack.i.h.bf16 %v7400_v29  ;;  %v7401_v41 = vunpack.i.l.bf16 %v7400_v29  ;;  %v4791_v19 = vsel %vm1231_vm9, %v7396_v47, %v7397_v32 }
 0x5f6   : > { %6663 = vmatmul.mubr.msk.bf16.vlgmr.msra.gmra.mrb[124].mxu1 %vm280_vm3, %v7559_v12  ;;  %v7405_v6 = vpop.permute.xlu0 %7404 }
 0x5f7   : > { %6667 = vmatpush3.bf16.msra.mxu1 %v4419_v31  ;;  %6668 = vmatprep.mubr.msk.bf16.mxu1 %vm7640_vm0, %v7637_v0  ;;  %v7407_v49 = vunpack.i.h.bf16 %v7405_v6  ;;  %v7406_v55 = vunpack.i.l.bf16 %v7405_v6  ;;  %v4793_v53 = vsel %vm1231_vm9, %v7401_v41, %v7402_v43 }
 0x5f8   : > { %6672 = vmatprep.subr.bf16.mxu1 %v7637_v0  ;;  %v4808_v31 = vpack.c.bf16 %v4793_v53, %v4791_v19 }
 0x5f9   : > { %6306 = vmatmul.mubr.msk.bf16.vlgmr.msra.gmra.mrb[12].mxu0 %vm280_vm3, %v7558_v56  ;;  %v4803_v46 = vsel %vm1231_vm9, %v7402_v43, %v7407_v49  ;;  %v4802_v48 = vsel %vm1231_vm9, %v7397_v32, %v7406_v55  ;;  %v4530_v56 = vsel %vm969_vm7, %v7376_v9, %v7366_v4  ;;  %v4792_v2 = vsel %vm1231_vm9, %v7407_v49, %v7401_v41 }
 0x5fa   : > { %4299 = vmatpush1.bf16.msra.mxu0 %v4287_v3  ;;  %4330 = vmatprep.mubr.bf16.mxu0 %v7641_v10  ;;  %v7387_v3 = vunpack.i.h.bf16 %v8626_v18  ;;  %v4809_v59 = vpack.c.bf16 %v4803_v46, %v4802_v48  ;;  %v4547_v5 = vpack.c.bf16 %v4532_v14, %v4530_v56  ;;  %v4790_v8 = vsel %vm1231_vm9, %v7406_v55, %v7396_v47 }
 0x5fb   : > { %4428 = vmatprep.subr.bf16.mxu0 %v4418_v21  ;;  %v4807_v9 = vpack.c.bf16 %v4792_v2, %v4790_v8 }
 0x5fc   : > { %v4673_v38 = vsel %vm1100_vm8, %v7387_v3, %v7392_v33  ;;  %v4663_v61 = vsel %vm1100_vm8, %v7386_v44, %v7387_v3 }
 0x5fd   : > { %v4679_v27 = vpack.c.bf16 %v4673_v38, %v4672_v37  ;;  %v4678_v15 = vpack.c.bf16 %v4663_v61, %v4661_v7 }
 0x5fe   : > { %6669 = vmatmul.mubr.msk.bf16.vlgmr.msra.gmra.mrb[128].mxu1 %vm280_vm3, %v7560_v20 }
 0x5ff   : > { %6673 = vmatpush3.bf16.msra.mxu1 %v4549_v24  ;;  %6674 = vmatprep.mubr.msk.bf16.mxu1 %vm7640_vm0, %v7637_v0 }
 0x600   : > { %6678 = vmatprep.subr.bf16.mxu1 %v7637_v0 }
 0x605   : > { %6311 = vmatmul.mubr.msk.bf16.vlgmr.msra.gmra.mrb[12].mxu0 %vm280_vm3, %v7559_v12  ;;  %v4677_v12 = vpack.c.bf16 %v4662_v51, %v4660_v50  ;;  %v4914_v50 = vpop.permute.xlu1 %4913 }
 0x606   : > { %4429 = vmatpush1.bf16.msra.mxu0 %v4417_v23  ;;  %6675 = vmatmul.mubr.msk.bf16.vlgmr.msra.gmra.mrb[132].mxu1 %vm280_vm3, %v7561_v39 }
 0x607   : > { %6679 = vmatpush3.bf16.msra.mxu1 %v4679_v27  ;;  %4558 = vmatprep.subr.bf16.mxu0 %v4548_v45 }
 0x608   : > { %6680 = vmatprep.mubr.msk.bf16.mxu1 %vm7640_vm0, %v7637_v0  ;;  %6684 = vmatprep.subr.bf16.mxu1 %v7637_v0 }
 0x609   : > { %4460 = vmatprep.mubr.bf16.mxu0 %v7641_v10 }
 0x60e   : > { %6681 = vmatmul.mubr.msk.bf16.vlgmr.msra.gmra.mrb[136].mxu1 %vm280_vm3, %v7562_v52 }
 0x60f   : > { %6685 = vmatpush3.bf16.msra.mxu1 %v4809_v59  ;;  %6686 = vmatprep.mubr.msk.bf16.mxu1 %vm7640_vm0, %v7637_v0 }
 0x610   : > { %6690 = vmatprep.subr.bf16.mxu1 %v7637_v0 }
 0x611   : > { %6316 = vmatmul.mubr.msk.bf16.vlgmr.msra.gmra.mrb[12].mxu0 %vm280_vm3, %v7560_v20 }
 0x612   : > { %4559 = vmatpush1.bf16.msra.mxu0 %v4547_v5  ;;  %4590 = vmatprep.mubr.bf16.mxu0 %v7641_v10 }
 0x613   : > { %4688 = vmatprep.subr.bf16.mxu0 %v4678_v15 }
 0x616   : > { %6687 = vmatmul.mubr.msk.bf16.vlgmr.msra.gmra.mrb[140].mxu1 %vm280_vm3, %v7563_v62 }
 0x617   : > { %6692 = vmatprep.mubr.msk.bf16.mxu1 %vm7640_vm0, %v7637_v0 }
 0x61d   : > { %6321 = vmatmul.mubr.msk.bf16.vlgmr.msra.gmra.mrb[12].mxu0 %vm280_vm3, %v7561_v39 }
 0x61e   : > { %4689 = vmatpush1.bf16.msra.mxu0 %v4677_v12  ;;  %4720 = vmatprep.mubr.bf16.mxu0 %v7641_v10 }
 0x61f   : > { %4818 = vmatprep.subr.bf16.mxu0 %v4808_v31  ;;  %v4919_v31 = vpop.permute.xlu0 %4918 }
 0x629   : > { %6326 = vmatmul.mubr.msk.bf16.vlgmr.msra.gmra.mrb[12].mxu0 %vm280_vm3, %v7562_v52 }
 0x62a   : > { %4819 = vmatpush1.bf16.msra.mxu0 %v4807_v9  ;;  %4850 = vmatprep.mubr.bf16.mxu0 %v7641_v10 }
 0x635   : > { %6331 = vmatmul.mubr.msk.bf16.vlgmr.msra.gmra.mrb[12].mxu0 %vm280_vm3, %v7563_v62 }
 0x636   : > { %5061 = vmatprep.mubr.bf16.mxu0 %v7641_v10 }
 0x6a9   : > { %v3925_v13 = vpop.f32.mrb[108].mxu1 }
 0x6aa   : > { %v6640_v18 = vpop.f32.mrb[109].mxu1 }
 0x6ab   : > { %v3928_v57 = vpop.f32.mrb[110].mxu1 }
 0x6ac   : > { %v6641_v58 = vpop.f32.mrb[111].mxu1 }
 0x6b1   : > { %v4017_v60 = vpop.f32.mrb[112].mxu1 }
 0x6b2   : > { %v4018_v21 = vadd.f32 %v4017_v60, %v3925_v13  ;;  %v6646_v25 = vpop.f32.mrb[113].mxu1 }
 0x6b3   : > { %v4020_v16 = vpop.f32.mrb[114].mxu1 }
 0x6b4   : > { %v4021_v20 = vadd.f32 %v4020_v16, %v3928_v57  ;;  %v6647_v22 = vpop.f32.mrb[115].mxu1 }
 0x6b9   : > { %v4141_v24 = vpop.f32.mrb[116].mxu1 }
 0x6ba   : > { %v4150_v28 = vadd.f32 %v4141_v24, %v4018_v21  ;;  %v6652_v30 = vpop.f32.mrb[117].mxu1 }
 0x6bb   : > { %v4144_v33 = vpop.f32.mrb[118].mxu1 }
 0x6bc   : > { %v4153_v34 = vadd.f32 %v4144_v33, %v4021_v20  ;;  %v6653_v4 = vpop.f32.mrb[119].mxu1 }
 0x6c1   : > { %v4271_v17 = vpop.f32.mrb[120].mxu1 }
 0x6c2   : > { %v4280_v3 = vadd.f32 %v4271_v17, %v4150_v28  ;;  %v6658_v35 = vpop.f32.mrb[121].mxu1 }
 0x6c3   : > { %v4274_v36 = vpop.f32.mrb[122].mxu1 }
 0x6c4   : > { %v4283_v37 = vadd.f32 %v4274_v36, %v4153_v34  ;;  %v6659_v38 = vpop.f32.mrb[123].mxu1 }
 0x6c9   : > { %v4375_v39 = vpop.f32.mrb[124].mxu1 }
 0x6ca   : > { %v4384_v40 = vadd.f32 %v4375_v39, %v4280_v3  ;;  %v6664_v6 = vpop.f32.mrb[125].mxu1 }
 0x6cb   : > { %v4378_v23 = vpop.f32.mrb[126].mxu1 }
 0x6cc   : > { %v4387_v26 = vadd.f32 %v4378_v23, %v4283_v37  ;;  %v6665_v27 = vpop.f32.mrb[127].mxu1 }
 0x6d1   : > { %v4505_v29 = vpop.f32.mrb[128].mxu1 }
 0x6d2   : > { %v4514_v45 = vadd.f32 %v4505_v29, %v4384_v40  ;;  %v6670_v49 = vpop.f32.mrb[129].mxu1 }
 0x6d3   : > { %v4508_v55 = vpop.f32.mrb[130].mxu1  ;;  %v6380_v49 = vld [vmem:[%s8961_s2 + $0x40] sm:$0xff] }
 0x6d4   : > { %v4517_v32 = vadd.f32 %v4508_v55, %v4387_v26  ;;  %v6671_v43 = vpop.f32.mrb[131].mxu1 }
 0x6d9   : > { %v4635_v44 = vpop.f32.mrb[132].mxu1 }
 0x6da   : > { %v4644_v46 = vadd.f32 %v4635_v44, %v4514_v45  ;;  %v6676_v48 = vpop.f32.mrb[133].mxu1 }
 0x6db   : > { %v4638_v52 = vpop.f32.mrb[134].mxu1 }
 0x6dc   : > { %v4647_v54 = vadd.f32 %v4638_v52, %v4517_v32  ;;  %v6677_v14 = vpop.f32.mrb[135].mxu1 }
 0x6e1   : > { %v4765_v56 = vpop.f32.mrb[136].mxu1 }
 0x6e2   : > { %v4774_v59 = vadd.f32 %v4765_v56, %v4644_v46  ;;  %v6682_v61 = vpop.f32.mrb[137].mxu1 }
 0x6e3   : > { %v4768_v5 = vpop.f32.mrb[138].mxu1 }
 0x6e4   : > { %v4777_v7 = vadd.f32 %v4768_v5, %v4647_v54  ;;  %v6683_v15 = vpop.f32.mrb[139].mxu1 }
 0x6e9   : > { %v4895_v62 = vpop.f32.mrb[140].mxu1 }
 0x6ea   : > { %v4904_v41 = vadd.f32 %v4895_v62, %v4774_v59  ;;  %v6688_v47 = vpop.f32.mrb[141].mxu1 }
 0x6eb   : > { %v4898_v51 = vpop.f32.mrb[142].mxu1 }
 0x6ec   : > { %v4923_v53 = vadd.f32 %v4914_v50, %v4904_v41  ;;  %v4907_v12 = vadd.f32 %v4898_v51, %v4777_v7  ;;  %v6689_v19 = vpop.f32.mrb[143].mxu1 }
 0x6ee   : > { %vm4929_vm10 = vcmp.ge.f32.partialorder %v4923_v53, 0.0  ;;  %v4935_v2 = vmul.f32 0.01, %v4923_v53  ;;  %v4926_v8 = vadd.f32 %v4919_v31, %v4907_v12 }
 0x6f0   : > { %v4941_v9 = vsel %vm4929_vm10, %v4923_v53, %v4935_v2  ;;  %vm4932_vm11 = vcmp.ge.f32.partialorder %v4926_v8, 0.0  ;;  %v4938_v13 = vmul.f32 0.01, %v4926_v8  ;;  %v7564_v2 = vld [vmem:[%s8960_s1 + $0x128] sm:$0xff]  }
 0x6f1   : > { %v8711_v57 = vmul.f32 %v4941_v9, %v7982_v1 }
 0x6f2   : > { %v4944_v18 = vsel %vm4932_vm11, %v4926_v8, %v4938_v13 }
 0x6f3   : > { %v8714_v58 = vmul.f32 %v4944_v18, %v7982_v1 }
 0x6f5   : > { %v7418_v60 = vpack.i.bf16 %v8714_v58, %v8711_v57  ;;  %v5452_v21 = vpack.c.bf16 %v8714_v58, %v8711_v57 }
 0x708   : > { %v4852_v25 = vpop.f32.mrb[12].mxu0 }
 0x709   : > { %v4921_v16 = vadd.f32 %v4914_v50, %v4852_v25  ;;  %v4854_v20 = vpop.f32.mrb[13].mxu0 }
 0x70a   : > { %v4922_v22 = vadd.f32 %v4914_v50, %v4854_v20  ;;  %v4856_v24 = vpop.f32.mrb[14].mxu0 }
 0x70b   : > { %vm4927_vm12 = vcmp.ge.f32.partialorder %v4921_v16, 0.0  ;;  %v4933_v28 = vmul.f32 0.01, %v4921_v16  ;;  %v4924_v30 = vadd.f32 %v4919_v31, %v4856_v24  ;;  %v4858_v33 = vpop.f32.mrb[15].mxu0 }
 0x70c   : > { %vm4928_vm13 = vcmp.ge.f32.partialorder %v4922_v22, 0.0  ;;  %v4934_v34 = vmul.f32 0.01, %v4922_v22  ;;  %v4925_v4 = vadd.f32 %v4919_v31, %v4858_v33 }
 0x70d   : > { %v4939_v1 = vsel %vm4927_vm12, %v4921_v16, %v4933_v28  ;;  %vm4930_vm14 = vcmp.ge.f32.partialorder %v4924_v30, 0.0  ;;  %v4936_v17 = vmul.f32 0.01, %v4924_v30 }
 0x70e   : > { %v8721_v3 = vmul.f32 %v4939_v1, %v7996_v63  ;;  %v4940_v35 = vsel %vm4928_vm13, %v4922_v22, %v4934_v34  ;;  %vm4931_vm15 = vcmp.ge.f32.partialorder %v4925_v4, 0.0  ;;  %v4937_v36 = vmul.f32 0.01, %v4925_v4 }
 0x70f   : > { %v8724_v37 = vmul.f32 %v4940_v35, %v7998_v11  ;;  %v4942_v38 = vsel %vm4930_vm14, %v4924_v30, %v4936_v17 }
 0x710   : > { %v8727_v39 = vmul.f32 %v4942_v38, %v7996_v63  ;;  %v4943_v40 = vsel %vm4931_vm15, %v4925_v4, %v4937_v36 }
 0x711   : > { %v8730_v6 = vmul.f32 %v4943_v40, %v7998_v11  ;;  %v7408_v23 = vpack.i.bf16 %v8724_v37, %v8721_v3  ;;  %v7468_v26 = vpack.i.bf16 %v8711_v57, %v8724_v37 }
 0x712   : > { %v7478_v27 = vpack.i.bf16 %v8727_v39, %v8721_v3  ;;  %v5450_v45 = vpack.c.bf16 %v8727_v39, %v8721_v3  ;;  %v7568_v3 = vld [vmem:[%s8960_s1 + $0x140] sm:$0xff]  }
 0x713   : > { %7409 = vrot.lane.b32.xlu1 %v7408_v23, %s7638_s6  ;;  %v7413_v29 = vpack.i.bf16 %v8730_v6, %v8727_v39  ;;  %v7473_v63 = vpack.i.bf16 %v8714_v58, %v8730_v6  ;;  %v5451_v11 = vpack.c.bf16 %v8730_v6, %v8724_v37 }
 0x715   : > { %7414 = vrot.lane.b32.xlu0 %v7413_v29, %s7638_s6 }
 0x717   : > { %7419 = vrot.lane.b32.xlu1 %v7418_v60, %s7638_s6 }
 0x719   : > { %7424 = vrot.lane.b32.xlu0 %v7408_v23, %s7639_s7 }
 0x71b   : > { %7429 = vrot.lane.b32.xlu1 %v7413_v29, %s7639_s7 }
 0x71d   : > { %7434 = vrot.lane.b32.xlu0 %v7418_v60, %s7639_s7 }
 0x71f   : > { %7439 = vrot.lane.b32.xlu1 %v7408_v23, %s7642_s8 }
 0x721   : > { %7444 = vrot.lane.b32.xlu0 %v7413_v29, %s7642_s8 }
 0x723   : > { %7449 = vrot.lane.b32.xlu1 %v7418_v60, %s7642_s8 }
 0x725   : > { %7454 = vrot.lane.b32.xlu0 %v7408_v23, %s7643_s9 }
 0x727   : > { %7459 = vrot.lane.b32.xlu1 %v7413_v29, %s7643_s9 }
 0x729   : > { %7464 = vrot.lane.b32.xlu0 %v7418_v60, %s7643_s9  ;;  %s188_s9 = sand.u32 1, %s7627_s16  }
 0x72a   : > { %s6073_s23 = scalar_lea.sflag [#allocation3], %s188_s9 }
 0x72b   : > { %7469 = vrot.lane.b32.xlu1 %v7468_v26, %s7644_s10 }
 0x72d   : > { %7474 = vrot.lane.b32.xlu0 %v7473_v63, %s7644_s10 }
 0x72f   : > { %7479 = vrot.lane.b32.xlu1 %v7478_v27, %s7644_s10  ;;  %s6872_s10 = smul.u32 6, %s188_s9 }
 0x731   : > { %7484 = vrot.lane.b32.xlu0 %v7468_v26, %s7645_s11 }
 0x733   : > { %7489 = vrot.lane.b32.xlu1 %v7473_v63, %s7645_s11 }
 0x735   : > { %7494 = vrot.lane.b32.xlu0 %v7478_v27, %s7645_s11  ;;  %s6874_s11 = smul.u32 96, %s7696_s19  ;;  %s7649_s19 = smov [#allocation2]  }
 0x736   : > { %s7577_s28 = sshll.u32 %s7649_s19, 4  ;;  %s7578_s28 = int_to_ptr.vmem [resolvable:$false] %s7577_s28 }
 0x737   : > { %7499 = vrot.lane.b32.xlu1 %v7468_v26, %s7646_s12  ;;  %s8917_s22 = scalar_lea.hbm %s8963_s4, %s6874_s11  ;;  %s7579_s29 = scalar_lea.vmem %s7578_s28, 192 }
 0x739   : > { %7504 = vrot.lane.b32.xlu0 %v7473_v63, %s7646_s12 }
 0x73b   : > { %7509 = vrot.lane.b32.xlu1 %v7478_v27, %s7646_s12  ;;  %s190_s12 = scalar_lea.vmem [#allocation2], %s6872_s10 }
 0x73d   : > { %7514 = vrot.lane.b32.xlu0 %v7468_v26, %s7647_s13 }
 0x73f   : > { %7519 = vrot.lane.b32.xlu1 %v7473_v63, %s7647_s13 }
 0x741   : > { %7524 = vrot.lane.b32.xlu0 %v7478_v27, %s7647_s13  ;;  %v7565_v27 = vld [vmem:[%s8960_s1 + $0x120] sm:$0xff]   ;;  %s6087_s13 = sshll.u32 %s190_s12, 4  ;;  %s8919_s13 = int_to_ptr.vmem [resolvable:$true] %s6087_s13 }
 0x742   : > { %s7573_s27 = scalar_lea.vmem %s8919_s13, 96  ;;  %p7580_p0 = scmp.lt.s32.totalorder %s8919_s13, %s7578_s28 }
 0x743   : > { %6045 = vperm.xlu1 %7047, %v6380_v49   ;;  %p7574_p11 = scmp.ne.s32.totalorder %s8919_s13, %s7573_s27  ;;  %p7581_p1 = scmp.lt.s32.totalorder %s7579_s29, %s7573_s27 }
 0x745   : > { %p7575_p12 = pnand %p7574_p11, %p7713_p5  ;;  %p7582_p2 = por %p7581_p1, %p7580_p0 }
 0x747   : > { %p7576_p13 = pneg %p7575_p12 }
 0x749   : > { %p7583_p3 = pnand %p7582_p2, %p7576_p13 }
 0x785   : > { %v7410_v55 = vpop.permute.xlu1 %7409 }
 0x786   : > { %v7412_v32 = vunpack.i.h.bf16 %v7410_v55  ;;  %v7411_v43 = vunpack.i.l.bf16 %v7410_v55 }
 0x787   : > { %v7415_v44 = vpop.permute.xlu0 %7414 }
 0x788   : > { %v7417_v46 = vunpack.i.h.bf16 %v7415_v44  ;;  %v7416_v48 = vunpack.i.l.bf16 %v7415_v44  ;;  %v5003_v56 = vsel %vm256_vm1, %v7411_v43, %v7412_v32 }
 0x789   : > { %v7420_v52 = vpop.permute.xlu1 %7419 }
 0x78a   : > { %v7422_v54 = vunpack.i.h.bf16 %v7420_v52  ;;  %v7421_v14 = vunpack.i.l.bf16 %v7420_v52  ;;  %v5005_v59 = vsel %vm256_vm1, %v7416_v48, %v7417_v46 }
 0x78b   : > { %v7425_v61 = vpop.permute.xlu0 %7424  ;;  %v5019_v5 = vpack.c.bf16 %v5005_v59, %v5003_v56 }
 0x78c   : > { %v5004_v7 = vsel %vm256_vm1, %v7412_v32, %v7421_v14  ;;  %v5006_v15 = vsel %vm256_vm1, %v7417_v46, %v7422_v54  ;;  %v5013_v62 = vsel %vm256_vm1, %v7421_v14, %v7411_v43  ;;  %v5014_v41 = vsel %vm256_vm1, %v7422_v54, %v7416_v48 }
 0x78d   : > { %v5018_v47 = vpack.c.bf16 %v5014_v41, %v5013_v62  ;;  %v5020_v50 = vpack.c.bf16 %v5006_v15, %v5004_v7  ;;  %v7427_v51 = vunpack.i.h.bf16 %v7425_v61  ;;  %v7426_v53 = vunpack.i.l.bf16 %v7425_v61  ;;  %v7430_v12 = vpop.permute.xlu1 %7429  ;;  %5029 = vmatprep.subr.bf16.mxu0 %v5019_v5 }
 0x78e   : > { %v7432_v19 = vunpack.i.h.bf16 %v7430_v12  ;;  %v7431_v31 = vunpack.i.l.bf16 %v7430_v12  ;;  %v7566_v12 = vld [vmem:[%s8960_s1 + $0x130] sm:$0xff]  }
 0x78f   : > { %v7435_v8 = vpop.permute.xlu0 %7434  ;;  %5030 = vmatpush1.bf16.msra.mxu0 %v5018_v47  ;;  %6691 = vmatpush3.bf16.msra.mxu1 %v5020_v50  ;;  %v4971_v18 = vsel %vm224_vm2, %v7426_v53, %v7427_v51 }
 0x790   : > { %v7437_v9 = vunpack.i.h.bf16 %v7435_v8  ;;  %v7436_v13 = vunpack.i.l.bf16 %v7435_v8  ;;  %v4973_v60 = vsel %vm224_vm2, %v7431_v31, %v7432_v19  ;;  %6696 = vmatprep.subr.bf16.mxu1 %v7637_v0 }
 0x791   : > { %v7440_v25 = vpop.permute.xlu1 %7439  ;;  %v4987_v16 = vpack.c.bf16 %v4973_v60, %v4971_v18 }
 0x792   : > { %v4974_v20 = vsel %vm224_vm2, %v7432_v19, %v7437_v9  ;;  %v4982_v22 = vsel %vm224_vm2, %v7437_v9, %v7431_v31  ;;  %v4972_v24 = vsel %vm224_vm2, %v7427_v51, %v7436_v13  ;;  %v4981_v28 = vsel %vm224_vm2, %v7436_v13, %v7426_v53  ;;  %6340 = vmatmul.mubr.msk.bf16.vlgmr.msra.gmra.mrb[16].mxu0 %vm280_vm3, %v7564_v2 }
 0x793   : > { %v4986_v30 = vpack.c.bf16 %v4982_v22, %v4981_v28  ;;  %v4988_v33 = vpack.c.bf16 %v4974_v20, %v4972_v24  ;;  %v7442_v34 = vunpack.i.h.bf16 %v7440_v25  ;;  %v7441_v4 = vunpack.i.l.bf16 %v7440_v25  ;;  %6693 = vmatmul.mubr.msk.bf16.vlgmr.msra.gmra.mrb[144].mxu1 %vm280_vm3, %v7564_v2  ;;  %v7445_v1 = vpop.permute.xlu0 %7444  ;;  %5118 = vmatprep.subr.bf16.mxu0 %v4987_v16  ;;  %v7567_v20 = vld [vmem:[%s8960_s1 + $0x138] sm:$0xff]  }
 0x794   : > { %v7447_v17 = vunpack.i.h.bf16 %v7445_v1  ;;  %v7446_v35 = vunpack.i.l.bf16 %v7445_v1  ;;  %5150 = vmatprep.mubr.bf16.mxu0 %v7641_v10  ;;  %6698 = vmatprep.mubr.msk.bf16.mxu1 %vm7640_vm0, %v7637_v0 }
 0x795   : > { %v7450_v36 = vpop.permute.xlu1 %7449  ;;  %5119 = vmatpush1.bf16.msra.mxu0 %v4986_v30  ;;  %6697 = vmatpush3.bf16.msra.mxu1 %v4988_v33  ;;  %v5213_v23 = vsel %vm474_vm4, %v7441_v4, %v7442_v34 }
 0x796   : > { %v7452_v38 = vunpack.i.h.bf16 %v7450_v36  ;;  %v7451_v40 = vunpack.i.l.bf16 %v7450_v36  ;;  %v5215_v26 = vsel %vm474_vm4, %v7446_v35, %v7447_v17  ;;  %6702 = vmatprep.subr.bf16.mxu1 %v7637_v0 }
 0x797   : > { %v7455_v29 = vpop.permute.xlu0 %7454  ;;  %v5229_v63 = vpack.c.bf16 %v5215_v26, %v5213_v23 }
 0x798   : > { %v5214_v49 = vsel %vm474_vm4, %v7442_v34, %v7451_v40  ;;  %v5216_v55 = vsel %vm474_vm4, %v7447_v17, %v7452_v38  ;;  %v5223_v32 = vsel %vm474_vm4, %v7451_v40, %v7441_v4  ;;  %v5224_v43 = vsel %vm474_vm4, %v7452_v38, %v7446_v35 }
 0x799   : > { %v5228_v44 = vpack.c.bf16 %v5224_v43, %v5223_v32  ;;  %v5230_v46 = vpack.c.bf16 %v5216_v55, %v5214_v49  ;;  %v7457_v48 = vunpack.i.h.bf16 %v7455_v29  ;;  %v7456_v52 = vunpack.i.l.bf16 %v7455_v29  ;;  %v7460_v54 = vpop.permute.xlu1 %7459  ;;  %5239 = vmatprep.subr.bf16.mxu0 %v5229_v63 }
 0x79a   : > { %v7462_v14 = vunpack.i.h.bf16 %v7460_v54  ;;  %v7461_v56 = vunpack.i.l.bf16 %v7460_v54  ;;  %6343 = vmatmul.mubr.msk.bf16.vlgmr.msra.gmra.mrb[20].mxu0 %vm280_vm3, %v7565_v27 }
 0x79b   : > { %6699 = vmatmul.mubr.msk.bf16.vlgmr.msra.gmra.mrb[148].mxu1 %vm280_vm3, %v7565_v27  ;;  %v7465_v59 = vpop.permute.xlu0 %7464  ;;  %5240 = vmatpush1.bf16.msra.mxu0 %v5228_v44  ;;  %v5337_v7 = vsel %vm605_vm5, %v7456_v52, %v7457_v48  ;;  %v7569_v44 = vld [vmem:[%s8960_s1 + $0x148] sm:$0xff]  }
 0x79c   : > { %v7467_v61 = vunpack.i.h.bf16 %v7465_v59  ;;  %v7466_v5 = vunpack.i.l.bf16 %v7465_v59  ;;  %6703 = vmatpush3.bf16.msra.mxu1 %v5230_v46  ;;  %v5339_v15 = vsel %vm605_vm5, %v7461_v56, %v7462_v14  ;;  %5271 = vmatprep.mubr.bf16.mxu0 %v7641_v10 }
 0x79d   : > { %v7470_v62 = vpop.permute.xlu1 %7469  ;;  %v5353_v41 = vpack.c.bf16 %v5339_v15, %v5337_v7  ;;  %6704 = vmatprep.mubr.msk.bf16.mxu1 %vm7640_vm0, %v7637_v0  ;;  %6708 = vmatprep.subr.bf16.mxu1 %v7637_v0 }
 0x79e   : > { %v5340_v47 = vsel %vm605_vm5, %v7462_v14, %v7467_v61  ;;  %v5348_v50 = vsel %vm605_vm5, %v7467_v61, %v7461_v56  ;;  %v5338_v51 = vsel %vm605_vm5, %v7457_v48, %v7466_v5  ;;  %v5347_v53 = vsel %vm605_vm5, %v7466_v5, %v7456_v52 }
 0x79f   : > { %v5352_v19 = vpack.c.bf16 %v5348_v50, %v5347_v53  ;;  %v7475_v31 = vpop.permute.xlu0 %7474  ;;  %5363 = vmatprep.subr.bf16.mxu0 %v5353_v41  ;;  %v5354_v2 = vpack.c.bf16 %v5340_v47, %v5338_v51  ;;  %v7472_v60 = vunpack.i.h.bf16 %v7470_v62  ;;  %v7471_v25 = vunpack.i.l.bf16 %v7470_v62 }
 0x7a0   : > { %v7477_v9 = vunpack.i.h.bf16 %v7475_v31  ;;  %v7476_v13 = vunpack.i.l.bf16 %v7475_v31 }
 0x7a1   : > { %v7480_v8 = vpop.permute.xlu1 %7479  ;;  %v5558_v24 = vsel %vm838_vm6, %v7471_v25, %v7472_v60 }
 0x7a2   : > { %6348 = vmatmul.mubr.msk.bf16.vlgmr.msra.gmra.mrb[24].mxu0 %vm280_vm3, %v7566_v12  ;;  %v5560_v22 = vsel %vm838_vm6, %v7476_v13, %v7477_v9  ;;  %v7482_v28 = vunpack.i.h.bf16 %v7480_v8  ;;  %v7481_v30 = vunpack.i.l.bf16 %v7480_v8 }
 0x7a3   : > { %6705 = vmatmul.mubr.msk.bf16.vlgmr.msra.gmra.mrb[152].mxu1 %vm280_vm3, %v7566_v12  ;;  %5364 = vmatpush1.bf16.msra.mxu0 %v5352_v19  ;;  %v7485_v18 = vpop.permute.xlu0 %7484  ;;  %v5575_v6 = vpack.c.bf16 %v5560_v22, %v5558_v24  ;;  %v7570_v12 = vld [vmem:[%s8960_s1 + $0x150] sm:$0xff]   ;;  %v7571_v24 = vld [vmem:[%s8960_s1 + $0x158] sm:$0xff]  }
 0x7a4   : > { %6709 = vmatpush3.bf16.msra.mxu1 %v5354_v2  ;;  %5461 = vmatprep.subr.bf16.mxu0 %v5451_v11  ;;  %v7487_v4 = vunpack.i.h.bf16 %v7485_v18  ;;  %v7486_v1 = vunpack.i.l.bf16 %v7485_v18  ;;  %v5557_v17 = vsel %vm838_vm6, %v7481_v30, %v7471_v25  ;;  %v5559_v35 = vsel %vm838_vm6, %v7482_v28, %v7476_v13 }
 0x7a5   : > { %5395 = vmatprep.mubr.bf16.mxu0 %v7641_v10  ;;  %v7490_v16 = vpop.permute.xlu1 %7489  ;;  %6710 = vmatprep.mubr.msk.bf16.mxu1 %vm7640_vm0, %v7637_v0  ;;  %v5569_v57 = vsel %vm838_vm6, %v7472_v60, %v7481_v30  ;;  %v5570_v58 = vsel %vm838_vm6, %v7477_v9, %v7482_v28 }
 0x7a6   : > { %6714 = vmatprep.subr.bf16.mxu1 %v7637_v0  ;;  %v7492_v11 = vunpack.i.h.bf16 %v7490_v16  ;;  %v7491_v33 = vunpack.i.l.bf16 %v7490_v16  ;;  %v5682_v36 = vsel %vm969_vm7, %v7486_v1, %v7487_v4  ;;  %v5576_v38 = vpack.c.bf16 %v5570_v58, %v5569_v57 }
 0x7a7   : > { %v7495_v37 = vpop.permute.xlu0 %7494 }
 0x7a8   : > { %v7497_v40 = vunpack.i.h.bf16 %v7495_v37  ;;  %v7496_v23 = vunpack.i.l.bf16 %v7495_v37 }
 0x7a9   : > { %v8838_v34 = vpop.permute.xlu1 %7499 }
 0x7aa   : > { %6353 = vmatmul.mubr.msk.bf16.vlgmr.msra.gmra.mrb[28].mxu0 %vm280_vm3, %v7567_v20  ;;  %v7502_v49 = vunpack.i.h.bf16 %v8838_v34  ;;  %v7501_v55 = vunpack.i.l.bf16 %v8838_v34  ;;  %v5683_v32 = vsel %vm969_vm7, %v7497_v40, %v7491_v33  ;;  %v5681_v43 = vsel %vm969_vm7, %v7496_v23, %v7486_v1 }
 0x7ab   : > { %6711 = vmatmul.mubr.msk.bf16.vlgmr.msra.gmra.mrb[156].mxu1 %vm280_vm3, %v7567_v20  ;;  %5462 = vmatpush1.bf16.msra.mxu0 %v5450_v45  ;;  %v7505_v39 = vpop.permute.xlu0 %7504  ;;  %v5574_v45 = vpack.c.bf16 %v5559_v35, %v5557_v17  ;;  %v5694_v46 = vsel %vm969_vm7, %v7492_v11, %v7497_v40  ;;  %v5693_v48 = vsel %vm969_vm7, %v7487_v4, %v7496_v23 }
 0x7ac   : > { %6715 = vmatpush3.bf16.msra.mxu1 %v5452_v21  ;;  %5585 = vmatprep.subr.bf16.mxu0 %v5575_v6  ;;  %v5684_v21 = vsel %vm969_vm7, %v7491_v33, %v7492_v11  ;;  %v7507_v29 = vunpack.i.h.bf16 %v7505_v39  ;;  %v7506_v63 = vunpack.i.l.bf16 %v7505_v39  ;;  %v5698_v14 = vpack.c.bf16 %v5683_v32, %v5681_v43  ;;  %v7572_v11 = vld [vmem:[%s8960_s1 + $0x160] sm:$0xff]  }
 0x7ad   : > { %5493 = vmatprep.mubr.bf16.mxu0 %v7641_v10  ;;  %6716 = vmatprep.mubr.msk.bf16.mxu1 %vm7640_vm0, %v7637_v0  ;;  %v7510_v26 = vpop.permute.xlu1 %7509  ;;  %v5699_v27 = vpack.c.bf16 %v5684_v21, %v5682_v36  ;;  %v5806_v59 = vsel %vm1100_vm8, %v7501_v55, %v7502_v49  ;;  %v5700_v61 = vpack.c.bf16 %v5694_v46, %v5693_v48 }
 0x7ae   : > { %6720 = vmatprep.subr.bf16.mxu1 %v7637_v0  ;;  %v5808_v52 = vsel %vm1100_vm8, %v7506_v63, %v7507_v29  ;;  %v7512_v5 = vunpack.i.h.bf16 %v7510_v26  ;;  %v7511_v7 = vunpack.i.l.bf16 %v7510_v26 }
 0x7af   : > { %v7515_v56 = vpop.permute.xlu0 %7514  ;;  %v5823_v15 = vpack.c.bf16 %v5808_v52, %v5806_v59 }
 0x7b0   : > { %v7517_v47 = vunpack.i.h.bf16 %v7515_v56  ;;  %v7516_v50 = vunpack.i.l.bf16 %v7515_v56  ;;  %v5805_v51 = vsel %vm1100_vm8, %v7511_v7, %v7501_v55  ;;  %v5807_v53 = vsel %vm1100_vm8, %v7512_v5, %v7506_v63 }
 0x7b1   : > { %v7520_v54 = vpop.permute.xlu1 %7519  ;;  %v5817_v19 = vsel %vm1100_vm8, %v7502_v49, %v7511_v7  ;;  %v5818_v31 = vsel %vm1100_vm8, %v7507_v29, %v7512_v5  ;;  %v5822_v9 = vpack.c.bf16 %v5807_v53, %v5805_v51 }
 0x7b2   : > { %6358 = vmatmul.mubr.msk.bf16.vlgmr.msra.gmra.mrb[32].mxu0 %vm280_vm3, %v7568_v3  ;;  %v7522_v62 = vunpack.i.h.bf16 %v7520_v54  ;;  %v7521_v41 = vunpack.i.l.bf16 %v7520_v54  ;;  %v5930_v13 = vsel %vm1231_vm9, %v7516_v50, %v7517_v47  ;;  %v5824_v18 = vpack.c.bf16 %v5818_v31, %v5817_v19 }
 0x7b3   : > { %6717 = vmatmul.mubr.msk.bf16.vlgmr.msra.gmra.mrb[160].mxu1 %vm280_vm3, %v7568_v3  ;;  %5586 = vmatpush1.bf16.msra.mxu0 %v5574_v45  ;;  %v7525_v2 = vpop.permute.xlu0 %7524 }
 0x7b4   : > { %6721 = vmatpush3.bf16.msra.mxu1 %v5576_v38  ;;  %5709 = vmatprep.subr.bf16.mxu0 %v5699_v27  ;;  %v5932_v8 = vsel %vm1231_vm9, %v7521_v41, %v7522_v62  ;;  %v7527_v60 = vunpack.i.h.bf16 %v7525_v2  ;;  %v7526_v25 = vunpack.i.l.bf16 %v7525_v2 }
 0x7b5   : > { %5617 = vmatprep.mubr.bf16.mxu0 %v7641_v10  ;;  %6722 = vmatprep.mubr.msk.bf16.mxu1 %vm7640_vm0, %v7637_v0  ;;  %v5947_v16 = vpack.c.bf16 %v5932_v8, %v5930_v13 }
 0x7b6   : > { %6726 = vmatprep.subr.bf16.mxu1 %v7637_v0  ;;  %v5931_v20 = vsel %vm1231_vm9, %v7527_v60, %v7521_v41  ;;  %v5929_v22 = vsel %vm1231_vm9, %v7526_v25, %v7516_v50  ;;  %v5942_v28 = vsel %vm1231_vm9, %v7522_v62, %v7527_v60  ;;  %v5941_v30 = vsel %vm1231_vm9, %v7517_v47, %v7526_v25 }
 0x7b7   : > { %v5946_v37 = vpack.c.bf16 %v5931_v20, %v5929_v22  ;;  %v5948_v6 = vpack.c.bf16 %v5942_v28, %v5941_v30 }
 0x7ba   : > { %6363 = vmatmul.mubr.msk.bf16.vlgmr.msra.gmra.mrb[36].mxu0 %vm280_vm3, %v7569_v44 }
 0x7bb   : > { %6723 = vmatmul.mubr.msk.bf16.vlgmr.msra.gmra.mrb[164].mxu1 %vm280_vm3, %v7569_v44  ;;  %5710 = vmatpush1.bf16.msra.mxu0 %v5698_v14 }
 0x7bc   : > { %6727 = vmatpush3.bf16.msra.mxu1 %v5700_v61  ;;  %5833 = vmatprep.subr.bf16.mxu0 %v5823_v15 }
 0x7bd   : > { %5741 = vmatprep.mubr.bf16.mxu0 %v7641_v10  ;;  %6728 = vmatprep.mubr.msk.bf16.mxu1 %vm7640_vm0, %v7637_v0 }
 0x7be   : > { %6732 = vmatprep.subr.bf16.mxu1 %v7637_v0 }
 0x7c2   : > { %6368 = vmatmul.mubr.msk.bf16.vlgmr.msra.gmra.mrb[40].mxu0 %vm280_vm3, %v7570_v12 }
 0x7c3   : > { %6729 = vmatmul.mubr.msk.bf16.vlgmr.msra.gmra.mrb[168].mxu1 %vm280_vm3, %v7570_v12  ;;  %5834 = vmatpush1.bf16.msra.mxu0 %v5822_v9 }
 0x7c4   : > { %6733 = vmatpush3.bf16.msra.mxu1 %v5824_v18  ;;  %5957 = vmatprep.subr.bf16.mxu0 %v5947_v16 }
 0x7c5   : > { %5865 = vmatprep.mubr.bf16.mxu0 %v7641_v10  ;;  %6734 = vmatprep.mubr.msk.bf16.mxu1 %vm7640_vm0, %v7637_v0 }
 0x7c6   : > { %6738 = vmatprep.subr.bf16.mxu1 %v7637_v0 }
 0x7ca   : > { %6373 = vmatmul.mubr.msk.bf16.vlgmr.msra.gmra.mrb[44].mxu0 %vm280_vm3, %v7571_v24 }
 0x7cb   : > { %6735 = vmatmul.mubr.msk.bf16.vlgmr.msra.gmra.mrb[172].mxu1 %vm280_vm3, %v7571_v24  ;;  %5958 = vmatpush1.bf16.msra.mxu0 %v5946_v37 }
 0x7cc   : > { %6739 = vmatpush3.bf16.msra.mxu1 %v5948_v6  ;;  %5989 = vmatprep.mubr.bf16.mxu0 %v7641_v10 }
 0x7cd   : > { %6740 = vmatprep.mubr.msk.bf16.mxu1 %vm7640_vm0, %v7637_v0 }
 0x7d2   : > { %6378 = vmatmul.mubr.msk.bf16.vlgmr.msra.gmra.mrb[48].mxu0 %vm280_vm3, %v7572_v11 }
 0x7d3   : > { %6741 = vmatmul.mubr.msk.bf16.vlgmr.msra.gmra.mrb[176].mxu1 %vm280_vm3, %v7572_v11 }
 0x865   : > { %v5063_v33 = vpop.f32.mrb[16].mxu0 }
 0x866   : > { %v5065_v34 = vpop.f32.mrb[17].mxu0  ;;  %v5104_v4 = vpop.f32.mrb[144].mxu1 }
 0x867   : > { %v5067_v1 = vpop.f32.mrb[18].mxu0  ;;  %v6694_v17 = vpop.f32.mrb[145].mxu1 }
 0x868   : > { %v5068_v35 = vpop.f32.mrb[19].mxu0  ;;  %v5107_v3 = vpop.f32.mrb[146].mxu1 }
 0x869   : > { %v6695_v57 = vpop.f32.mrb[147].mxu1 }
 0x86d   : > { %v5152_v10 = vpop.f32.mrb[20].mxu0 }
 0x86e   : > { %v5153_v58 = vadd.f32 %v5152_v10, %v5063_v33  ;;  %v5193_v21 = vpop.f32.mrb[148].mxu1  ;;  %v5154_v0 = vpop.f32.mrb[21].mxu0 }
 0x86f   : > { %v5194_v39 = vadd.f32 %v5193_v21, %v5104_v4  ;;  %v5155_v45 = vadd.f32 %v5154_v0, %v5065_v34  ;;  %v5156_v36 = vpop.f32.mrb[22].mxu0  ;;  %v6700_v38 = vpop.f32.mrb[149].mxu1 }
 0x870   : > { %v5157_v40 = vpop.f32.mrb[23].mxu0  ;;  %v5196_v23 = vpop.f32.mrb[150].mxu1 }
 0x871   : > { %v6701_v26 = vpop.f32.mrb[151].mxu1 }
 0x875   : > { %v5273_v27 = vpop.f32.mrb[24].mxu0 }
 0x876   : > { %v5320_v29 = vadd.f32 %v5273_v27, %v5153_v58  ;;  %v5314_v63 = vpop.f32.mrb[152].mxu1  ;;  %v5275_v49 = vpop.f32.mrb[25].mxu0 }
 0x877   : > { %v5322_v55 = vadd.f32 %v5314_v63, %v5194_v39  ;;  %v5321_v32 = vadd.f32 %v5275_v49, %v5155_v45  ;;  %v5277_v43 = vpop.f32.mrb[26].mxu0  ;;  %v6706_v44 = vpop.f32.mrb[153].mxu1  ;;  %v7648_v49 = vmov 1983009808  }
 0x878   : > { %v5278_v46 = vpop.f32.mrb[27].mxu0  ;;  %v5317_v48 = vpop.f32.mrb[154].mxu1 }
 0x879   : > { %v6707_v52 = vpop.f32.mrb[155].mxu1 }
 0x87d   : > { %v5397_v54 = vpop.f32.mrb[28].mxu0 }
 0x87e   : > { %v5444_v14 = vadd.f32 %v5397_v54, %v5320_v29  ;;  %v5438_v56 = vpop.f32.mrb[156].mxu1  ;;  %v5399_v59 = vpop.f32.mrb[29].mxu0 }
 0x87f   : > { %v5446_v61 = vadd.f32 %v5438_v56, %v5322_v55  ;;  %v5445_v5 = vadd.f32 %v5399_v59, %v5321_v32  ;;  %v5401_v7 = vpop.f32.mrb[30].mxu0  ;;  %v6712_v15 = vpop.f32.mrb[157].mxu1  ;;  %v6056_v55 = vunpack.c.l.s4 %v7648_v49 }
 0x880   : > { %v5402_v62 = vpop.f32.mrb[31].mxu0  ;;  %v5441_v41 = vpop.f32.mrb[158].mxu1 }
 0x881   : > { %v6713_v47 = vpop.f32.mrb[159].mxu1  ;;  %v6046_v32 = vpop.permute.xlu1 %6045  ;;  %v6057_v44 = vunpack.c.0.s8 %v6056_v55 }
 0x883   : > { %v6060_v62 = vsub.s32 %v6057_v44, %v7976_v42 }
 0x885   : > { %v5495_v50 = vpop.f32.mrb[32].mxu0 }
 0x886   : > { %v5542_v51 = vadd.f32 %v5495_v50, %v5444_v14  ;;  %v5536_v53 = vpop.f32.mrb[160].mxu1  ;;  %v5497_v12 = vpop.f32.mrb[33].mxu0 }
 0x887   : > { %v5544_v19 = vadd.f32 %v5536_v53, %v5446_v61  ;;  %v5543_v31 = vadd.f32 %v5497_v12, %v5445_v5  ;;  %v5499_v2 = vpop.f32.mrb[34].mxu0  ;;  %v6718_v8 = vpop.f32.mrb[161].mxu1 }
 0x888   : > { %v5500_v9 = vpop.f32.mrb[35].mxu0  ;;  %v5539_v13 = vpop.f32.mrb[162].mxu1 }
 0x889   : > { %v6719_v18 = vpop.f32.mrb[163].mxu1 }
 0x88d   : > { %v5619_v60 = vpop.f32.mrb[36].mxu0 }
 0x88e   : > { %v5666_v25 = vadd.f32 %v5619_v60, %v5542_v51  ;;  %v5660_v16 = vpop.f32.mrb[164].mxu1  ;;  %v5621_v20 = vpop.f32.mrb[37].mxu0 }
 0x88f   : > { %v5668_v22 = vadd.f32 %v5660_v16, %v5544_v19  ;;  %v5667_v24 = vadd.f32 %v5621_v20, %v5543_v31  ;;  %v5623_v28 = vpop.f32.mrb[38].mxu0  ;;  %v6724_v30 = vpop.f32.mrb[165].mxu1 }
 0x890   : > { %v5624_v37 = vpop.f32.mrb[39].mxu0  ;;  %v5663_v6 = vpop.f32.mrb[166].mxu1 }
 0x891   : > { %v6725_v11 = vpop.f32.mrb[167].mxu1 }
 0x895   : > { %v5743_v33 = vpop.f32.mrb[40].mxu0 }
 0x896   : > { %v5790_v34 = vadd.f32 %v5743_v33, %v5666_v25  ;;  %v5784_v4 = vpop.f32.mrb[168].mxu1  ;;  %v5745_v1 = vpop.f32.mrb[41].mxu0 }
 0x897   : > { %v5792_v17 = vadd.f32 %v5784_v4, %v5668_v22  ;;  %v5791_v35 = vadd.f32 %v5745_v1, %v5667_v24  ;;  %v5747_v3 = vpop.f32.mrb[42].mxu0  ;;  %v6730_v57 = vpop.f32.mrb[169].mxu1 }
 0x898   : > { %v5748_v10 = vpop.f32.mrb[43].mxu0  ;;  %v5787_v58 = vpop.f32.mrb[170].mxu1 }
 0x899   : > { %v6731_v21 = vpop.f32.mrb[171].mxu1 }
 0x89d   : > { %v5867_v0 = vpop.f32.mrb[44].mxu0 }
 0x89e   : > { %v5914_v39 = vadd.f32 %v5867_v0, %v5790_v34  ;;  %v5908_v45 = vpop.f32.mrb[172].mxu1  ;;  %v5869_v36 = vpop.f32.mrb[45].mxu0 }
 0x89f   : > { %v5916_v38 = vadd.f32 %v5908_v45, %v5792_v17  ;;  %v5915_v40 = vadd.f32 %v5869_v36, %v5791_v35  ;;  %v5871_v23 = vpop.f32.mrb[46].mxu0  ;;  %v6736_v26 = vpop.f32.mrb[173].mxu1 }
 0x8a0   : > { %v5872_v27 = vpop.f32.mrb[47].mxu0  ;;  %v5911_v29 = vpop.f32.mrb[174].mxu1 }
 0x8a1   : > { %v6737_v63 = vpop.f32.mrb[175].mxu1 }
 0x8a5   : > { %v5991_v43 = vpop.f32.mrb[48].mxu0 }
 0x8a6   : > { %v6038_v46 = vadd.f32 %v5991_v43, %v5914_v39  ;;  %v6032_v48 = vpop.f32.mrb[176].mxu1  ;;  %v5993_v52 = vpop.f32.mrb[49].mxu0 }
 0x8a7   : > { %v6040_v54 = vadd.f32 %v6032_v48, %v5916_v38  ;;  %v6039_v14 = vadd.f32 %v5993_v52, %v5915_v40  ;;  %v5995_v56 = vpop.f32.mrb[50].mxu0  ;;  %v6742_v59 = vpop.f32.mrb[177].mxu1 }
 0x8a8   : > { %v6048_v61 = vadd.f32 %v6046_v32, %v6038_v46  ;;  %v5996_v5 = vpop.f32.mrb[51].mxu0  ;;  %v6035_v7 = vpop.f32.mrb[178].mxu1 }
 0x8a9   : > { %v6050_v15 = vadd.f32 %v6046_v32, %v6040_v54  ;;  %v6049_v41 = vadd.f32 %v6046_v32, %v6039_v14  ;;  %v6743_v47 = vpop.f32.mrb[179].mxu1 }
 0x8ab   : > { %v6054_v50 = vcombine.low %v6048_v61, %v6049_v41  ;;  %v6068_v51 = vrot.slane %v6050_v15, %v6060_v62 }
 0x8ad   : > { %v6061_v53 = vrot.slane %v6054_v50, %v6060_v62 }
 0x8af   : > { %v6069_v12 = vcombine.low %v6061_v53, %v6068_v51 }
 0x8b1   : > { %6071 = vst [vmem:[%s190_s12] sm:$0x3f] %v6069_v12 }
 0x8b2   : > { %7586 = shalt.err (!%p7583_p3)
}
 0x8b3   : > { %s7587_s30 = scalar_lea.hbm %s8917_s22, 96  ;;  %s7591_s7 = scalar_lea.hbm %s8963_s4, 192 }
 0x8b4   : > { %p7588_p4 = scmp.ne.s32.totalorder %s8917_s22, %s7587_s30  ;;  %p7592_p9 = scmp.lt.u32.totalorder %s8917_s22, %s8963_s4 }
 0x8b5   : > { %p7593_p10 = scmp.lt.u32.totalorder %s7591_s7, %s7587_s30  ;;  %p7595_p12 = scmp.lt.u32.totalorder %s7587_s30, %s8917_s22 }
 0x8b6   : > { %p7589_p7 = pnand %p7588_p4, %p7713_p5 }
 0x8b7   : > { %p7594_p11 = por %p7593_p10, %p7592_p9 }
 0x8b8   : > { %p7590_p8 = pneg %p7589_p7 }
 0x8b9   : > { %p7596_p13 = por %p7595_p12, %p7594_p11 }
 0x8bb   : > { %p7597_p0 = pnand %p7596_p13, %p7590_p8 }
 0x8bd   : > { %7600 = shalt.err (!%p7597_p0)
}
 0x8be   : > { %6875 = dma.vmem_to_hbm [thread:$0]  (%p7713_p5), %s8919_s13, 96, %s8917_s22, %s6073_s23  }
 0x8bf PF: > { %p6881_p1 = scmp.ge.s32.totalorder %s7635_s18, 2  ;;  %s6099_s10 = sand.u32 1, %s7623_s15  }
 0x8c0   : > { %s6100_s11 = scalar_lea.sflag [#allocation3], %s6099_s10 }
 0x8c1   : > { %p6878_p2 = pnand %p6881_p1, %p7717_p6 }
 0x8c3   : > { %7618 = dma.done.wait (!%p6878_p2), %s6100_s11, 96  }
 0x8c4   : > { %7620 = vsyncadd (!%p6878_p2), %s6100_s11, 4294967200  ;;  %p14_p3 = scmp.ge.s32.totalorder %s7700_s21, 4   ;;  %s8966_s15 = smov %s7627_s16 }
 0x8c5   : > { %s8967_s16 = smov %s7631_s17  ;;  %s8968_s17 = smov %s7711_s24 }
 0x8c6   : > { %s8969_s18 = smov %s7700_s21  ;;  %16 = sbr.rel (!%p14_p3) target bundleno = 3 (0x3), region = 119 }
 0x8cd   :  { %6105 = vsyncpa [#allocation3], 1 }
 0x8ce   :  { %6107 = vsyncpa [#allocation3 + $0x1], 1 }

</bundles_post_ra>
